<compile_context>
chip_gen: v5e
topology: v5e:2x2
jax: 0.10.0
libtpu: 0.0.40
codegen_flags: <defaults>
</compile_context>

<pallas_src>
import jax
import jax.numpy as jnp
import numpy as np
from jax.experimental import pallas as pl
from jax.experimental.pallas import tpu as pltpu


# ----------------------------------------------------------------------------
# Fused Pallas kernel: one batch tile (TB rows) per grid step.
# ----------------------------------------------------------------------------

def _news_encoder_kernel(
    # batch-tiled data (embedding gathers are host-side glue)
    tx_ref,    # (TB, Nt + 2*pad, E)  title word embeddings, zero conv padding, mm dtype
    bx_ref,    # (TB, Nb + 2*pad, E)  body word embeddings, mm dtype
    cs_ref,    # (TB, 2*Dc)           [category ; sub_category] embeddings, mm dtype
    # title text-encoder weights
    t_cw_ref,  # (W*E, Cp)  conv-as-matmul weight (mm dtype), Cp lane-padded
    t_cb_ref,  # (1, Cp)    conv bias (f32)
    t_aw_ref,  # (Cp, Q)    additive-attention projection (mm dtype)
    t_ab_ref,  # (1, Q)     projection bias (f32)
    t_aq_ref,  # (1, Q)     attention query (f32)
    # body text-encoder weights
    b_cw_ref, b_cb_ref, b_aw_ref, b_ab_ref, b_aq_ref,
    # fused element-encoder weights (block-diagonal)
    el_w_ref,  # (2*Dc, 2*Cp) mm dtype
    el_b_ref,  # (1, 2*Cp)    f32
    # final additive attention
    f_aw_ref, f_ab_ref, f_aq_ref,
    # output
    o_ref,     # (TB, Cp)  lane-dense
):
    f32 = jnp.float32

    def text_field(x_ref, cw_ref, cb_ref, aw_ref, ab_ref, aq_ref):
        tb, n_pad, e = x_ref.shape
        we, cp = cw_ref.shape
        win = we // e
        n = n_pad - (win - 1)
        q = aw_ref.shape[1]

        x = x_ref[...]                       # (tb, n_pad, E) mm dtype
        cw = cw_ref[...]                     # (W*E, Cp)      mm dtype

        # Conv as K-split matmul accumulation (no unfolded (tb*n, W*E)
        # intermediate): conv = sum_i x[:, i:i+n, :] @ W_i  -> f32 acc.
        acc = None
        for i in range(win):
            xi = x[:, i:i + n, :].reshape(tb * n, e)
            part = jnp.dot(xi, cw[i * e:(i + 1) * e, :],
                           preferred_element_type=f32)
            acc = part if acc is None else acc + part
        conv = jnp.maximum(acc + cb_ref[...], 0.0)           # (tb*n, Cp) f32

        # Additive attention over tokens.  Scores / softmax stay in the dense
        # (tb, n) lane layout; expand to (tb, n, 1) only for the final bcast.
        t = jnp.tanh(jnp.dot(conv.astype(aw_ref.dtype), aw_ref[...],
                             preferred_element_type=f32) + ab_ref[...])   # (tb*n, Q)
        s = jnp.sum(t.reshape(tb, n, q) * aq_ref[...], axis=-1)           # (tb, n)
        s = s - jnp.max(s, axis=-1, keepdims=True)
        ex = jnp.exp(s)
        a = ex / jnp.sum(ex, axis=-1, keepdims=True)                      # (tb, n)
        conv3 = conv.reshape(tb, n, cp)
        return jnp.sum(a[:, :, None] * conv3, axis=1)                     # (tb, Cp) f32

    title_v = text_field(tx_ref, t_cw_ref, t_cb_ref, t_aw_ref, t_ab_ref, t_aq_ref)
    body_v = text_field(bx_ref, b_cw_ref, b_cb_ref, b_aw_ref, b_ab_ref, b_aq_ref)

    # Category + sub-category ReLU(Linear) fused into one block-diagonal
    # matmul with a lane-dense (tb, 2*Cp) intermediate, sliced at lane 128*k.
    cp = t_cw_ref.shape[1]
    el = jnp.maximum(
        jnp.dot(cs_ref[...].astype(el_w_ref.dtype), el_w_ref[...],
                preferred_element_type=f32) + el_b_ref[...], 0.0)          # (tb, 2*Cp)
    cat_v = el[:, :cp]
    sub_v = el[:, cp:]

    # Final additive attention over the 4 field vectors: one stacked
    # projection matmul + an element-wise 4-way softmax, all in VMEM.
    tb = title_v.shape[0]
    v_all = jnp.concatenate([title_v, body_v, cat_v, sub_v], axis=0)       # (4*tb, Cp)
    tt = jnp.tanh(jnp.dot(v_all.astype(f_aw_ref.dtype), f_aw_ref[...],
                          preferred_element_type=f32) + f_ab_ref[...])     # (4*tb, Q)
    s_all = jnp.sum(tt * f_aq_ref[...], axis=-1, keepdims=True)            # (4*tb, 1)
    s0 = s_all[0 * tb:1 * tb, :]
    s1 = s_all[1 * tb:2 * tb, :]
    s2 = s_all[2 * tb:3 * tb, :]
    s3 = s_all[3 * tb:4 * tb, :]
    m = jnp.maximum(jnp.maximum(s0, s1), jnp.maximum(s2, s3))
    e0 = jnp.exp(s0 - m)
    e1 = jnp.exp(s1 - m)
    e2 = jnp.exp(s2 - m)
    e3 = jnp.exp(s3 - m)
    z = e0 + e1 + e2 + e3
    out = (e0 * title_v + e1 * body_v + e2 * cat_v + e3 * sub_v) / z       # (tb, Cp)
    o_ref[...] = out.astype(o_ref.dtype)


# ----------------------------------------------------------------------------
# Wrapper: embedding gathers (glue), weight lane-padding, batch tiling.
# ----------------------------------------------------------------------------

def news_encoder_forward(news, params, config, *, block_b=256, mm_dtype=jnp.float32):
    W = config["window_size"]
    pad = (W - 1) // 2
    C = config["num_filters"]
    Cp = ((C + 127) // 128) * 128                 # lane-dense channel width
    E = config["word_embedding_dim"]
    Dc = config["category_embedding_dim"]

    word_emb = params["word_embedding"].astype(mm_dtype)
    cat_emb = params["category_embedding"].astype(mm_dtype)

    B = news["title"].shape[0]
    b_up = ((B + 7) // 8) * 8
    blk = max(8, (min(block_b, b_up) // 8) * 8)   # multiple of 8, capped by batch
    n_tiles = pl.cdiv(B, blk)
    B_pad = n_tiles * blk

    def pad_batch(x):
        if x.shape[0] == B_pad:
            return x
        return jnp.pad(x, ((0, B_pad - x.shape[0]),) + ((0, 0),) * (x.ndim - 1))

    # Host-side glue: embedding gather (already in mm dtype -> half DMA bytes
    # on the bf16 path) + zero "same" conv padding on the token axis.
    def text_input(tokens):
        emb = word_emb[tokens]                                # (B, N, E)
        emb = jnp.pad(emb, ((0, 0), (pad, pad), (0, 0)))      # (B, N + 2*pad, E)
        return pad_batch(emb)

    title_x = text_input(news["title"])
    body_x = text_input(news["body"])
    cs_x = pad_batch(jnp.concatenate(
        [cat_emb[news["category"]], cat_emb[news["sub_category"]]], axis=-1))  # (B_pad, 2*Dc)

    def pad_last(a, t):
        return jnp.pad(a, ((0, 0),) * (a.ndim - 1) + ((0, t - a.shape[-1]),))

    def pad_first(a, t):
        return jnp.pad(a, ((0, t - a.shape[0]),) + ((0, 0),) * (a.ndim - 1))

    mm = lambda a: a.astype(mm_dtype)          # matmul operands (bf16 on v6e/v7x)
    f32a = lambda a: a.astype(jnp.float32)     # biases / attention queries stay f32

    def text_weights(p):
        return [mm(pad_last(p["conv_w"], Cp)), f32a(pad_last(p["conv_b"], Cp)),
                mm(pad_first(p["att_w"], Cp)), f32a(p["att_b"]), f32a(p["att_q"])]

    tp = params["text_encoders"]["title"]
    bp = params["text_encoders"]["body"]
    cep = params["element_encoders"]["category"]
    sep = params["element_encoders"]["sub_category"]
    fp = params["final_attention"]

    # Block-diagonal fused element-encoder weight: (2*Dc, 2*Cp).
    c_lw = pad_last(cep["lin_w"], Cp)
    s_lw = pad_last(sep["lin_w"], Cp)
    zeros = jnp.zeros((Dc, Cp), c_lw.dtype)
    el_w = jnp.concatenate(
        [jnp.concatenate([c_lw, zeros], axis=1),
         jnp.concatenate([zeros, s_lw], axis=1)], axis=0)
    el_b = jnp.concatenate([pad_last(cep["lin_b"], Cp), pad_last(sep["lin_b"], Cp)], axis=1)

    args = [title_x, body_x, cs_x,
            *text_weights(tp), *text_weights(bp),
            mm(el_w), f32a(el_b),
            mm(pad_first(fp["att_w"], Cp)), f32a(fp["att_b"]), f32a(fp["att_q"])]

    def batch3_spec(a):
        return pl.BlockSpec((blk, a.shape[1], a.shape[2]), lambda b: (b, 0, 0))

    def batch2_spec(a):
        return pl.BlockSpec((blk, a.shape[1]), lambda b: (b, 0))

    def full_spec(a):
        nd = a.ndim
        return pl.BlockSpec(a.shape, lambda b, nd=nd: (0,) * nd)

    in_specs = [batch3_spec(title_x), batch3_spec(body_x), batch2_spec(cs_x)]
    in_specs += [full_spec(a) for a in args[3:]]

    # Rough per-tile VMEM working-set estimate -> raise the scoped limit when
    # the tile grows past the small defaults (16/32 MiB); cap at 64 MiB (v7x).
    in_item = jnp.dtype(mm_dtype).itemsize
    Nt = news["title"].shape[1]
    Nb = news["body"].shape[1]
    block_bytes = 2 * (title_x[0].size + body_x[0].size + cs_x[0].size) * in_item
    block_bytes += 2 * blk * Cp * 4                                   # output blocks
    weight_bytes = 2 * sum(int(np.prod(a.shape)) * jnp.dtype(a.dtype).itemsize
                           for a in args[3:])
    act_bytes = blk * (Nt + Nb) * Cp * 4 * 3                          # f32 conv activations
    est = block_bytes + weight_bytes + act_bytes
    cp_kwargs = dict(dimension_semantics=("parallel",))
    if est > 12 * 1024 * 1024:
        cp_kwargs["vmem_limit_bytes"] = int(min(max(2 * est, 32 * 1024 * 1024),
                                                64 * 1024 * 1024))

    out = pl.pallas_call(
        _news_encoder_kernel,
        out_shape=jax.ShapeDtypeStruct((B_pad, Cp), jnp.float32),
        grid=(n_tiles,),
        in_specs=in_specs,
        out_specs=pl.BlockSpec((blk, Cp), lambda b: (b, 0)),
        compiler_params=pltpu.CompilerParams(**cp_kwargs),
    )(*args)
    return out[:B, :C]


# ----------------------------------------------------------------------------
# Pure-JAX reference (uses lax conv; independent of the kernel's K-split trick)
# ----------------------------------------------------------------------------

def _ref_additive_attention(v, att_w, att_b, att_q):
    t = jnp.tanh(v @ att_w + att_b)                 # (B, M, Q)
    s = jnp.einsum("bmq,q->bm", t, att_q[0])        # (B, M)
    a = jax.nn.softmax(s, axis=1)
    return jnp.einsum("bm,bmc->bc", a, v)


def news_encoder_reference(news, params, config):
    word_emb = params["word_embedding"]
    cat_emb = params["category_embedding"]
    W = config["window_size"]
    pad = (W - 1) // 2

    text_vectors = []
    for name in ("title", "body"):
        p = params["text_encoders"][name]
        tok_emb = word_emb[news[name]]                              # (B, N, E)
        x = tok_emb[:, None, :, :]                                  # NCHW (B,1,N,E)
        out = jax.lax.conv_general_dilated(
            x, p["conv_w_nchw"], window_strides=(1, 1),
            padding=((pad, pad), (0, 0)),
            dimension_numbers=("NCHW", "OIHW", "NCHW"))             # (B,C,N,1)
        out = out + p["conv_b"].reshape(1, -1, 1, 1)
        feat = jnp.maximum(out[:, :, :, 0], 0.0).transpose(0, 2, 1)  # (B,N,C)
        text_vectors.append(
            _ref_additive_attention(feat, p["att_w"], p["att_b"], p["att_q"]))

    element_vectors = []
    for name in ("category", "sub_category"):
        p = params["element_encoders"][name]
        emb = cat_emb[news[name]]
        element_vectors.append(jnp.maximum(emb @ p["lin_w"] + p["lin_b"], 0.0))

    vectors = jnp.stack(text_vectors + element_vectors, axis=1)
    fa = params["final_attention"]
    return _ref_additive_attention(vectors, fa["att_w"], fa["att_b"], fa["att_q"])


# ----------------------------------------------------------------------------
# Deterministic parameter / input construction
# ----------------------------------------------------------------------------

def make_params(key, config):
    E = config["word_embedding_dim"]
    C = config["num_filters"]
    W = config["window_size"]
    Q = config["query_vector_dim"]
    Dc = config["category_embedding_dim"]

    keys = iter(jax.random.split(key, 32))
    nrm = lambda shape, s=0.05: (s * jax.random.normal(next(keys), shape)).astype(jnp.float32)

    word_embedding = nrm((config["num_words"], E), 0.1)
    word_embedding = word_embedding.at[0].set(0.0)        # padding_idx=0

    def make_text_encoder():
        conv_w_nchw = nrm((C, 1, W, E))                   # torch Conv2d weight (O,I,H,W)
        return {
            "conv_w_nchw": conv_w_nchw,
            "conv_w": conv_w_nchw.reshape(C, W * E).T,    # (W*E, C) for the kernel matmul
            "conv_b": nrm((1, C)),
            "att_w": nrm((C, Q)),
            "att_b": nrm((1, Q)),
            "att_q": nrm((1, Q)),
        }

    def make_element_encoder():
        return {"lin_w": nrm((Dc, C)), "lin_b": nrm((1, C))}

    return {
        "word_embedding": word_embedding,
        "category_embedding": nrm((config["num_categories"], Dc), 0.1),
        "text_encoders": {"title": make_text_encoder(), "body": make_text_encoder()},
        "element_encoders": {"category": make_element_encoder(),
                             "sub_category": make_element_encoder()},
        "final_attention": {"att_w": nrm((C, Q)), "att_b": nrm((1, Q)), "att_q": nrm((1, Q))},
    }


if __name__ == "__main__":
    config = dict(
        num_words=50,
        word_embedding_dim=32,
        num_filters=64,
        window_size=3,
        query_vector_dim=32,
        num_categories=8,
        category_embedding_dim=32,
        num_words_title=16,
        num_words_body=24,
        drop_prob=0.0,
    )
    B = 2

    root = jax.random.PRNGKey(0)
    kp, kt, kb, kc, ks = jax.random.split(root, 5)
    params = make_params(kp, config)

    news = {
        "title": jax.random.randint(kt, (B, config["num_words_title"]), 0, config["num_words"]),
        "body": jax.random.randint(kb, (B, config["num_words_body"]), 0, config["num_words"]),
        "category": jax.random.randint(kc, (B,), 0, config["num_categories"]),
        "sub_category": jax.random.randint(ks, (B,), 0, config["num_categories"]),
    }

    ref = jax.block_until_ready(news_encoder_reference(news, params, config))

    # f32 MXU operands: exact-ish vs reference.
    out = jax.block_until_ready(
        news_encoder_forward(news, params, config, mm_dtype=jnp.float32))
    assert out.shape == (B, config["num_filters"])
    np.testing.assert_allclose(np.asarray(out), np.asarray(ref), atol=1e-4, rtol=1e-4)

    # bf16 MXU operands (v6e/v7x fast path), f32 accumulation: loose tolerance.
    out_bf16 = jax.block_until_ready(
        news_encoder_forward(news, params, config, mm_dtype=jnp.bfloat16))
    np.testing.assert_allclose(np.asarray(out_bf16), np.asarray(ref), atol=5e-2, rtol=5e-2)

    print("KERNEL_OK")
</pallas_src>

<mosaic_0001>
module attributes {stable_mosaic.version = 11 : i64} {
  func.func @_news_encoder_kernel(%arg0: i32, %arg1: memref<8x18x32xf32, #tpu.memory_space<vmem>>, %arg2: memref<8x26x32xf32, #tpu.memory_space<vmem>>, %arg3: memref<8x64xf32, #tpu.memory_space<vmem>>, %arg4: memref<96x128xf32, #tpu.memory_space<vmem>>, %arg5: memref<1x128xf32, #tpu.memory_space<vmem>>, %arg6: memref<128x32xf32, #tpu.memory_space<vmem>>, %arg7: memref<1x32xf32, #tpu.memory_space<vmem>>, %arg8: memref<1x32xf32, #tpu.memory_space<vmem>>, %arg9: memref<96x128xf32, #tpu.memory_space<vmem>>, %arg10: memref<1x128xf32, #tpu.memory_space<vmem>>, %arg11: memref<128x32xf32, #tpu.memory_space<vmem>>, %arg12: memref<1x32xf32, #tpu.memory_space<vmem>>, %arg13: memref<1x32xf32, #tpu.memory_space<vmem>>, %arg14: memref<64x256xf32, #tpu.memory_space<vmem>>, %arg15: memref<1x256xf32, #tpu.memory_space<vmem>>, %arg16: memref<128x32xf32, #tpu.memory_space<vmem>>, %arg17: memref<1x32xf32, #tpu.memory_space<vmem>>, %arg18: memref<1x32xf32, #tpu.memory_space<vmem>>, %arg19: memref<8x128xf32, #tpu.memory_space<vmem>>) attributes {dimension_semantics = [#tpu.dimension_semantics<parallel>], iteration_bounds = array<i64: 1>, scalar_prefetch = 0 : i64, scratch_operands = 0 : i64, tpu.core_type = #tpu.core_type<tc>, window_params = [{transform_indices = @transform_0, window_bounds = array<i64: 8, 18, 32>}, {transform_indices = @transform_1, window_bounds = array<i64: 8, 26, 32>}, {transform_indices = @transform_2, window_bounds = array<i64: 8, 64>}, {pipeline_mode = #tpu.pipeline_mode<synchronous>, transform_indices = @transform_3, window_bounds = array<i64: 96, 128>}, {pipeline_mode = #tpu.pipeline_mode<synchronous>, transform_indices = @transform_4, window_bounds = array<i64: 1, 128>}, {pipeline_mode = #tpu.pipeline_mode<synchronous>, transform_indices = @transform_5, window_bounds = array<i64: 128, 32>}, {pipeline_mode = #tpu.pipeline_mode<synchronous>, transform_indices = @transform_6, window_bounds = array<i64: 1, 32>}, {pipeline_mode = #tpu.pipeline_mode<synchronous>, transform_indices = @transform_7, window_bounds = array<i64: 1, 32>}, {pipeline_mode = #tpu.pipeline_mode<synchronous>, transform_indices = @transform_8, window_bounds = array<i64: 96, 128>}, {pipeline_mode = #tpu.pipeline_mode<synchronous>, transform_indices = @transform_9, window_bounds = array<i64: 1, 128>}, {pipeline_mode = #tpu.pipeline_mode<synchronous>, transform_indices = @transform_10, window_bounds = array<i64: 128, 32>}, {pipeline_mode = #tpu.pipeline_mode<synchronous>, transform_indices = @transform_11, window_bounds = array<i64: 1, 32>}, {pipeline_mode = #tpu.pipeline_mode<synchronous>, transform_indices = @transform_12, window_bounds = array<i64: 1, 32>}, {pipeline_mode = #tpu.pipeline_mode<synchronous>, transform_indices = @transform_13, window_bounds = array<i64: 64, 256>}, {pipeline_mode = #tpu.pipeline_mode<synchronous>, transform_indices = @transform_14, window_bounds = array<i64: 1, 256>}, {pipeline_mode = #tpu.pipeline_mode<synchronous>, transform_indices = @transform_15, window_bounds = array<i64: 128, 32>}, {pipeline_mode = #tpu.pipeline_mode<synchronous>, transform_indices = @transform_16, window_bounds = array<i64: 1, 32>}, {pipeline_mode = #tpu.pipeline_mode<synchronous>, transform_indices = @transform_17, window_bounds = array<i64: 1, 32>}, {transform_indices = @transform_18, window_bounds = array<i64: 8, 128>}]} {
    %c0 = arith.constant 0 : index
    %c0_0 = arith.constant 0 : index
    %c0_1 = arith.constant 0 : index
    %0 = vector.load %arg1[%c0, %c0_0, %c0_1] : memref<8x18x32xf32, #tpu.memory_space<vmem>>, vector<8x18x32xf32>
    %c0_2 = arith.constant 0 : index
    %c0_3 = arith.constant 0 : index
    %1 = vector.load %arg4[%c0_2, %c0_3] : memref<96x128xf32, #tpu.memory_space<vmem>>, vector<96x128xf32>
    %2 = vector.extract_strided_slice %0 {offsets = [0, 0, 0], sizes = [8, 16, 32], strides = [1, 1, 1]} : vector<8x18x32xf32> to vector<8x16x32xf32>
    %3 = vector.shape_cast %2 : vector<8x16x32xf32> to vector<128x32xf32>
    %4 = vector.extract_strided_slice %1 {offsets = [0, 0], sizes = [32, 128], strides = [1, 1]} : vector<96x128xf32> to vector<32x128xf32>
    %cst = arith.constant dense<0.000000e+00> : vector<128x128xf32>
    %5 = tpu.matmul %3, %4, %cst {dimension_numbers = #tpu.dot_dimension_numbers<[1], [0], [0], [1], [0, 0, 1, 1], [], []>} : vector<128x32xf32>, vector<32x128xf32>, vector<128x128xf32> -> vector<128x128xf32>
    %6 = vector.extract_strided_slice %0 {offsets = [0, 1, 0], sizes = [8, 16, 32], strides = [1, 1, 1]} : vector<8x18x32xf32> to vector<8x16x32xf32>
    %7 = vector.shape_cast %6 : vector<8x16x32xf32> to vector<128x32xf32>
    %8 = vector.extract_strided_slice %1 {offsets = [32, 0], sizes = [32, 128], strides = [1, 1]} : vector<96x128xf32> to vector<32x128xf32>
    %cst_4 = arith.constant dense<0.000000e+00> : vector<128x128xf32>
    %9 = tpu.matmul %7, %8, %cst_4 {dimension_numbers = #tpu.dot_dimension_numbers<[1], [0], [0], [1], [0, 0, 1, 1], [], []>} : vector<128x32xf32>, vector<32x128xf32>, vector<128x128xf32> -> vector<128x128xf32>
    %10 = arith.addf %5, %9 : vector<128x128xf32>
    %11 = vector.extract_strided_slice %0 {offsets = [0, 2, 0], sizes = [8, 16, 32], strides = [1, 1, 1]} : vector<8x18x32xf32> to vector<8x16x32xf32>
    %12 = vector.shape_cast %11 : vector<8x16x32xf32> to vector<128x32xf32>
    %13 = vector.extract_strided_slice %1 {offsets = [64, 0], sizes = [32, 128], strides = [1, 1]} : vector<96x128xf32> to vector<32x128xf32>
    %cst_5 = arith.constant dense<0.000000e+00> : vector<128x128xf32>
    %14 = tpu.matmul %12, %13, %cst_5 {dimension_numbers = #tpu.dot_dimension_numbers<[1], [0], [0], [1], [0, 0, 1, 1], [], []>} : vector<128x32xf32>, vector<32x128xf32>, vector<128x128xf32> -> vector<128x128xf32>
    %15 = arith.addf %10, %14 : vector<128x128xf32>
    %c0_6 = arith.constant 0 : index
    %c0_7 = arith.constant 0 : index
    %16 = vector.load %arg5[%c0_6, %c0_7] : memref<1x128xf32, #tpu.memory_space<vmem>>, vector<1x128xf32>
    %17 = vector.broadcast %16 : vector<1x128xf32> to vector<128x128xf32>
    %18 = arith.addf %15, %17 : vector<128x128xf32>
    %cst_8 = arith.constant 0.000000e+00 : f32
    %19 = vector.broadcast %cst_8 : f32 to vector<128x128xf32>
    %20 = arith.maximumf %18, %19 : vector<128x128xf32>
    %c0_9 = arith.constant 0 : index
    %c0_10 = arith.constant 0 : index
    %21 = vector.load %arg6[%c0_9, %c0_10] : memref<128x32xf32, #tpu.memory_space<vmem>>, vector<128x32xf32>
    %cst_11 = arith.constant dense<0.000000e+00> : vector<128x32xf32>
    %22 = tpu.matmul %20, %21, %cst_11 {dimension_numbers = #tpu.dot_dimension_numbers<[1], [0], [0], [1], [0, 0, 1, 1], [], []>} : vector<128x128xf32>, vector<128x32xf32>, vector<128x32xf32> -> vector<128x32xf32>
    %c0_12 = arith.constant 0 : index
    %c0_13 = arith.constant 0 : index
    %23 = vector.load %arg7[%c0_12, %c0_13] : memref<1x32xf32, #tpu.memory_space<vmem>>, vector<1x32xf32>
    %24 = vector.broadcast %23 : vector<1x32xf32> to vector<128x32xf32>
    %25 = arith.addf %22, %24 : vector<128x32xf32>
    %26 = math.tanh %25 : vector<128x32xf32>
    %27 = vector.shape_cast %26 : vector<128x32xf32> to vector<8x16x32xf32>
    %c0_14 = arith.constant 0 : index
    %c0_15 = arith.constant 0 : index
    %28 = vector.load %arg8[%c0_14, %c0_15] : memref<1x32xf32, #tpu.memory_space<vmem>>, vector<1x32xf32>
    %29 = vector.shape_cast %28 : vector<1x32xf32> to vector<1x1x32xf32>
    %30 = vector.broadcast %29 : vector<1x1x32xf32> to vector<8x16x32xf32>
    %31 = arith.mulf %27, %30 : vector<8x16x32xf32>
    %cst_16 = arith.constant dense<0.000000e+00> : vector<8x16xf32>
    %32 = vector.multi_reduction <add>, %31, %cst_16 [2] : vector<8x16x32xf32> to vector<8x16xf32>
    %cst_17 = arith.constant dense<0xFF800000> : vector<8xf32>
    %33 = vector.multi_reduction <maximumf>, %32, %cst_17 [1] : vector<8x16xf32> to vector<8xf32>
    %34 = vector.shape_cast %33 : vector<8xf32> to vector<8x1xf32>
    %35 = vector.broadcast %34 : vector<8x1xf32> to vector<8x16xf32>
    %36 = arith.subf %32, %35 : vector<8x16xf32>
    %37 = math.exp %36 : vector<8x16xf32>
    %cst_18 = arith.constant dense<0.000000e+00> : vector<8xf32>
    %38 = vector.multi_reduction <add>, %37, %cst_18 [1] : vector<8x16xf32> to vector<8xf32>
    %39 = vector.shape_cast %38 : vector<8xf32> to vector<8x1xf32>
    %40 = vector.broadcast %39 : vector<8x1xf32> to vector<8x16xf32>
    %41 = arith.divf %37, %40 : vector<8x16xf32>
    %42 = vector.shape_cast %20 : vector<128x128xf32> to vector<8x16x128xf32>
    %43 = vector.shape_cast %41 : vector<8x16xf32> to vector<8x16x1xf32>
    %44 = vector.broadcast %43 : vector<8x16x1xf32> to vector<8x16x128xf32>
    %45 = arith.mulf %44, %42 : vector<8x16x128xf32>
    %cst_19 = arith.constant dense<0.000000e+00> : vector<8x128xf32>
    %46 = vector.multi_reduction <add>, %45, %cst_19 [1] : vector<8x16x128xf32> to vector<8x128xf32>
    %c0_20 = arith.constant 0 : index
    %c0_21 = arith.constant 0 : index
    %c0_22 = arith.constant 0 : index
    %47 = vector.load %arg2[%c0_20, %c0_21, %c0_22] : memref<8x26x32xf32, #tpu.memory_space<vmem>>, vector<8x26x32xf32>
    %c0_23 = arith.constant 0 : index
    %c0_24 = arith.constant 0 : index
    %48 = vector.load %arg9[%c0_23, %c0_24] : memref<96x128xf32, #tpu.memory_space<vmem>>, vector<96x128xf32>
    %49 = vector.extract_strided_slice %47 {offsets = [0, 0, 0], sizes = [8, 24, 32], strides = [1, 1, 1]} : vector<8x26x32xf32> to vector<8x24x32xf32>
    %50 = vector.shape_cast %49 : vector<8x24x32xf32> to vector<192x32xf32>
    %51 = vector.extract_strided_slice %48 {offsets = [0, 0], sizes = [32, 128], strides = [1, 1]} : vector<96x128xf32> to vector<32x128xf32>
    %cst_25 = arith.constant dense<0.000000e+00> : vector<192x128xf32>
    %52 = tpu.matmul %50, %51, %cst_25 {dimension_numbers = #tpu.dot_dimension_numbers<[1], [0], [0], [1], [0, 0, 1, 1], [], []>} : vector<192x32xf32>, vector<32x128xf32>, vector<192x128xf32> -> vector<192x128xf32>
    %53 = vector.extract_strided_slice %47 {offsets = [0, 1, 0], sizes = [8, 24, 32], strides = [1, 1, 1]} : vector<8x26x32xf32> to vector<8x24x32xf32>
    %54 = vector.shape_cast %53 : vector<8x24x32xf32> to vector<192x32xf32>
    %55 = vector.extract_strided_slice %48 {offsets = [32, 0], sizes = [32, 128], strides = [1, 1]} : vector<96x128xf32> to vector<32x128xf32>
    %cst_26 = arith.constant dense<0.000000e+00> : vector<192x128xf32>
    %56 = tpu.matmul %54, %55, %cst_26 {dimension_numbers = #tpu.dot_dimension_numbers<[1], [0], [0], [1], [0, 0, 1, 1], [], []>} : vector<192x32xf32>, vector<32x128xf32>, vector<192x128xf32> -> vector<192x128xf32>
    %57 = arith.addf %52, %56 : vector<192x128xf32>
    %58 = vector.extract_strided_slice %47 {offsets = [0, 2, 0], sizes = [8, 24, 32], strides = [1, 1, 1]} : vector<8x26x32xf32> to vector<8x24x32xf32>
    %59 = vector.shape_cast %58 : vector<8x24x32xf32> to vector<192x32xf32>
    %60 = vector.extract_strided_slice %48 {offsets = [64, 0], sizes = [32, 128], strides = [1, 1]} : vector<96x128xf32> to vector<32x128xf32>
    %cst_27 = arith.constant dense<0.000000e+00> : vector<192x128xf32>
    %61 = tpu.matmul %59, %60, %cst_27 {dimension_numbers = #tpu.dot_dimension_numbers<[1], [0], [0], [1], [0, 0, 1, 1], [], []>} : vector<192x32xf32>, vector<32x128xf32>, vector<192x128xf32> -> vector<192x128xf32>
    %62 = arith.addf %57, %61 : vector<192x128xf32>
    %c0_28 = arith.constant 0 : index
    %c0_29 = arith.constant 0 : index
    %63 = vector.load %arg10[%c0_28, %c0_29] : memref<1x128xf32, #tpu.memory_space<vmem>>, vector<1x128xf32>
    %64 = vector.broadcast %63 : vector<1x128xf32> to vector<192x128xf32>
    %65 = arith.addf %62, %64 : vector<192x128xf32>
    %cst_30 = arith.constant 0.000000e+00 : f32
    %66 = vector.broadcast %cst_30 : f32 to vector<192x128xf32>
    %67 = arith.maximumf %65, %66 : vector<192x128xf32>
    %c0_31 = arith.constant 0 : index
    %c0_32 = arith.constant 0 : index
    %68 = vector.load %arg11[%c0_31, %c0_32] : memref<128x32xf32, #tpu.memory_space<vmem>>, vector<128x32xf32>
    %cst_33 = arith.constant dense<0.000000e+00> : vector<192x32xf32>
    %69 = tpu.matmul %67, %68, %cst_33 {dimension_numbers = #tpu.dot_dimension_numbers<[1], [0], [0], [1], [0, 0, 1, 1], [], []>} : vector<192x128xf32>, vector<128x32xf32>, vector<192x32xf32> -> vector<192x32xf32>
    %c0_34 = arith.constant 0 : index
    %c0_35 = arith.constant 0 : index
    %70 = vector.load %arg12[%c0_34, %c0_35] : memref<1x32xf32, #tpu.memory_space<vmem>>, vector<1x32xf32>
    %71 = vector.broadcast %70 : vector<1x32xf32> to vector<192x32xf32>
    %72 = arith.addf %69, %71 : vector<192x32xf32>
    %73 = math.tanh %72 : vector<192x32xf32>
    %74 = vector.shape_cast %73 : vector<192x32xf32> to vector<8x24x32xf32>
    %c0_36 = arith.constant 0 : index
    %c0_37 = arith.constant 0 : index
    %75 = vector.load %arg13[%c0_36, %c0_37] : memref<1x32xf32, #tpu.memory_space<vmem>>, vector<1x32xf32>
    %76 = vector.shape_cast %75 : vector<1x32xf32> to vector<1x1x32xf32>
    %77 = vector.broadcast %76 : vector<1x1x32xf32> to vector<8x24x32xf32>
    %78 = arith.mulf %74, %77 : vector<8x24x32xf32>
    %cst_38 = arith.constant dense<0.000000e+00> : vector<8x24xf32>
    %79 = vector.multi_reduction <add>, %78, %cst_38 [2] : vector<8x24x32xf32> to vector<8x24xf32>
    %cst_39 = arith.constant dense<0xFF800000> : vector<8xf32>
    %80 = vector.multi_reduction <maximumf>, %79, %cst_39 [1] : vector<8x24xf32> to vector<8xf32>
    %81 = vector.shape_cast %80 : vector<8xf32> to vector<8x1xf32>
    %82 = vector.broadcast %81 : vector<8x1xf32> to vector<8x24xf32>
    %83 = arith.subf %79, %82 : vector<8x24xf32>
    %84 = math.exp %83 : vector<8x24xf32>
    %cst_40 = arith.constant dense<0.000000e+00> : vector<8xf32>
    %85 = vector.multi_reduction <add>, %84, %cst_40 [1] : vector<8x24xf32> to vector<8xf32>
    %86 = vector.shape_cast %85 : vector<8xf32> to vector<8x1xf32>
    %87 = vector.broadcast %86 : vector<8x1xf32> to vector<8x24xf32>
    %88 = arith.divf %84, %87 : vector<8x24xf32>
    %89 = vector.shape_cast %67 : vector<192x128xf32> to vector<8x24x128xf32>
    %90 = vector.shape_cast %88 : vector<8x24xf32> to vector<8x24x1xf32>
    %91 = vector.broadcast %90 : vector<8x24x1xf32> to vector<8x24x128xf32>
    %92 = arith.mulf %91, %89 : vector<8x24x128xf32>
    %cst_41 = arith.constant dense<0.000000e+00> : vector<8x128xf32>
    %93 = vector.multi_reduction <add>, %92, %cst_41 [1] : vector<8x24x128xf32> to vector<8x128xf32>
    %c0_42 = arith.constant 0 : index
    %c0_43 = arith.constant 0 : index
    %94 = vector.load %arg3[%c0_42, %c0_43] : memref<8x64xf32, #tpu.memory_space<vmem>>, vector<8x64xf32>
    %c0_44 = arith.constant 0 : index
    %c0_45 = arith.constant 0 : index
    %95 = vector.load %arg14[%c0_44, %c0_45] : memref<64x256xf32, #tpu.memory_space<vmem>>, vector<64x256xf32>
    %cst_46 = arith.constant dense<0.000000e+00> : vector<8x256xf32>
    %96 = tpu.matmul %94, %95, %cst_46 {dimension_numbers = #tpu.dot_dimension_numbers<[1], [0], [0], [1], [0, 0, 1, 1], [], []>} : vector<8x64xf32>, vector<64x256xf32>, vector<8x256xf32> -> vector<8x256xf32>
    %c0_47 = arith.constant 0 : index
    %c0_48 = arith.constant 0 : index
    %97 = vector.load %arg15[%c0_47, %c0_48] : memref<1x256xf32, #tpu.memory_space<vmem>>, vector<1x256xf32>
    %98 = vector.broadcast %97 : vector<1x256xf32> to vector<8x256xf32>
    %99 = arith.addf %96, %98 : vector<8x256xf32>
    %cst_49 = arith.constant 0.000000e+00 : f32
    %100 = vector.broadcast %cst_49 : f32 to vector<8x256xf32>
    %101 = arith.maximumf %99, %100 : vector<8x256xf32>
    %102 = vector.extract_strided_slice %101 {offsets = [0, 0], sizes = [8, 128], strides = [1, 1]} : vector<8x256xf32> to vector<8x128xf32>
    %103 = vector.extract_strided_slice %101 {offsets = [0, 128], sizes = [8, 128], strides = [1, 1]} : vector<8x256xf32> to vector<8x128xf32>
    %104 = tpu.concatenate %46, %93, %102, %103 in 0 : vector<8x128xf32>, vector<8x128xf32>, vector<8x128xf32>, vector<8x128xf32> -> vector<32x128xf32>
    %c0_50 = arith.constant 0 : index
    %c0_51 = arith.constant 0 : index
    %105 = vector.load %arg16[%c0_50, %c0_51] : memref<128x32xf32, #tpu.memory_space<vmem>>, vector<128x32xf32>
    %cst_52 = arith.constant dense<0.000000e+00> : vector<32x32xf32>
    %106 = tpu.matmul %104, %105, %cst_52 {dimension_numbers = #tpu.dot_dimension_numbers<[1], [0], [0], [1], [0, 0, 1, 1], [], []>} : vector<32x128xf32>, vector<128x32xf32>, vector<32x32xf32> -> vector<32x32xf32>
    %c0_53 = arith.constant 0 : index
    %c0_54 = arith.constant 0 : index
    %107 = vector.load %arg17[%c0_53, %c0_54] : memref<1x32xf32, #tpu.memory_space<vmem>>, vector<1x32xf32>
    %108 = vector.broadcast %107 : vector<1x32xf32> to vector<32x32xf32>
    %109 = arith.addf %106, %108 : vector<32x32xf32>
    %110 = math.tanh %109 : vector<32x32xf32>
    %c0_55 = arith.constant 0 : index
    %c0_56 = arith.constant 0 : index
    %111 = vector.load %arg18[%c0_55, %c0_56] : memref<1x32xf32, #tpu.memory_space<vmem>>, vector<1x32xf32>
    %112 = vector.broadcast %111 : vector<1x32xf32> to vector<32x32xf32>
    %113 = arith.mulf %110, %112 : vector<32x32xf32>
    %cst_57 = arith.constant dense<0.000000e+00> : vector<32xf32>
    %114 = vector.multi_reduction <add>, %113, %cst_57 [1] : vector<32x32xf32> to vector<32xf32>
    %115 = vector.shape_cast %114 : vector<32xf32> to vector<32x1xf32>
    %116 = vector.extract_strided_slice %115 {offsets = [0, 0], sizes = [8, 1], strides = [1, 1]} : vector<32x1xf32> to vector<8x1xf32>
    %117 = vector.extract_strided_slice %115 {offsets = [8, 0], sizes = [8, 1], strides = [1, 1]} : vector<32x1xf32> to vector<8x1xf32>
    %118 = vector.extract_strided_slice %115 {offsets = [16, 0], sizes = [8, 1], strides = [1, 1]} : vector<32x1xf32> to vector<8x1xf32>
    %119 = vector.extract_strided_slice %115 {offsets = [24, 0], sizes = [8, 1], strides = [1, 1]} : vector<32x1xf32> to vector<8x1xf32>
    %120 = arith.maximumf %116, %117 : vector<8x1xf32>
    %121 = arith.maximumf %118, %119 : vector<8x1xf32>
    %122 = arith.maximumf %120, %121 : vector<8x1xf32>
    %123 = arith.subf %116, %122 : vector<8x1xf32>
    %124 = math.exp %123 : vector<8x1xf32>
    %125 = arith.subf %117, %122 : vector<8x1xf32>
    %126 = math.exp %125 : vector<8x1xf32>
    %127 = arith.subf %118, %122 : vector<8x1xf32>
    %128 = math.exp %127 : vector<8x1xf32>
    %129 = arith.subf %119, %122 : vector<8x1xf32>
    %130 = math.exp %129 : vector<8x1xf32>
    %131 = arith.addf %124, %126 : vector<8x1xf32>
    %132 = arith.addf %131, %128 : vector<8x1xf32>
    %133 = arith.addf %132, %130 : vector<8x1xf32>
    %134 = vector.broadcast %124 : vector<8x1xf32> to vector<8x128xf32>
    %135 = arith.mulf %134, %46 : vector<8x128xf32>
    %136 = vector.broadcast %126 : vector<8x1xf32> to vector<8x128xf32>
    %137 = arith.mulf %136, %93 : vector<8x128xf32>
    %138 = arith.addf %135, %137 : vector<8x128xf32>
    %139 = vector.broadcast %128 : vector<8x1xf32> to vector<8x128xf32>
    %140 = arith.mulf %139, %102 : vector<8x128xf32>
    %141 = arith.addf %138, %140 : vector<8x128xf32>
    %142 = vector.broadcast %130 : vector<8x1xf32> to vector<8x128xf32>
    %143 = arith.mulf %142, %103 : vector<8x128xf32>
    %144 = arith.addf %141, %143 : vector<8x128xf32>
    %145 = vector.broadcast %133 : vector<8x1xf32> to vector<8x128xf32>
    %146 = arith.divf %144, %145 : vector<8x128xf32>
    %c0_58 = arith.constant 0 : index
    %c0_59 = arith.constant 0 : index
    %147 = vector.load %arg19[%c0_58, %c0_59] : memref<8x128xf32, #tpu.memory_space<vmem>>, vector<8x128xf32>
    tpu.vector_store %arg19[%c0_58, %c0_59], %146 {strides = array<i32>} : memref<8x128xf32, #tpu.memory_space<vmem>>, vector<8x128xf32>,
    return
  }
  func.func @transform_0(%arg0: i32) -> (i32, i32, i32) {
    %c0_i32 = arith.constant 0 : i32
    %c0_i32_0 = arith.constant 0 : i32
    %c0_i32_1 = arith.constant 0 : i32
    return %arg0, %c0_i32, %c0_i32_0 : i32, i32, i32
  }
  func.func @transform_1(%arg0: i32) -> (i32, i32, i32) {
    %c0_i32 = arith.constant 0 : i32
    %c0_i32_0 = arith.constant 0 : i32
    %c0_i32_1 = arith.constant 0 : i32
    return %arg0, %c0_i32, %c0_i32_0 : i32, i32, i32
  }
  func.func @transform_2(%arg0: i32) -> (i32, i32) {
    %c0_i32 = arith.constant 0 : i32
    %c0_i32_0 = arith.constant 0 : i32
    return %arg0, %c0_i32 : i32, i32
  }
  func.func @transform_3(%arg0: i32) -> (i32, i32) {
    %c0_i32 = arith.constant 0 : i32
    %c0_i32_0 = arith.constant 0 : i32
    %c0_i32_1 = arith.constant 0 : i32
    return %c0_i32, %c0_i32_0 : i32, i32
  }
  func.func @transform_4(%arg0: i32) -> (i32, i32) {
    %c0_i32 = arith.constant 0 : i32
    %c0_i32_0 = arith.constant 0 : i32
    %c0_i32_1 = arith.constant 0 : i32
    return %c0_i32, %c0_i32_0 : i32, i32
  }
  func.func @transform_5(%arg0: i32) -> (i32, i32) {
    %c0_i32 = arith.constant 0 : i32
    %c0_i32_0 = arith.constant 0 : i32
    %c0_i32_1 = arith.constant 0 : i32
    return %c0_i32, %c0_i32_0 : i32, i32
  }
  func.func @transform_6(%arg0: i32) -> (i32, i32) {
    %c0_i32 = arith.constant 0 : i32
    %c0_i32_0 = arith.constant 0 : i32
    %c0_i32_1 = arith.constant 0 : i32
    return %c0_i32, %c0_i32_0 : i32, i32
  }
  func.func @transform_7(%arg0: i32) -> (i32, i32) {
    %c0_i32 = arith.constant 0 : i32
    %c0_i32_0 = arith.constant 0 : i32
    %c0_i32_1 = arith.constant 0 : i32
    return %c0_i32, %c0_i32_0 : i32, i32
  }
  func.func @transform_8(%arg0: i32) -> (i32, i32) {
    %c0_i32 = arith.constant 0 : i32
    %c0_i32_0 = arith.constant 0 : i32
    %c0_i32_1 = arith.constant 0 : i32
    return %c0_i32, %c0_i32_0 : i32, i32
  }
  func.func @transform_9(%arg0: i32) -> (i32, i32) {
    %c0_i32 = arith.constant 0 : i32
    %c0_i32_0 = arith.constant 0 : i32
    %c0_i32_1 = arith.constant 0 : i32
    return %c0_i32, %c0_i32_0 : i32, i32
  }
  func.func @transform_10(%arg0: i32) -> (i32, i32) {
    %c0_i32 = arith.constant 0 : i32
    %c0_i32_0 = arith.constant 0 : i32
    %c0_i32_1 = arith.constant 0 : i32
    return %c0_i32, %c0_i32_0 : i32, i32
  }
  func.func @transform_11(%arg0: i32) -> (i32, i32) {
    %c0_i32 = arith.constant 0 : i32
    %c0_i32_0 = arith.constant 0 : i32
    %c0_i32_1 = arith.constant 0 : i32
    return %c0_i32, %c0_i32_0 : i32, i32
  }
  func.func @transform_12(%arg0: i32) -> (i32, i32) {
    %c0_i32 = arith.constant 0 : i32
    %c0_i32_0 = arith.constant 0 : i32
    %c0_i32_1 = arith.constant 0 : i32
    return %c0_i32, %c0_i32_0 : i32, i32
  }
  func.func @transform_13(%arg0: i32) -> (i32, i32) {
    %c0_i32 = arith.constant 0 : i32
    %c0_i32_0 = arith.constant 0 : i32
    %c0_i32_1 = arith.constant 0 : i32
    return %c0_i32, %c0_i32_0 : i32, i32
  }
  func.func @transform_14(%arg0: i32) -> (i32, i32) {
    %c0_i32 = arith.constant 0 : i32
    %c0_i32_0 = arith.constant 0 : i32
    %c0_i32_1 = arith.constant 0 : i32
    return %c0_i32, %c0_i32_0 : i32, i32
  }
  func.func @transform_15(%arg0: i32) -> (i32, i32) {
    %c0_i32 = arith.constant 0 : i32
    %c0_i32_0 = arith.constant 0 : i32
    %c0_i32_1 = arith.constant 0 : i32
    return %c0_i32, %c0_i32_0 : i32, i32
  }
  func.func @transform_16(%arg0: i32) -> (i32, i32) {
    %c0_i32 = arith.constant 0 : i32
    %c0_i32_0 = arith.constant 0 : i32
    %c0_i32_1 = arith.constant 0 : i32
    return %c0_i32, %c0_i32_0 : i32, i32
  }
  func.func @transform_17(%arg0: i32) -> (i32, i32) {
    %c0_i32 = arith.constant 0 : i32
    %c0_i32_0 = arith.constant 0 : i32
    %c0_i32_1 = arith.constant 0 : i32
    return %c0_i32, %c0_i32_0 : i32, i32
  }
  func.func @transform_18(%arg0: i32) -> (i32, i32) {
    %c0_i32 = arith.constant 0 : i32
    %c0_i32_0 = arith.constant 0 : i32
    return %arg0, %c0_i32 : i32, i32
  }
}

</mosaic_0001>

<bundles_post_ra>
// kernel: tpu_custom_call.1
= control target key start
LH: loop header
LB: loop body
LE: loop exit
PB: predicated region body
PF: predicated region fallthrough
CT: control target
= control target key end

     0   :  { %s5561_s0 = inlined_call_operand.vmem [shape: f32[8,18,32], index: 0, kind: input, shape index: {}]   ;;  %s5562_s1 = inlined_call_operand.vmem [shape: f32[8,26,32], index: 1, kind: input, shape index: {}]   ;;  %s5563_s2 = inlined_call_operand.vmem [shape: f32[8,64], index: 2, kind: input, shape index: {}]   ;;  %s5564_s3 = inlined_call_operand.vmem [shape: f32[96,128], index: 3, kind: input, shape index: {}]   ;;  %s5565_s4 = inlined_call_operand.vmem [shape: f32[1,128], index: 4, kind: input, shape index: {}]   ;;  %s5566_s5 = inlined_call_operand.vmem [shape: f32[128,32], index: 5, kind: input, shape index: {}]   ;;  %s5567_s6 = inlined_call_operand.vmem [shape: f32[1,32], index: 6, kind: input, shape index: {}]   ;;  %s5568_s7 = inlined_call_operand.vmem [shape: f32[1,32], index: 7, kind: input, shape index: {}]   ;;  %s5569_s8 = inlined_call_operand.vmem [shape: f32[96,128], index: 8, kind: input, shape index: {}]   ;;  %s5570_s9 = inlined_call_operand.vmem [shape: f32[1,128], index: 9, kind: input, shape index: {}]   ;;  %s5571_s10 = inlined_call_operand.vmem [shape: f32[128,32], index: 10, kind: input, shape index: {}]   ;;  %s5572_s11 = inlined_call_operand.vmem [shape: f32[1,32], index: 11, kind: input, shape index: {}]   ;;  %s5573_s12 = inlined_call_operand.vmem [shape: f32[1,32], index: 12, kind: input, shape index: {}]   ;;  %s5574_s13 = inlined_call_operand.vmem [shape: f32[64,256], index: 13, kind: input, shape index: {}]   ;;  %s5575_s14 = inlined_call_operand.vmem [shape: f32[1,256], index: 14, kind: input, shape index: {}]   ;;  %s5576_s15 = inlined_call_operand.vmem [shape: f32[128,32], index: 15, kind: input, shape index: {}]   ;;  %s5577_s16 = inlined_call_operand.vmem [shape: f32[1,32], index: 16, kind: input, shape index: {}]   ;;  %s5578_s17 = inlined_call_operand.vmem [shape: f32[1,32], index: 17, kind: input, shape index: {}]   ;;  %s5579_s18 = inlined_call_operand.hbm [shape: f32[8,128], index: 18, kind: output, shape index: {}]  }
   0x1   :  { %5680 = sst [smem:[#allocation57_spill]] %s5561_s0 }
   0x2   :  { %5681 = sst [smem:[#allocation58_spill]] %s5562_s1 }
   0x3   :  { %5682 = sst [smem:[#allocation59_spill]] %s5563_s2 }
   0x4   :  { %v91_v0 = vld [vmem:[%s5564_s3 + $0x38] sm:$0xff]  ;;  %v90_v2 = vld [vmem:[%s5564_s3 + $0x30] sm:$0xff]  ;;  %v89_v4 = vld [vmem:[%s5564_s3 + $0x28] sm:$0xff]  ;;  %s5683_s30 = sld [smem:[#allocation57_spill]]  ;;  %vm120_vm0 = vcmask 1046528   ;;  %vm5670_vm1 = vcmask 261120  }
   0x5   :  { %v87_v1 = vld [vmem:[%s5564_s3 + $0x18] sm:$0xff]  ;;  %206 = vmatpush.msra.mxu0 %v91_v0  ;;  %v86_v3 = vld [vmem:[%s5564_s3 + $0x10] sm:$0xff]  ;;  %v85_v5 = vld [vmem:[%s5564_s3 + $0x8] sm:$0xff]  ;;  %vm356_vm2 = vcmask 1045504  }
   0x6   :  { %303 = vmatpush.msra.mxu1 %v87_v1  ;;  %v95_v6 = vld [vmem:[%s5564_s3 + $0x58] sm:$0xff]  ;;  %v94_v7 = vld [vmem:[%s5564_s3 + $0x50] sm:$0xff]  ;;  %v88_v10 = vld [vmem:[%s5564_s3 + $0x20] sm:$0xff] }
   0x7   :  { %207 = vmatpush.msra.mxu0 %v90_v2  ;;  %3175 = vmatpush.msra.mxu2 %v95_v6  ;;  %v84_v11 = vld [vmem:[%s5564_s3] sm:$0xff]  ;;  %v93_v18 = vld [vmem:[%s5564_s3 + $0x48] sm:$0xff] }
   0x8   :  { %304 = vmatpush.msra.mxu1 %v86_v3  ;;  %v92_v19 = vld [vmem:[%s5564_s3 + $0x40] sm:$0xff] }
   0x9   :  { %208 = vmatpush.msra.mxu0 %v89_v4  ;;  %3176 = vmatpush.msra.mxu2 %v94_v7 }
   0xa   :  { %v3552_v8 = vld [vmem:[%s5683_s30] sm:$0xff]  ;;  %v3557_v9 = vld [vmem:[%s5683_s30 + $0x8] sm:$0xff]  ;;  %v62_v14 = vld [vmem:[%s5683_s30 + $0x10] sm:$0x3]  ;;  %305 = vmatpush.msra.mxu1 %v85_v5 }
   0xb   :  { %v121_v12 = vrot.slane %v3552_v8, 1  ;;  %v122_v13 = vrot.slane %v3557_v9, 1  ;;  %v358_v15 = vrot.slane %v3557_v9, 2  ;;  %v360_v16 = vrot.slane %v62_v14, 2  ;;  %209 = vmatpush.msra.mxu0 %v88_v10  ;;  %3177 = vmatpush.msra.mxu2 %v93_v18  ;;  %v63_v22 = vld [vmem:[%s5683_s30 + $0x18] sm:$0xff]  ;;  %v64_v23 = vld [vmem:[%s5683_s30 + $0x20] sm:$0xff] }
   0xc   :  { %306 = vmatpush.msra.mxu1 %v84_v11  ;;  %v124_v21 = vrot.slane %v62_v14, 1 }
   0xd   :  { %v123_v17 = vsel %vm120_vm0, %v121_v12, %v122_v13  ;;  %3069 = vmatmul.msk.f32.vlgmr.msra.gmra.mxu1 %vm5670_vm1, %v3552_v8  ;;  %441 = vmatpush.msrb.mxu0 %v95_v6  ;;  %v361_v20 = vsel %vm356_vm2, %v358_v15, %v360_v16 }
   0xe   :  { %3053 = vmatmul.msk.f32.vlgmr.msra.gmra.mxu0 %vm5670_vm1, %v123_v17  ;;  %3178 = vmatpush.msra.mxu2 %v92_v19 }
   0xf   :  { %442 = vmatpush.msrb.mxu0 %v94_v7 }
  0x10   :  { %23 = vsyncpa [#allocation3], 0  ;;  %3086 = vmatmul.msk.f32.vlgmr.msra.gmra.mxu2 %vm5670_vm1, %v361_v20  ;;  %v125_v24 = vsel %vm120_vm0, %v122_v13, %v124_v21  ;;  %v362_v25 = vrot.slane %v63_v22, 2  ;;  %v363_v26 = vrot.slane %v64_v23, 2  ;;  %v126_v28 = vrot.slane %v63_v22, 1  ;;  %v66_v35 = vld [vmem:[%s5683_s30 + $0x30] sm:$0xff] }
  0x11   :  { %443 = vmatpush.msrb.mxu0 %v93_v18  ;;  %v127_v29 = vrot.slane %v64_v23, 1  ;;  %v65_v30 = vld [vmem:[%s5683_s30 + $0x28] sm:$0x3]  ;;  %v67_v36 = vld [vmem:[%s5683_s30 + $0x38] sm:$0xff]  ;;  %v367_v38 = vrot.slane %v66_v35, 2  ;;  %v131_v41 = vrot.slane %v66_v35, 1 }
  0x12   :  { %v364_v27 = vsel %vm356_vm2, %v362_v25, %v363_v26  ;;  %v365_v32 = vrot.slane %v65_v30, 2  ;;  %v129_v34 = vrot.slane %v65_v30, 1  ;;  %v368_v39 = vrot.slane %v67_v36, 2  ;;  %v68_v43 = vld [vmem:[%s5683_s30 + $0x40] sm:$0x3]  ;;  %v69_v48 = vld [vmem:[%s5683_s30 + $0x48] sm:$0xff] }
  0x13   :  { %444 = vmatpush.msrb.mxu0 %v92_v19  ;;  %v128_v31 = vsel %vm120_vm0, %v126_v28, %v127_v29  ;;  %v132_v42 = vrot.slane %v67_v36, 1  ;;  %v370_v45 = vrot.slane %v68_v43, 2  ;;  %v134_v47 = vrot.slane %v68_v43, 1  ;;  %v70_v49 = vld [vmem:[%s5683_s30 + $0x50] sm:$0xff]  ;;  %v71_v56 = vld [vmem:[%s5683_s30 + $0x58] sm:$0x3] }
  0x14   :  { %v366_v33 = vsel %vm356_vm2, %v363_v26, %v365_v32  ;;  %v130_v37 = vsel %vm120_vm0, %v127_v29, %v129_v34  ;;  %v369_v40 = vsel %vm356_vm2, %v367_v38, %v368_v39  ;;  %v372_v51 = vrot.slane %v69_v48, 2  ;;  %v72_v61 = vld [vmem:[%s5683_s30 + $0x60] sm:$0xff]  ;;  %v73_v62 = vld [vmem:[%s5683_s30 + $0x68] sm:$0xff]  ;;  %v74_v5 = vld [vmem:[%s5683_s30 + $0x70] sm:$0x3]  ;;  %s5684_s3 = sld [smem:[#allocation58_spill]] }
  0x15   :  { %3070 = vmatmul.msk.f32.gmra.mxu1 %vm5670_vm1, %v3557_v9  ;;  %v133_v44 = vsel %vm120_vm0, %v131_v41, %v132_v42  ;;  %v371_v46 = vsel %vm356_vm2, %v368_v39, %v370_v45  ;;  %v135_v50 = vsel %vm120_vm0, %v132_v42, %v134_v47  ;;  %v373_v52 = vrot.slane %v70_v49, 2  ;;  %v75_v12 = vld [vmem:[%s5683_s30 + $0x78] sm:$0xff]  ;;  %v76_v13 = vld [vmem:[%s5683_s30 + $0x80] sm:$0xff]  ;;  %v77_v21 = vld [vmem:[%s5683_s30 + $0x88] sm:$0x3]  ;;  %s5784_s24 = sld [smem:[#allocation59_spill]] }
  0x16   :  { %3054 = vmatmul.msk.f32.gmra.mxu0 %vm5670_vm1, %v125_v24  ;;  %v136_v54 = vrot.slane %v69_v48, 1  ;;  %v137_v55 = vrot.slane %v70_v49, 1  ;;  %v375_v58 = vrot.slane %v71_v56, 2  ;;  %v139_v60 = vrot.slane %v71_v56, 1  ;;  %v78_v26 = vld [vmem:[%s5683_s30 + $0x90] sm:$0xff]  ;;  %v1282_v38 = vld [vmem:[%s5569_s8 + $0x58] sm:$0xff] }
  0x17   :  { %v374_v53 = vsel %vm356_vm2, %v372_v51, %v373_v52  ;;  %v377_v0 = vrot.slane %v72_v61, 2  ;;  %v378_v1 = vrot.slane %v73_v62, 2  ;;  %v141_v3 = vrot.slane %v72_v61, 1  ;;  %v80_v34 = vld [vmem:[%s5683_s30 + $0xa0] sm:$0x3]  ;;  %1761 = vmatpush.msrb.mxu2 %v1282_v38  ;;  %v81_v41 = vld [vmem:[%s5683_s30 + $0xa8] sm:$0xff] }
  0x18   :  { %3087 = vmatmul.msk.f32.gmra.mxu2 %vm5670_vm1, %v364_v27  ;;  %v138_v57 = vsel %vm120_vm0, %v136_v54, %v137_v55  ;;  %v376_v59 = vsel %vm356_vm2, %v373_v52, %v375_v58  ;;  %v140_v63 = vsel %vm120_vm0, %v137_v55, %v139_v60  ;;  %v142_v4 = vrot.slane %v73_v62, 1  ;;  %v79_v27 = vld [vmem:[%s5683_s30 + $0x98] sm:$0xff]  ;;  %v82_v42 = vld [vmem:[%s5683_s30 + $0xb0] sm:$0xff] }
  0x19   :  { %v379_v2 = vsel %vm356_vm2, %v377_v0, %v378_v1  ;;  %v380_v7 = vrot.slane %v74_v5, 2  ;;  %v144_v11 = vrot.slane %v74_v5, 1  ;;  %v382_v16 = vrot.slane %v75_v12, 2  ;;  %v1273_v58 = vld [vmem:[%s5569_s8 + $0x10] sm:$0xff]  ;;  %v1271_v5 = vld [vmem:[%s5569_s8] sm:$0xff] }
  0x1a   :  { %v143_v6 = vsel %vm120_vm0, %v141_v3, %v142_v4  ;;  %v383_v17 = vrot.slane %v76_v13, 2  ;;  %v146_v19 = vrot.slane %v75_v12, 1  ;;  %v147_v20 = vrot.slane %v76_v13, 1 }
  0x1b   :  { %v381_v10 = vsel %vm356_vm2, %v378_v1, %v380_v7  ;;  %v145_v14 = vsel %vm120_vm0, %v142_v4, %v144_v11  ;;  %v149_v25 = vrot.slane %v77_v21, 1  ;;  %v387_v29 = vrot.slane %v78_v26, 2  ;;  %v1279_v4 = vld [vmem:[%s5569_s8 + $0x40] sm:$0xff]  ;;  %v561_v7 = vld [vmem:[%s5566_s5 + $0x78] sm:$0xff]  ;;  %v560_v11 = vld [vmem:[%s5566_s5 + $0x70] sm:$0xff] }
  0x1c   :  { %v384_v18 = vsel %vm356_vm2, %v382_v16, %v383_v17  ;;  %v388_v30 = vrot.slane %v79_v27, 2  ;;  %v151_v32 = vrot.slane %v78_v26, 1  ;;  %v393_v45 = vrot.slane %v82_v42, 2  ;;  %566 = vmatpush.msra.mxu3 %v561_v7  ;;  %v1244_v7 = vld [vmem:[%s5684_s3 + $0x28] sm:$0xff] }
  0x1d   :  { %3071 = vmatmul.msk.f32.gmra.mxu1 %vm5670_vm1, %v63_v22  ;;  %v148_v22 = vsel %vm120_vm0, %v146_v19, %v147_v20  ;;  %v150_v28 = vsel %vm120_vm0, %v147_v20, %v149_v25  ;;  %v156_v47 = vrot.slane %v81_v41, 1  ;;  %v357_v55 = vrot.slane %v3552_v8, 2  ;;  %v556_v19 = vld [vmem:[%s5566_s5 + $0x50] sm:$0xff]  ;;  %v555_v20 = vld [vmem:[%s5566_s5 + $0x48] sm:$0xff] }
  0x1e   :  { %3055 = vmatmul.msk.f32.gmra.mxu0 %vm5670_vm1, %v128_v31  ;;  %v389_v31 = vsel %vm356_vm2, %v387_v29, %v388_v30  ;;  %567 = vmatpush.msra.mxu3 %v560_v11  ;;  %v1240_v29 = vld [vmem:[%s5684_s3 + $0x8] sm:$0xff]  ;;  %vm736_vm3 = vcmask 130112   ;;  %vm759_vm4 = vcmask 1041409   ;;  %vm761_vm5 = vcmask 1042434  }
  0x1f   :  { %v1316_v38 = vrot.slane %v1240_v29, 1  ;;  %vm763_vm6 = vcmask 1043459   ;;  %vm765_vm7 = vcmask 1044484   ;;  %vm767_vm8 = vcmask 1045509  }
  0x20   :  { %3088 = vmatmul.msk.f32.gmra.mxu2 %vm5670_vm1, %v366_v33  ;;  %v152_v33 = vrot.slane %v79_v27, 1  ;;  %vm5677_vm9 = vcmask 1046534   ;;  %vm5676_vm10 = vcmask 1047559   ;;  %vm774_vm11 = vcmask 130048  }
  0x21   :  { %vm2176_vm12 = vcmask 195712   ;;  %vm5674_vm13 = vcmask 195584  }
  0x25   :  { %3072 = vmatmul.msk.f32.gmra.mxu1 %vm5670_vm1, %v64_v23  ;;  %v385_v23 = vrot.slane %v77_v21, 2  ;;  %v554_v21 = vld [vmem:[%s5566_s5 + $0x40] sm:$0xff] }
  0x26   :  { %3056 = vmatmul.msk.f32.gmra.mxu0 %vm5670_vm1, %v130_v37  ;;  %v1274_v37 = vld [vmem:[%s5569_s8 + $0x18] sm:$0xff] }
  0x27   :  { %v386_v24 = vsel %vm356_vm2, %v383_v17, %v385_v23  ;;  %1568 = vmatpush.msrb.mxu1 %v1274_v37  ;;  %v557_v17 = vld [vmem:[%s5566_s5 + $0x58] sm:$0xff] }
  0x28   :  { %3089 = vmatmul.msk.f32.gmra.mxu2 %vm5670_vm1, %v369_v40  ;;  %v154_v40 = vrot.slane %v80_v34, 1  ;;  %v553_v23 = vld [vmem:[%s5566_s5 + $0x38] sm:$0xff] }
  0x29   :  { %1569 = vmatpush.msrb.mxu1 %v1273_v58 }
  0x2a   :  { %v155_v43 = vsel %vm120_vm0, %v152_v33, %v154_v40  ;;  %v1275_v40 = vld [vmem:[%s5569_s8 + $0x20] sm:$0xff] }
  0x2d   :  { %3073 = vmatmul.msk.f32.gmra.mxu1 %vm5670_vm1, %v66_v35  ;;  %v153_v35 = vsel %vm120_vm0, %v151_v32, %v152_v33  ;;  %v1277_v32 = vld [vmem:[%s5569_s8 + $0x30] sm:$0xff]  ;;  %v1646_v33 = vrot.slane %v1240_v29, 2 }
  0x2e   :  { %3057 = vmatmul.msk.f32.gmra.mxu0 %vm5670_vm1, %v133_v44  ;;  %v392_v44 = vrot.slane %v81_v41, 2 }
  0x30   :  { %3090 = vmatmul.msk.f32.gmra.mxu2 %vm5670_vm1, %v371_v46  ;;  %v394_v46 = vsel %vm356_vm2, %v392_v44, %v393_v45  ;;  %v548_v44 = vld [vmem:[%s5566_s5 + $0x10] sm:$0xff] }
  0x35   :  { %3074 = vmatmul.msk.f32.gmra.mxu1 %vm5670_vm1, %v67_v36  ;;  %v390_v36 = vrot.slane %v80_v34, 2  ;;  %v550_v34 = vld [vmem:[%s5566_s5 + $0x20] sm:$0xff] }
  0x36   :  { %3058 = vmatmul.msk.f32.gmra.mxu0 %vm5670_vm1, %v135_v50 }
  0x37   :  { %v391_v39 = vsel %vm356_vm2, %v388_v30, %v390_v36 }
  0x38   :  { %3091 = vmatmul.msk.f32.gmra.mxu2 %vm5670_vm1, %v374_v53 }
  0x3d   :  { %3075 = vmatmul.msk.f32.gmra.mxu1 %vm5670_vm1, %v69_v48  ;;  %v157_v48 = vrot.slane %v82_v42, 1 }
  0x3e   :  { %3059 = vmatmul.msk.f32.gmra.mxu0 %vm5670_vm1, %v138_v57  ;;  %v359_v57 = vsel %vm356_vm2, %v357_v55, %v358_v15  ;;  %v1272_v15 = vld [vmem:[%s5569_s8 + $0x8] sm:$0xff] }
  0x3f   :  { %v158_v50 = vsel %vm120_vm0, %v156_v47, %v157_v48  ;;  %1570 = vmatpush.msrb.mxu1 %v1272_v15 }
  0x40   :  { %3092 = vmatmul.msk.f32.gmra.mxu2 %vm5670_vm1, %v376_v59  ;;  %v1281_v59 = vld [vmem:[%s5569_s8 + $0x50] sm:$0xff] }
  0x41   :  { %1762 = vmatpush.msrb.mxu2 %v1281_v59  ;;  %1571 = vmatpush.msrb.mxu1 %v1271_v5  ;;  %v1243_v5 = vld [vmem:[%s5684_s3 + $0x20] sm:$0xff] }
  0x45   :  { %3076 = vmatmul.msk.f32.gmra.mxu1 %vm5670_vm1, %v70_v49  ;;  %v83_v49 = vld [vmem:[%s5683_s30 + $0xb8] sm:$0x3] }
  0x46   :  { %3060 = vmatmul.msk.f32.gmra.mxu0 %vm5670_vm1, %v140_v63  ;;  %v395_v51 = vrot.slane %v83_v49, 2  ;;  %v159_v53 = vrot.slane %v83_v49, 1  ;;  %v546_v49 = vld [vmem:[%s5566_s5] sm:$0xff] }
  0x48   :  { %3093 = vmatmul.msk.f32.gmra.mxu2 %vm5670_vm1, %v379_v2  ;;  %v396_v52 = vsel %vm356_vm2, %v393_v45, %v395_v51  ;;  %v160_v54 = vsel %vm120_vm0, %v157_v48, %v159_v53  ;;  %v547_v45 = vld [vmem:[%s5566_s5 + $0x8] sm:$0xff]  ;;  %v1242_v53 = vld [vmem:[%s5684_s3 + $0x18] sm:$0x3] }
  0x4d   :  { %3077 = vmatmul.msk.f32.gmra.mxu1 %vm5670_vm1, %v72_v61 }
  0x4e   :  { %3061 = vmatmul.msk.f32.gmra.mxu0 %vm5670_vm1, %v143_v6 }
  0x50   :  { %3094 = vmatmul.msk.f32.gmra.mxu2 %vm5670_vm1, %v381_v10 }
  0x55   :  { %3078 = vmatmul.msk.f32.gmra.mxu1 %vm5670_vm1, %v73_v62  ;;  %v1280_v62 = vld [vmem:[%s5569_s8 + $0x48] sm:$0xff] }
  0x56   :  { %3062 = vmatmul.msk.f32.gmra.mxu0 %vm5670_vm1, %v145_v14  ;;  %1763 = vmatpush.msrb.mxu2 %v1280_v62  ;;  %v1320_v62 = vrot.slane %v1242_v53, 1 }
  0x58   :  { %3095 = vmatmul.msk.f32.gmra.mxu2 %vm5670_vm1, %v384_v18 }
  0x59   :  { %1764 = vmatpush.msrb.mxu2 %v1279_v4  ;;  %v1928_v4 = vld [vmem:[%s5571_s10 + $0x70] sm:$0xff] }
  0x5d   :  { %3079 = vmatmul.msk.f32.gmra.mxu1 %vm5670_vm1, %v75_v12  ;;  %v559_v12 = vld [vmem:[%s5566_s5 + $0x68] sm:$0xff] }
  0x5e   :  { %3063 = vmatmul.msk.f32.gmra.mxu0 %vm5670_vm1, %v148_v22  ;;  %568 = vmatpush.msra.mxu3 %v559_v12 }
  0x60   :  { %3096 = vmatmul.msk.f32.gmra.mxu2 %vm5670_vm1, %v386_v24 }
  0x65   :  { %3080 = vmatmul.msk.f32.gmra.mxu1 %vm5670_vm1, %v76_v13  ;;  %v558_v13 = vld [vmem:[%s5566_s5 + $0x60] sm:$0xff] }
  0x66   :  { %3064 = vmatmul.msk.f32.gmra.mxu0 %vm5670_vm1, %v150_v28  ;;  %569 = vmatpush.msra.mxu3 %v558_v13  ;;  %v1239_v28 = vld [vmem:[%s5684_s3] sm:$0xff]  ;;  %v1652_v13 = vrot.slane %v1243_v5, 2 }
  0x67   :  { %v1645_v30 = vrot.slane %v1239_v28, 2  ;;  %v1315_v37 = vrot.slane %v1239_v28, 1 }
  0x68   :  { %3097 = vmatmul.msk.f32.gmra.mxu2 %vm5670_vm1, %v389_v31  ;;  %570 = vmatpush.msra.mxu3 %v557_v17  ;;  %v551_v31 = vld [vmem:[%s5566_s5 + $0x28] sm:$0xff]  ;;  %v1653_v17 = vrot.slane %v1244_v7, 2 }
  0x69   :  { %v1647_v36 = vsel %vm356_vm2, %v1645_v30, %v1646_v33 }
  0x6a   :  { %571 = vmatpush.msra.mxu3 %v556_v19  ;;  %v1654_v19 = vsel %vm356_vm2, %v1652_v13, %v1653_v17  ;;  %v1249_v13 = vld [vmem:[%s5684_s3 + $0x50] sm:$0xff] }
  0x6c   :  { %572 = vmatpush.msra.mxu3 %v555_v20 }
  0x6d   :  { %3081 = vmatmul.msk.f32.gmra.mxu1 %vm5670_vm1, %v78_v26  ;;  %v552_v26 = vld [vmem:[%s5566_s5 + $0x30] sm:$0xff] }
  0x6e   :  { %3065 = vmatmul.msk.f32.gmra.mxu0 %vm5670_vm1, %v153_v35  ;;  %573 = vmatpush.msra.mxu3 %v554_v21  ;;  %v1276_v35 = vld [vmem:[%s5569_s8 + $0x28] sm:$0xff]  ;;  %v1322_v21 = vrot.slane %v1243_v5, 1 }
  0x70   :  { %3098 = vmatmul.msk.f32.gmra.mxu2 %vm5670_vm1, %v391_v39  ;;  %574 = vmatpush.msra.mxu3 %v553_v23  ;;  %v549_v39 = vld [vmem:[%s5566_s5 + $0x18] sm:$0xff]  ;;  %v1323_v23 = vrot.slane %v1244_v7, 1 }
  0x72   :  { %575 = vmatpush.msra.mxu3 %v552_v26  ;;  %v1324_v30 = vsel %vm120_vm0, %v1322_v21, %v1323_v23 }
  0x74   :  { %576 = vmatpush.msra.mxu3 %v551_v31 }
  0x75   :  { %3082 = vmatmul.msk.f32.gmra.mxu1 %vm5670_vm1, %v79_v27  ;;  %v1278_v27 = vld [vmem:[%s5569_s8 + $0x38] sm:$0xff] }
  0x76   :  { %3066 = vmatmul.msk.f32.gmra.mxu0 %vm5670_vm1, %v155_v43  ;;  %577 = vmatpush.msra.mxu3 %v550_v34 }
  0x77   :  { %1431 = vmatpush.msra.mxu0 %v1278_v27  ;;  %v1927_v27 = vld [vmem:[%s5571_s10 + $0x68] sm:$0xff] }
  0x78   :  { %3099 = vmatmul.msk.f32.gmra.mxu2 %vm5670_vm1, %v394_v46  ;;  %578 = vmatpush.msra.mxu3 %v549_v39  ;;  %v1241_v46 = vld [vmem:[%s5684_s3 + $0x10] sm:$0xff] }
  0x79   :  { %1432 = vmatpush.msra.mxu0 %v1277_v32  ;;  %v1648_v47 = vrot.slane %v1241_v46, 2  ;;  %v1318_v51 = vrot.slane %v1241_v46, 1 }
  0x7a   :  { %579 = vmatpush.msra.mxu3 %v548_v44 }
  0x7b   :  { %1433 = vmatpush.msra.mxu0 %v1276_v35  ;;  %v1319_v55 = vsel %vm120_vm0, %v1316_v38, %v1318_v51  ;;  %v1321_v12 = vsel %vm120_vm0, %v1318_v51, %v1320_v62 }
  0x7c   :  { %580 = vmatpush.msra.mxu3 %v547_v45 }
  0x7d   :  { %3083 = vmatmul.msk.f32.gmra.mxu1 %vm5670_vm1, %v81_v41  ;;  %1434 = vmatpush.msra.mxu0 %v1275_v40 }
  0x7e   :  { %3067 = vmatmul.msk.f32.gmra.mxu0 %vm5670_vm1, %v158_v50  ;;  %v1649_v50 = vsel %vm356_vm2, %v1646_v33, %v1648_v47  ;;  %581 = vmatpush.msra.mxu3 %v546_v49  ;;  %v1925_v49 = vld [vmem:[%s5571_s10 + $0x58] sm:$0xff] }
  0x80   :  { %3100 = vmatmul.msk.f32.gmra.mxu2 %vm5670_vm1, %v396_v52  ;;  %v1929_v52 = vld [vmem:[%s5571_s10 + $0x78] sm:$0xff] }
  0x81   :  { %1934 = vmatpush.msrb.mxu3 %v1929_v52 }
  0x83   :  { %1935 = vmatpush.msrb.mxu3 %v1928_v4 }
  0x85   :  { %3084 = vmatmul.msk.f32.gmra.mxu1 %vm5670_vm1, %v82_v42  ;;  %v1317_v42 = vsel %vm120_vm0, %v1315_v37, %v1316_v38  ;;  %1936 = vmatpush.msrb.mxu3 %v1927_v27  ;;  %v1246_v37 = vld [vmem:[%s5684_s3 + $0x38] sm:$0x3] }
  0x86   :  { %3068 = vmatmul.msk.f32.gmra.mxu0 %vm5670_vm1, %v160_v54  ;;  %v1657_v40 = vrot.slane %v1246_v37, 2 }
  0x88   :  { %3149 = vmatmul.msk.f32.vlgmr.msrb.gmra.mxu2 %vm5670_vm1, %v1647_v36  ;;  %v1926_v36 = vld [vmem:[%s5571_s10 + $0x60] sm:$0xff] }
  0x89   :  { %1937 = vmatpush.msrb.mxu3 %v1926_v36 }
  0x8a   :  { %v3761_v2 = vpop.f32.mrf.mxu1 }
  0x8b   :  { %v3729_v56 = vpop.f32.mrf.mxu0  ;;  %1938 = vmatpush.msrb.mxu3 %v1925_v49 }
  0x8c   :  { %v309_v34 = vadd.f32 %v3761_v2, %v3729_v56  ;;  %v3938_v2 = vld [vmem:[%s5565_s4] ss:$0 sm:$0xff] }
  0x8d   :  { %3125 = vmatmul.msk.f32.vlgmr.msrb.gmra.mxu1 %vm5670_vm1, %v1239_v28  ;;  %v1245_v28 = vld [vmem:[%s5684_s3 + $0x30] sm:$0xff] }
  0x8e   :  { %3085 = vmatmul.msk.f32.vlgmr.msrb.gmra.mxu0 %vm5670_vm1, %v359_v57  ;;  %v1650_v57 = vrot.slane %v1242_v53, 2  ;;  %v1655_v31 = vrot.slane %v1245_v28, 2  ;;  %v1325_v33 = vrot.slane %v1245_v28, 1 }
  0x90   :  { %3150 = vmatmul.msk.f32.gmra.mxu2 %vm5670_vm1, %v1649_v50  ;;  %v1651_v59 = vsel %vm356_vm2, %v1648_v47, %v1650_v57  ;;  %v1656_v32 = vsel %vm356_vm2, %v1653_v17, %v1655_v31  ;;  %v1326_v39 = vsel %vm120_vm0, %v1323_v23, %v1325_v33  ;;  %v1247_v50 = vld [vmem:[%s5684_s3 + $0x40] sm:$0xff]  ;;  %v1662_v17 = vrot.slane %v1249_v13, 2 }
  0x91   :  { %v1659_v52 = vrot.slane %v1247_v50, 2 }
  0x92   :  { %v3771_v6 = vpop.f32.mrf.mxu1 }
  0x93   :  { %v3741_v60 = vpop.f32.mrf.mxu0  ;;  %v3787_v14 = vpop.f32.mrf.mxu2 }
  0x95   :  { %3126 = vmatmul.msk.f32.gmra.mxu1 %vm5670_vm1, %v1240_v29 }
  0x96   :  { %3101 = vmatmul.msk.f32.vlgmr.msra.gmra.mxu0 %vm5670_vm1, %v1317_v42  ;;  %v312_v42 = vadd.f32 %v3771_v6, %v3741_v60  ;;  %v1327_v6 = vrot.slane %v1246_v37, 1 }
  0x98   :  { %3151 = vmatmul.msk.f32.gmra.mxu2 %vm5670_vm1, %v1651_v59  ;;  %v495_v47 = vadd.f32 %v3787_v14, %v312_v42  ;;  %v1248_v14 = vld [vmem:[%s5684_s3 + $0x48] sm:$0xff]  ;;  %v1328_v51 = vsel %vm120_vm0, %v1325_v33, %v1327_v6 }
  0x99   :  { %v1660_v53 = vrot.slane %v1248_v14, 2 }
  0x9a   :  { %v3789_v16 = vpop.f32.mrf.mxu1  ;;  %v3966_v59 = vadd.f32 %v3938_v2, %v495_v47 }
  0x9b   :  { %v3743_v8 = vpop.f32.mrf.mxu0  ;;  %v3805_v22 = vpop.f32.mrf.mxu2  ;;  %v1661_v4 = vsel %vm356_vm2, %v1659_v52, %v1660_v53  ;;  %v1663_v27 = vsel %vm356_vm2, %v1660_v53, %v1662_v17 }
  0x9c   :  { %5686 = vst [vmem:[#allocation6_spill] sm:$0xff] %v3966_v59 }
  0x9d   :  { %3127 = vmatmul.msk.f32.gmra.mxu1 %vm5670_vm1, %v1241_v46  ;;  %v1658_v46 = vsel %vm356_vm2, %v1655_v31, %v1657_v40 }
  0x9e   :  { %3102 = vmatmul.msk.f32.gmra.mxu0 %vm5670_vm1, %v1319_v55  ;;  %v315_v55 = vadd.f32 %v3789_v16, %v3743_v8  ;;  %v1329_v8 = vrot.slane %v1247_v50, 1  ;;  %v1330_v16 = vrot.slane %v1248_v14, 1 }
  0xa0   :  { %3152 = vmatmul.msk.f32.gmra.mxu2 %vm5670_vm1, %v1654_v19 }
  0xa2   :  { %v3812_v25 = vpop.f32.mrf.mxu1 }
  0xa3   :  { %v3745_v61 = vpop.f32.mrf.mxu0  ;;  %v3850_v43 = vpop.f32.mrf.mxu2 }
  0xa4   :  { %v318_v19 = vadd.f32 %v3812_v25, %v3745_v61  ;;  %v1332_v61 = vrot.slane %v1249_v13, 1  ;;  %v1923_v25 = vld [vmem:[%s5571_s10 + $0x48] sm:$0xff] }
  0xa5   :  { %3128 = vmatmul.msk.f32.gmra.mxu1 %vm5670_vm1, %v1243_v5  ;;  %v496_v5 = vadd.f32 %v3805_v22, %v315_v55  ;;  %v1331_v22 = vsel %vm120_vm0, %v1329_v8, %v1330_v16 }
  0xa6   :  { %3103 = vmatmul.msk.f32.gmra.mxu0 %vm5670_vm1, %v1321_v12  ;;  %v1924_v12 = vld [vmem:[%s5571_s10 + $0x50] sm:$0xff] }
  0xa7   :  { %1939 = vmatpush.msrb.mxu3 %v1924_v12  ;;  %v3988_v21 = vadd.f32 %v3938_v2, %v496_v5 }
  0xa8   :  { %3153 = vmatmul.msk.f32.gmra.mxu2 %vm5670_vm1, %v1656_v32  ;;  %v1250_v32 = vld [vmem:[%s5684_s3 + $0x58] sm:$0x3] }
  0xa9   :  { %5687 = vst [vmem:[#allocation7_spill] sm:$0xff] %v3988_v21  ;;  %v5619_v31 = vmax.f32 %v3988_v21, 0.0  ;;  %1940 = vmatpush.msrb.mxu3 %v1923_v25  ;;  %v1664_v33 = vrot.slane %v1250_v32, 2  ;;  %v1334_v42 = vrot.slane %v1250_v32, 1 }
  0xaa   :  { %v3862_v48 = vpop.f32.mrf.mxu1 }
  0xab   :  { %v3747_v9 = vpop.f32.mrf.mxu0  ;;  %v3880_v58 = vpop.f32.mrf.mxu2  ;;  %v1665_v37 = vsel %vm356_vm2, %v1662_v17, %v1664_v33 }
  0xad   :  { %3129 = vmatmul.msk.f32.gmra.mxu1 %vm5670_vm1, %v1244_v7  ;;  %v5618_v7 = vmax.f32 %v3966_v59, 0.0 }
  0xae   :  { %3104 = vmatmul.msk.f32.gmra.mxu0 %vm5670_vm1, %v1324_v30 }
  0xb0   :  { %3154 = vmatmul.msk.f32.gmra.mxu2 %vm5670_vm1, %v1658_v46  ;;  %v1335_v46 = vsel %vm120_vm0, %v1332_v61, %v1334_v42 }
  0xb2   :  { %v3884_v15 = vpop.f32.mrf.mxu1 }
  0xb3   :  { %v3755_v63 = vpop.f32.mrf.mxu0  ;;  %v3902_v20 = vpop.f32.mrf.mxu2 }
  0xb4   :  { %v324_v49 = vadd.f32 %v3884_v15, %v3755_v63  ;;  %v1921_v63 = vld [vmem:[%s5571_s10 + $0x38] sm:$0xff]  ;;  %v1253_v15 = vld [vmem:[%s5684_s3 + $0x70] sm:$0xff] }
  0xb5   :  { %3130 = vmatmul.msk.f32.gmra.mxu1 %vm5670_vm1, %v1245_v28  ;;  %v497_v28 = vadd.f32 %v3850_v43, %v318_v19  ;;  %v1333_v43 = vsel %vm120_vm0, %v1330_v16, %v1332_v61  ;;  %v1669_v5 = vrot.slane %v1253_v15, 2  ;;  %v1339_v19 = vrot.slane %v1253_v15, 1 }
  0xb6   :  { %3105 = vmatmul.msk.f32.gmra.mxu0 %vm5670_vm1, %v1326_v39 }
  0xb7   :  { %v4012_v36 = vadd.f32 %v3938_v2, %v497_v28 }
  0xb8   :  { %3155 = vmatmul.msk.f32.gmra.mxu2 %vm5670_vm1, %v1661_v4 }
  0xb9   :  { %5688 = vst [vmem:[#allocation8_spill] sm:$0xff] %v4012_v36  ;;  %v5621_v40 = vmax.f32 %v4012_v36, 0.0 }
  0xba   :  { %v3905_v26 = vpop.f32.mrf.mxu1 }
  0xbb   :  { %v3757_v0 = vpop.f32.mrf.mxu0  ;;  %v3922_v35 = vpop.f32.mrf.mxu2 }
  0xbc   :  { %v327_v8 = vadd.f32 %v3905_v26, %v3757_v0  ;;  %v1920_v0 = vld [vmem:[%s5571_s10 + $0x30] sm:$0xff]  ;;  %v1254_v26 = vld [vmem:[%s5684_s3 + $0x78] sm:$0x3] }
  0xbd   :  { %3131 = vmatmul.msk.f32.gmra.mxu1 %vm5670_vm1, %v1247_v50 }
  0xbe   :  { %3106 = vmatmul.msk.f32.gmra.mxu0 %vm5670_vm1, %v1328_v51  ;;  %v499_v51 = vadd.f32 %v3902_v20, %v324_v49 }
  0xc0   :  { %3156 = vmatmul.msk.f32.gmra.mxu2 %vm5670_vm1, %v1663_v27  ;;  %v4063_v12 = vadd.f32 %v3938_v2, %v499_v51  ;;  %v1918_v51 = vld [vmem:[%s5571_s10 + $0x20] sm:$0xff] }
  0xc2   :  { %v3933_v44 = vpop.f32.mrf.mxu1  ;;  %5690 = vst [vmem:[#allocation10_spill] sm:$0xff] %v4063_v12  ;;  %v5620_v17 = vmax.f32 %v4063_v12, 0.0 }
  0xc3   :  { %v3759_v1 = vpop.f32.mrf.mxu0  ;;  %v3963_v57 = vpop.f32.mrf.mxu2 }
  0xc4   :  { %v330_v28 = vadd.f32 %v3933_v44, %v3759_v1  ;;  %v1341_v1 = vrot.slane %v1254_v26, 1  ;;  %v1919_v44 = vld [vmem:[%s5571_s10 + $0x28] sm:$0xff] }
  0xc5   :  { %3132 = vmatmul.msk.f32.gmra.mxu1 %vm5670_vm1, %v1248_v14 }
  0xc6   :  { %3107 = vmatmul.msk.f32.gmra.mxu0 %vm5670_vm1, %v1331_v22  ;;  %v500_v22 = vadd.f32 %v3922_v35, %v327_v8  ;;  %v1671_v35 = vrot.slane %v1254_v26, 2  ;;  %v501_v33 = vadd.f32 %v3963_v57, %v330_v28  ;;  %v1256_v57 = vld [vmem:[%s5684_s3 + $0x88] sm:$0xff] }
  0xc8   :  { %3157 = vmatmul.msk.f32.gmra.mxu2 %vm5670_vm1, %v1665_v37  ;;  %v4085_v25 = vadd.f32 %v3938_v2, %v500_v22  ;;  %v1255_v37 = vld [vmem:[%s5684_s3 + $0x80] sm:$0xff] }
  0xc9   :  { %v1673_v42 = vrot.slane %v1255_v37, 2 }
  0xca   :  { %v3969_v62 = vpop.f32.mrf.mxu1  ;;  %5691 = vst [vmem:[#allocation11_spill] sm:$0xff] %v4085_v25 }
  0xcb   :  { %v3763_v3 = vpop.f32.mrf.mxu0  ;;  %v3991_v23 = vpop.f32.mrf.mxu2 }
  0xcd   :  { %3133 = vmatmul.msk.f32.gmra.mxu1 %vm5670_vm1, %v1249_v13 }
  0xce   :  { %3108 = vmatmul.msk.f32.gmra.mxu0 %vm5670_vm1, %v1333_v43  ;;  %v1672_v43 = vsel %vm356_vm2, %v1669_v5, %v1671_v35 }
  0xd2   :  { %v3996_v30 = vpop.f32.mrf.mxu1 }
  0xd3   :  { %v3776_v10 = vpop.f32.mrf.mxu0  ;;  %v4018_v39 = vpop.f32.mrf.mxu2 }
  0xd6   :  { %3109 = vmatmul.msk.f32.gmra.mxu0 %vm5670_vm1, %v1335_v46 }
  0xdb   :  { %v3794_v18 = vpop.f32.mrf.mxu0  ;;  %v4047_v4 = vpop.f32.mrf.mxu2 }
  0xe3   :  { %v3810_v24 = vpop.f32.mrf.mxu0  ;;  %v4082_v61 = vpop.f32.mrf.mxu2 }
  0xeb   :  { %v3847_v41 = vpop.f32.mrf.mxu0  ;;  %v4113_v46 = vpop.f32.mrf.mxu2 }
  0xf3   :  { %v3876_v54 = vpop.f32.mrf.mxu0  ;;  %v4140_v8 = vpop.f32.mrf.mxu2 }
  0xfb   :  { %v3896_v11 = vpop.f32.mrf.mxu0 }
 0x103   :  { %v3913_v29 = vpop.f32.mrf.mxu0 }
 0x10b   :  { %v446_v38 = vpop.f32.mrf.mxu0 }
 0x10c   :  { %v494_v56 = vadd.f32 %v446_v38, %v309_v34  ;;  %v321_v34 = vadd.f32 %v3862_v48, %v3747_v9  ;;  %v1922_v9 = vld [vmem:[%s5571_s10 + $0x40] sm:$0xff] }
 0x10d   :  { %v1251_v48 = vld [vmem:[%s5684_s3 + $0x60] sm:$0xff]  ;;  %1941 = vmatpush.msrb.mxu3 %v1922_v9  ;;  %v1674_v9 = vrot.slane %v1256_v57, 2 }
 0x10e   :  { %v3942_v45 = vadd.f32 %v3938_v2, %v494_v56  ;;  %v498_v38 = vadd.f32 %v3880_v58, %v321_v34  ;;  %v4022_v56 = vpop.f32.mrf.mxu1  ;;  %v1252_v58 = vld [vmem:[%s5684_s3 + $0x68] sm:$0xff]  ;;  %v1666_v47 = vrot.slane %v1251_v48, 2  ;;  %3134 = vmatmul.msk.f32.gmra.mxu1 %vm5670_vm1, %v1251_v48  ;;  %v1336_v53 = vrot.slane %v1251_v48, 1 }
 0x10f   :  { %v1667_v6 = vrot.slane %v1252_v58, 2  ;;  %v1337_v55 = vrot.slane %v1252_v58, 1  ;;  %1942 = vmatpush.msrb.mxu3 %v1921_v63  ;;  %v5609_v34 = vmax.f32 %v4085_v25, 0.0  ;;  %v333_v48 = vadd.f32 %v3969_v62, %v3763_v3 }
 0x110   :  { %5685 = vst [vmem:[#allocation5_spill] sm:$0xff] %v3942_v45  ;;  %v5617_v60 = vmax.f32 %v3942_v45, 0.0  ;;  %v4039_v50 = vadd.f32 %v3938_v2, %v498_v38  ;;  %v1342_v38 = vsel %vm120_vm0, %v1339_v19, %v1341_v1  ;;  %v1343_v3 = vrot.slane %v1255_v37, 1  ;;  %v4166_v1 = vpop.f32.mrf.mxu2 }
 0x111   :  { %v1668_v14 = vsel %vm356_vm2, %v1666_v47, %v1667_v6  ;;  %v1338_v20 = vsel %vm120_vm0, %v1336_v53, %v1337_v55  ;;  %v1670_v13 = vsel %vm356_vm2, %v1667_v6, %v1669_v5  ;;  %1943 = vmatpush.msrb.mxu3 %v1920_v0  ;;  %v1340_v27 = vsel %vm120_vm0, %v1337_v55, %v1339_v19  ;;  %v1257_v53 = vld [vmem:[%s5684_s3 + $0x90] sm:$0xff] }
 0x112   :  { %582 = vmatmul.f32.vlgmr.msra.gmra.mxu3 %v5617_v60  ;;  %5689 = vst [vmem:[#allocation9_spill] sm:$0xff] %v4039_v50  ;;  %v5615_v52 = vmax.f32 %v4039_v50, 0.0  ;;  %3158 = vmatmul.msk.f32.gmra.mxu2 %vm5670_vm1, %v1668_v14  ;;  %v1675_v47 = vsel %vm356_vm2, %v1673_v42, %v1674_v9  ;;  %v502_v6 = vadd.f32 %v3991_v23, %v333_v48  ;;  %v1344_v62 = vrot.slane %v1256_v57, 1 }
 0x113   :  { %3110 = vmatmul.msk.f32.gmra.mxu0 %vm5670_vm1, %v1338_v20  ;;  %1944 = vmatpush.msrb.mxu3 %v1919_v44  ;;  %v1676_v55 = vrot.slane %v1257_v53, 2  ;;  %v336_v63 = vadd.f32 %v3996_v30, %v3776_v10  ;;  %v1346_v22 = vrot.slane %v1257_v53, 1  ;;  %v1917_v10 = vld [vmem:[%s5571_s10 + $0x18] sm:$0xff]  ;;  %v339_v26 = vadd.f32 %v4022_v56, %v3794_v18  ;;  %v1916_v18 = vld [vmem:[%s5571_s10 + $0x10] sm:$0xff]  ;;  %v1259_v56 = vld [vmem:[%s5684_s3 + $0xa0] sm:$0xff] }
 0x114   :  { %v1345_v23 = vsel %vm120_vm0, %v1343_v3, %v1344_v62  ;;  %v1258_v30 = vld [vmem:[%s5684_s3 + $0x98] sm:$0x3]  ;;  %v1350_v3 = vrot.slane %v1259_v56, 1 }
 0x115   :  { %1945 = vmatpush.msrb.mxu3 %v1918_v51  ;;  %v1677_v20 = vsel %vm356_vm2, %v1674_v9, %v1676_v55  ;;  %v503_v5 = vadd.f32 %v4018_v39, %v336_v63  ;;  %v1347_v39 = vsel %vm120_vm0, %v1344_v62, %v1346_v22  ;;  %v1678_v0 = vrot.slane %v1258_v30, 2 }
 0x116   :  { %v4060_v16 = vpop.f32.mrf.mxu1  ;;  %3135 = vmatmul.msk.f32.gmra.mxu1 %vm5670_vm1, %v1252_v58  ;;  %v4110_v58 = vadd.f32 %v3938_v2, %v501_v33  ;;  %v504_v28 = vadd.f32 %v4047_v4, %v339_v26  ;;  %v1348_v33 = vrot.slane %v1258_v30, 1  ;;  %v1260_v4 = vld [vmem:[%s5684_s3 + $0xa8] sm:$0xff]  ;;  %v1262_v30 = vld [vmem:[%s5684_s3 + $0xb8] sm:$0x3] }
 0x117   :  { %1946 = vmatpush.msrb.mxu3 %v1917_v10  ;;  %v1679_v35 = vsel %vm356_vm2, %v1676_v55, %v1678_v0  ;;  %v1351_v62 = vrot.slane %v1260_v4, 1 }
 0x118   :  { %5692 = vst [vmem:[#allocation12_spill] sm:$0xff] %v4110_v58  ;;  %v5616_v14 = vmax.f32 %v4110_v58, 0.0  ;;  %v1349_v44 = vsel %vm120_vm0, %v1346_v22, %v1348_v33  ;;  %v4185_v9 = vadd.f32 %v3938_v2, %v504_v28 }
 0x119   :  { %1947 = vmatpush.msrb.mxu3 %v1916_v18 }
 0x11a   :  { %585 = vmatmul.f32.gmra.mxu3 %v5618_v7  ;;  %3159 = vmatmul.msk.f32.gmra.mxu2 %vm5670_vm1, %v1670_v13  ;;  %5695 = vst [vmem:[#allocation15_spill] sm:$0xff] %v4185_v9 }
 0x11b   :  { %3111 = vmatmul.msk.f32.gmra.mxu0 %vm5670_vm1, %v1340_v27  ;;  %v4158_v27 = vadd.f32 %v3938_v2, %v503_v5 }
 0x11d   :  { %5694 = vst [vmem:[#allocation14_spill] sm:$0xff] %v4158_v27 }
 0x11e   :  { %v4088_v32 = vpop.f32.mrf.mxu1  ;;  %3136 = vmatmul.msk.f32.gmra.mxu1 %vm5670_vm1, %v1253_v15  ;;  %v4134_v15 = vadd.f32 %v3938_v2, %v502_v6  ;;  %v5593_v6 = vmax.f32 %v4185_v9, 0.0 }
 0x120   :  { %5693 = vst [vmem:[#allocation13_spill] sm:$0xff] %v4134_v15  ;;  %v5607_v13 = vmax.f32 %v4134_v15, 0.0 }
 0x122   :  { %588 = vmatmul.f32.gmra.mxu3 %v5619_v31  ;;  %3160 = vmatmul.msk.f32.gmra.mxu2 %vm5670_vm1, %v1672_v43  ;;  %v5602_v43 = vmax.f32 %v4158_v27, 0.0 }
 0x123   :  { %3112 = vmatmul.msk.f32.gmra.mxu0 %vm5670_vm1, %v1342_v38  ;;  %v342_v38 = vadd.f32 %v4060_v16, %v3810_v24  ;;  %v1915_v24 = vld [vmem:[%s5571_s10 + $0x8] sm:$0xff]  ;;  %v1261_v16 = vld [vmem:[%s5684_s3 + $0xb0] sm:$0xff] }
 0x124   :  { %1948 = vmatpush.msrb.mxu3 %v1915_v24  ;;  %v1683_v51 = vrot.slane %v1261_v16, 2  ;;  %v1353_v10 = vrot.slane %v1261_v16, 1 }
 0x126   :  { %3137 = vmatmul.msk.f32.gmra.mxu1 %vm5670_vm1, %v1255_v37  ;;  %v4118_v49 = vpop.f32.mrf.mxu1  ;;  %v1680_v37 = vrot.slane %v1259_v56, 2 }
 0x127   :  { %v348_v0 = vadd.f32 %v4118_v49, %v3876_v54 }
 0x129   :  { %v507_v18 = vadd.f32 %v4140_v8, %v348_v0  ;;  %v1263_v8 = vld [vmem:[%s5684_s3 + $0xc0] sm:$0xff] }
 0x12a   :  { %591 = vmatmul.f32.gmra.mxu3 %v5621_v40  ;;  %3161 = vmatmul.msk.f32.gmra.mxu2 %vm5670_vm1, %v1675_v47  ;;  %v505_v47 = vadd.f32 %v4082_v61, %v342_v38  ;;  %v1352_v61 = vsel %vm120_vm0, %v1350_v3, %v1351_v62  ;;  %v1264_v38 = vld [vmem:[%s5684_s3 + $0xc8] sm:$0xff]  ;;  %v1357_v24 = vrot.slane %v1263_v8, 1 }
 0x12b   :  { %3113 = vmatmul.msk.f32.gmra.mxu0 %vm5670_vm1, %v1345_v23  ;;  %v491_v23 = vpop.f32.mrf.mxu2 }
 0x12c   :  { %v4205_v55 = vadd.f32 %v3938_v2, %v505_v47  ;;  %v1688_v47 = vrot.slane %v1264_v38, 2 }
 0x12e   :  { %3138 = vmatmul.msk.f32.gmra.mxu1 %vm5670_vm1, %v1256_v57  ;;  %v4144_v19 = vpop.f32.mrf.mxu1  ;;  %v1681_v57 = vrot.slane %v1260_v4, 2  ;;  %5696 = vst [vmem:[#allocation16_spill] sm:$0xff] %v4205_v55  ;;  %v5591_v22 = vmax.f32 %v4205_v55, 0.0 }
 0x130   :  { %v1682_v48 = vsel %vm356_vm2, %v1680_v37, %v1681_v57  ;;  %v4239_v37 = vadd.f32 %v3938_v2, %v507_v18 }
 0x132   :  { %594 = vmatmul.f32.gmra.mxu3 %v5615_v52  ;;  %3162 = vmatmul.msk.f32.gmra.mxu2 %vm5670_vm1, %v1677_v20  ;;  %v1684_v20 = vsel %vm356_vm2, %v1681_v57, %v1683_v51  ;;  %5698 = vst [vmem:[#allocation18_spill] sm:$0xff] %v4239_v37  ;;  %v5599_v3 = vmax.f32 %v4239_v37, 0.0 }
 0x133   :  { %3114 = vmatmul.msk.f32.gmra.mxu0 %vm5670_vm1, %v1347_v39  ;;  %v1685_v39 = vrot.slane %v1262_v30, 2 }
 0x135   :  { %v1686_v28 = vsel %vm356_vm2, %v1683_v51, %v1685_v39 }
 0x136   :  { %3139 = vmatmul.msk.f32.gmra.mxu1 %vm5670_vm1, %v1257_v53  ;;  %v4182_v42 = vpop.f32.mrf.mxu1  ;;  %v345_v53 = vadd.f32 %v4088_v32, %v3847_v41  ;;  %v1436_v41 = vpop.f32.mrf.mxu0  ;;  %v1914_v32 = vld [vmem:[%s5571_s10] sm:$0xff] }
 0x137   :  { %1949 = vmatpush.msrb.mxu3 %v1914_v32 }
 0x138   :  { %v506_v5 = vadd.f32 %v4113_v46, %v345_v53  ;;  %v1354_v46 = vsel %vm120_vm0, %v1351_v62, %v1353_v10  ;;  %v354_v53 = vadd.f32 %v4182_v42, %v3913_v29 }
 0x13a   :  { %597 = vmatmul.f32.gmra.mxu3 %v5620_v17  ;;  %3163 = vmatmul.msk.f32.gmra.mxu2 %vm5670_vm1, %v1679_v35  ;;  %v4225_v26 = vadd.f32 %v3938_v2, %v506_v5  ;;  %v1766_v35 = vpop.f32.mrf.mxu2  ;;  %v1265_v5 = vld [vmem:[%s5684_s3 + $0xd0] sm:$0xff] }
 0x13b   :  { %3115 = vmatmul.msk.f32.gmra.mxu0 %vm5670_vm1, %v1349_v44  ;;  %v351_v44 = vadd.f32 %v4144_v19, %v3896_v11  ;;  %v1360_v29 = vrot.slane %v1265_v5, 1 }
 0x13c   :  { %5697 = vst [vmem:[#allocation17_spill] sm:$0xff] %v4225_v26 }
 0x13d   :  { %v508_v19 = vadd.f32 %v4166_v1, %v351_v44 }
 0x13e   :  { %3140 = vmatmul.msk.f32.gmra.mxu1 %vm5670_vm1, %v1259_v56  ;;  %v1573_v63 = vpop.f32.mrf.mxu1  ;;  %v5595_v56 = vmax.f32 %v4225_v26, 0.0  ;;  %v1439_v54 = vpop.f32.mrf.mxu0 }
 0x13f   :  { %v1574_v42 = vadd.f32 %v1573_v63, %v1436_v41  ;;  %v4284_v63 = vld [vmem:[%s5570_s9] ss:$0 sm:$0xff] }
 0x141   :  { %v1838_v44 = vadd.f32 %v1766_v35, %v1574_v42 }
 0x142   :  { %600 = vmatmul.f32.gmra.mxu3 %v5609_v34  ;;  %3164 = vmatmul.msk.f32.gmra.mxu2 %vm5670_vm1, %v1682_v48  ;;  %v1769_v57 = vpop.f32.mrf.mxu2  ;;  %v1687_v48 = vrot.slane %v1263_v8, 2 }
 0x143   :  { %3116 = vmatmul.msk.f32.gmra.mxu0 %vm5670_vm1, %v1352_v61  ;;  %v4295_v35 = vadd.f32 %v4284_v63, %v1838_v44  ;;  %v1269_v44 = vld [vmem:[%s5684_s3 + $0xf0] sm:$0xff] }
 0x144   :  { %v1689_v11 = vsel %vm356_vm2, %v1687_v48, %v1688_v47 }
 0x145   :  { %5701 = vst [vmem:[#allocation21_spill] sm:$0xff] %v4295_v35 }
 0x146   :  { %3141 = vmatmul.msk.f32.gmra.mxu1 %vm5670_vm1, %v1260_v4  ;;  %v1576_v33 = vpop.f32.mrf.mxu1  ;;  %v1355_v4 = vrot.slane %v1262_v30, 1  ;;  %v1442_v61 = vpop.f32.mrf.mxu0  ;;  %v509_v30 = vadd.f32 %v491_v23, %v354_v53  ;;  %v1266_v23 = vld [vmem:[%s5684_s3 + $0xd8] sm:$0x3] }
 0x147   :  { %v1577_v48 = vadd.f32 %v1576_v33, %v1439_v54 }
 0x148   :  { %v1356_v49 = vsel %vm120_vm0, %v1353_v10, %v1355_v4  ;;  %v1690_v10 = vrot.slane %v1265_v5, 2  ;;  %v4273_v18 = vadd.f32 %v3938_v2, %v509_v30 }
 0x149   :  { %v1839_v33 = vadd.f32 %v1769_v57, %v1577_v48 }
 0x14a   :  { %603 = vmatmul.f32.gmra.mxu3 %v5616_v14  ;;  %3165 = vmatmul.msk.f32.gmra.mxu2 %vm5670_vm1, %v1684_v20  ;;  %v4259_v20 = vadd.f32 %v3938_v2, %v508_v19  ;;  %v1772_v1 = vpop.f32.mrf.mxu2  ;;  %v1691_v32 = vsel %vm356_vm2, %v1688_v47, %v1690_v10  ;;  %5700 = vst [vmem:[#allocation20_spill] sm:$0xff] %v4273_v18  ;;  %v5589_v41 = vmax.f32 %v4273_v18, 0.0 }
 0x14b   :  { %3117 = vmatmul.msk.f32.gmra.mxu0 %vm5670_vm1, %v1354_v46  ;;  %v4321_v57 = vadd.f32 %v4284_v63, %v1839_v33 }
 0x14c   :  { %5699 = vst [vmem:[#allocation19_spill] sm:$0xff] %v4259_v20  ;;  %v5587_v46 = vmax.f32 %v4259_v20, 0.0 }
 0x14d   :  { %5702 = vst [vmem:[#allocation22_spill] sm:$0xff] %v4321_v57 }
 0x14e   :  { %3142 = vmatmul.msk.f32.gmra.mxu1 %vm5670_vm1, %v1261_v16  ;;  %v1579_v62 = vpop.f32.mrf.mxu1  ;;  %v1358_v16 = vrot.slane %v1264_v38, 1  ;;  %v1445_v0 = vpop.f32.mrf.mxu0 }
 0x14f   :  { %v1580_v42 = vadd.f32 %v1579_v62, %v1442_v61  ;;  %v5582_v62 = vmax.f32 %v4321_v57, 0.0 }
 0x150   :  { %v1359_v51 = vsel %vm120_vm0, %v1357_v24, %v1358_v16  ;;  %v1267_v24 = vld [vmem:[%s5684_s3 + $0xe0] sm:$0xff] }
 0x151   :  { %v1840_v61 = vadd.f32 %v1772_v1, %v1580_v42  ;;  %v4343_v1 = vld [vmem:[%s5568_s7] ss:$0 sm:$0xff]  ;;  %v1270_v42 = vld [vmem:[%s5684_s3 + $0xf8] sm:$0x3] }
 0x152   :  { %606 = vmatmul.f32.gmra.mxu3 %v5607_v13  ;;  %3166 = vmatmul.msk.f32.gmra.mxu2 %vm5670_vm1, %v1686_v28  ;;  %v1361_v28 = vsel %vm120_vm0, %v1358_v16, %v1360_v29  ;;  %v4275_v4 = vpop.f32.mrf.mxu2  ;;  %v1268_v16 = vld [vmem:[%s5684_s3 + $0xe8] sm:$0xff]  ;;  %s3044_s3 = sshll.u32 %s5579_s18, 4  ;;  %s3045_s3 = int_to_ptr.hbm [resolvable:$true] %s3044_s3 }
 0x153   :  { %3118 = vmatmul.msk.f32.gmra.mxu0 %vm5670_vm1, %v1356_v49  ;;  %v1692_v49 = vrot.slane %v1266_v23, 2  ;;  %v1695_v53 = vrot.slane %v1268_v16, 2  ;;  %v1365_v30 = vrot.slane %v1268_v16, 1 }
 0x155   :  { %v1693_v2 = vsel %vm356_vm2, %v1690_v10, %v1692_v49 }
 0x156   :  { %3143 = vmatmul.msk.f32.gmra.mxu1 %vm5670_vm1, %v1263_v8  ;;  %v1582_v39 = vpop.f32.mrf.mxu1  ;;  %v1448_v47 = vpop.f32.mrf.mxu0 }
 0x157   :  { %v1583_v33 = vadd.f32 %v1582_v39, %v1445_v0  ;;  %v1699_v39 = vrot.slane %v1270_v42, 2 }
 0x15a   :  { %609 = vmatmul.f32.gmra.mxu3 %v5602_v43  ;;  %3167 = vmatmul.msk.f32.gmra.mxu2 %vm5670_vm1, %v1689_v11  ;;  %v4298_v19 = vpop.f32.mrf.mxu2 }
 0x15b   :  { %3119 = vmatmul.msk.f32.gmra.mxu0 %vm5670_vm1, %v1359_v51  ;;  %v1694_v51 = vrot.slane %v1267_v24, 2 }
 0x15d   :  { %v1696_v54 = vsel %vm356_vm2, %v1694_v51, %v1695_v53  ;;  %v1367_v51 = vrot.slane %v1269_v44, 1 }
 0x15e   :  { %3144 = vmatmul.msk.f32.gmra.mxu1 %vm5670_vm1, %v1264_v38  ;;  %v4289_v8 = vpop.f32.mrf.mxu1  ;;  %v1362_v38 = vrot.slane %v1266_v23, 1 }
 0x160   :  { %v1363_v11 = vsel %vm120_vm0, %v1360_v29, %v1362_v38  ;;  %v4318_v29 = vld [vmem:[%s5567_s6] ss:$0 sm:$0xff]  ;;  %v1697_v38 = vrot.slane %v1269_v44, 2 }
 0x162   :  { %612 = vmatmul.f32.gmra.mxu3 %v5593_v6  ;;  %3168 = vmatmul.msk.f32.gmra.mxu2 %vm5670_vm1, %v1691_v32  ;;  %v1364_v32 = vrot.slane %v1267_v24, 1  ;;  %v4324_v49 = vpop.f32.mrf.mxu2 }
 0x163   :  { %3120 = vmatmul.msk.f32.gmra.mxu0 %vm5670_vm1, %v1361_v28  ;;  %v1451_v28 = vpop.f32.mrf.mxu0 }
 0x164   :  { %v1366_v23 = vsel %vm120_vm0, %v1364_v32, %v1365_v30 }
 0x166   :  { %3145 = vmatmul.msk.f32.gmra.mxu1 %vm5670_vm1, %v1265_v5  ;;  %v5583_v5 = vmax.f32 %v4295_v35, 0.0  ;;  %v4310_v10 = vpop.f32.mrf.mxu1 }
 0x16a   :  { %615 = vmatmul.f32.gmra.mxu3 %v5591_v22  ;;  %3169 = vmatmul.msk.f32.gmra.mxu2 %vm5670_vm1, %v1693_v2 }
 0x16b   :  { %3121 = vmatmul.msk.f32.gmra.mxu0 %vm5670_vm1, %v1363_v11  ;;  %v1698_v11 = vsel %vm356_vm2, %v1695_v53, %v1697_v38  ;;  %v1454_v32 = vpop.f32.mrf.mxu0  ;;  %v1784_v53 = vpop.f32.mrf.mxu2 }
 0x16e   :  { %3146 = vmatmul.msk.f32.gmra.mxu1 %vm5670_vm1, %v1267_v24  ;;  %v1591_v24 = vpop.f32.mrf.mxu1 }
 0x172   :  { %618 = vmatmul.f32.gmra.mxu3 %v5595_v56  ;;  %3170 = vmatmul.msk.f32.gmra.mxu2 %vm5670_vm1, %v1696_v54  ;;  %v4338_v54 = vadd.f32 %v4284_v63, %v1840_v61  ;;  %v1841_v61 = vadd.f32 %v4275_v4, %v1583_v33 }
 0x173   :  { %3122 = vmatmul.msk.f32.gmra.mxu0 %vm5670_vm1, %v1366_v23 }
 0x174   :  { %5703 = vst [vmem:[#allocation23_spill] sm:$0xff] %v4338_v54  ;;  %v4362_v4 = vadd.f32 %v4284_v63, %v1841_v61 }
 0x176   :  { %3147 = vmatmul.msk.f32.gmra.mxu1 %vm5670_vm1, %v1268_v16  ;;  %v1368_v16 = vsel %vm120_vm0, %v1365_v30, %v1367_v51  ;;  %5704 = vst [vmem:[#allocation24_spill] sm:$0xff] %v4362_v4 }
 0x17a   :  { %621 = vmatmul.f32.gmra.mxu3 %v5599_v3  ;;  %3171 = vmatmul.msk.f32.gmra.mxu2 %vm5670_vm1, %v1698_v11  ;;  %v1700_v11 = vsel %vm356_vm2, %v1697_v38, %v1699_v39  ;;  %v1787_v38 = vpop.f32.mrf.mxu2 }
 0x17b   :  { %3123 = vmatmul.msk.f32.gmra.mxu0 %vm5670_vm1, %v1368_v16  ;;  %v1369_v16 = vrot.slane %v1270_v42, 1 }
 0x17d   :  { %v1370_v33 = vsel %vm120_vm0, %v1367_v51, %v1369_v16  ;;  %v1589_v51 = vadd.f32 %v4310_v10, %v1451_v28  ;;  %v1592_v10 = vadd.f32 %v1591_v24, %v1454_v32 }
 0x17e   :  { %3148 = vmatmul.msk.f32.gmra.mxu1 %vm5670_vm1, %v1269_v44  ;;  %v1457_v44 = vpop.f32.mrf.mxu0 }
 0x182   :  { %624 = vmatmul.f32.gmra.mxu3 %v5587_v46  ;;  %3172 = vmatmul.msk.f32.gmra.mxu2 %vm5670_vm1, %v1700_v11  ;;  %v1790_v16 = vpop.f32.mrf.mxu2 }
 0x183   :  { %3124 = vmatmul.msk.f32.gmra.mxu0 %vm5670_vm1, %v1370_v33 }
 0x186   :  { %v1460_v11 = vpop.f32.mrf.mxu0 }
 0x18a   :  { %627 = vmatmul.f32.gmra.mxu3 %v5589_v41 }
 0x192   :  { %1950 = vmatmul.f32.vlgmr.msrb.gmra.mxu3 %v5583_v5 }
 0x195   :  { %v583_v2 = vpop.f32.mrf.mxu3 }
 0x196   :  { %v584_v48 = vadd.f32 %v4318_v29, %v583_v2 }
 0x198   :  { %3192 = vtanh.f32 %v584_v48  ;;  %v5584_v48 = vmax.f32 %v4338_v54, 0.0 }
 0x19a   :  { %1953 = vmatmul.f32.gmra.mxu3 %v5582_v62  ;;  %v1594_v62 = vpop.f32.mrf.mxu1 }
 0x19b   :  { %v1595_v24 = vadd.f32 %v1594_v62, %v1457_v44 }
 0x19d   :  { %v586_v23 = vpop.f32.mrf.mxu3 }
 0x19e   :  { %v3193_v0 = vpop.eup %3192  ;;  %v587_v2 = vadd.f32 %v4318_v29, %v586_v23  ;;  %v1586_v23 = vadd.f32 %v4289_v8, %v1448_v47 }
 0x19f   :  { %v651_v30 = vmul.f32 %v3193_v0, %v4343_v1 }
 0x1a0   :  { %3194 = vtanh.f32 %v587_v2  ;;  %v1842_v42 = vadd.f32 %v4298_v19, %v1586_v23 }
 0x1a1   :  { %v667_v5 = vsel %vm5670_vm1, %v651_v30, 0.0 }
 0x1a2   :  { %668 = vadd.xlane.f32.xlu0 %v667_v5  ;;  %1956 = vmatmul.f32.gmra.mxu3 %v5584_v48  ;;  %v5585_v5 = vmax.f32 %v4362_v4, 0.0  ;;  %v1597_v8 = vpop.f32.mrf.mxu1  ;;  %v4375_v61 = vadd.f32 %v4284_v63, %v1842_v42  ;;  %v1463_v42 = vpop.f32.mrf.mxu0 }
 0x1a3   :  { %v1598_v62 = vadd.f32 %v1597_v8, %v1460_v11 }
 0x1a4   :  { %5705 = vst [vmem:[#allocation25_spill] sm:$0xff] %v4375_v61  ;;  %v5586_v23 = vmax.f32 %v4375_v61, 0.0 }
 0x1a5   :  { %v589_v39 = vpop.f32.mrf.mxu3 }
 0x1a6   :  { %v3195_v0 = vpop.eup %3194  ;;  %v590_v2 = vadd.f32 %v4318_v29, %v589_v39 }
 0x1a7   :  { %v652_v30 = vmul.f32 %v3195_v0, %v4343_v1  ;;  %v1843_v0 = vadd.f32 %v4324_v49, %v1589_v51 }
 0x1a8   :  { %3196 = vtanh.f32 %v590_v2 }
 0x1a9   :  { %v670_v47 = vsel %vm5670_vm1, %v652_v30, 0.0  ;;  %v4385_v28 = vadd.f32 %v4284_v63, %v1843_v0 }
 0x1aa   :  { %671 = vadd.xlane.f32.xlu0 %v670_v47  ;;  %1959 = vmatmul.f32.gmra.mxu3 %v5585_v5  ;;  %v1600_v30 = vpop.f32.mrf.mxu1  ;;  %v1466_v0 = vpop.f32.mrf.mxu0 }
 0x1ab   :  { %5706 = vst [vmem:[#allocation26_spill] sm:$0xff] %v4385_v28  ;;  %v5588_v51 = vmax.f32 %v4385_v28, 0.0  ;;  %v1601_v11 = vadd.f32 %v1600_v30, %v1463_v42 }
 0x1ad   :  { %v592_v33 = vpop.f32.mrf.mxu3 }
 0x1ae   :  { %v3197_v39 = vpop.eup %3196  ;;  %v593_v19 = vadd.f32 %v4318_v29, %v592_v33  ;;  %v1793_v33 = vpop.f32.mrf.mxu2 }
 0x1af   :  { %v653_v2 = vmul.f32 %v3197_v39, %v4343_v1  ;;  %v1844_v39 = vadd.f32 %v1784_v53, %v1592_v10  ;;  %v1845_v10 = vadd.f32 %v1787_v38, %v1595_v24  ;;  %v1846_v24 = vadd.f32 %v1790_v16, %v1598_v62 }
 0x1b0   :  { %3198 = vtanh.f32 %v593_v19  ;;  %v1847_v62 = vadd.f32 %v1793_v33, %v1601_v11 }
 0x1b1   :  { %v673_v47 = vsel %vm5670_vm1, %v653_v2, 0.0  ;;  %v4394_v32 = vadd.f32 %v4284_v63, %v1844_v39  ;;  %v4403_v44 = vadd.f32 %v4284_v63, %v1845_v10  ;;  %v4412_v8 = vadd.f32 %v4284_v63, %v1846_v24 }
 0x1b2   :  { %674 = vadd.xlane.f32.xlu1 %v673_v47  ;;  %1962 = vmatmul.f32.gmra.mxu3 %v5586_v23  ;;  %v1603_v2 = vpop.f32.mrf.mxu1  ;;  %v1469_v39 = vpop.f32.mrf.mxu0  ;;  %v4421_v30 = vadd.f32 %v4284_v63, %v1847_v62 }
 0x1b3   :  { %5707 = vst [vmem:[#allocation27_spill] sm:$0xff] %v4394_v32  ;;  %v5594_v16 = vmax.f32 %v4412_v8, 0.0  ;;  %v1604_v42 = vadd.f32 %v1603_v2, %v1466_v0 }
 0x1b4   :  { %5708 = vst [vmem:[#allocation28_spill] sm:$0xff] %v4403_v44 }
 0x1b5   :  { %v595_v48 = vpop.f32.mrf.mxu3  ;;  %5709 = vst [vmem:[#allocation29_spill] sm:$0xff] %v4412_v8 }
 0x1b6   :  { %v3199_v5 = vpop.eup %3198  ;;  %v596_v49 = vadd.f32 %v4318_v29, %v595_v48  ;;  %v1796_v23 = vpop.f32.mrf.mxu2  ;;  %5710 = vst [vmem:[#allocation30_spill] sm:$0xff] %v4421_v30 }
 0x1b7   :  { %v654_v19 = vmul.f32 %v3199_v5, %v4343_v1  ;;  %v5590_v5 = vmax.f32 %v4394_v32, 0.0 }
 0x1b8   :  { %3200 = vtanh.f32 %v596_v49 }
 0x1b9   :  { %v676_v47 = vsel %vm5670_vm1, %v654_v19, 0.0 }
 0x1ba   :  { %677 = vadd.xlane.f32.xlu1 %v676_v47  ;;  %1965 = vmatmul.f32.gmra.mxu3 %v5588_v51  ;;  %v1606_v19 = vpop.f32.mrf.mxu1  ;;  %v1472_v10 = vpop.f32.mrf.mxu0 }
 0x1bb   :  { %v1607_v0 = vadd.f32 %v1606_v19, %v1469_v39 }
 0x1bd   :  { %v598_v48 = vpop.f32.mrf.mxu3 }
 0x1be   :  { %v3201_v46 = vpop.eup %3200  ;;  %v599_v53 = vadd.f32 %v4318_v29, %v598_v48  ;;  %v1799_v51 = vpop.f32.mrf.mxu2 }
 0x1bf   :  { %v655_v49 = vmul.f32 %v3201_v46, %v4343_v1  ;;  %v5592_v46 = vmax.f32 %v4403_v44, 0.0 }
 0x1c0   :  { %3202 = vtanh.f32 %v599_v53 }
 0x1c1   :  { %v679_v47 = vsel %vm5670_vm1, %v655_v49, 0.0 }
 0x1c2   :  { %680 = vadd.xlane.f32.xlu2 %v679_v47  ;;  %1968 = vmatmul.f32.gmra.mxu3 %v5590_v5  ;;  %v1609_v49 = vpop.f32.mrf.mxu1 }
 0x1c3   :  { %v1610_v39 = vadd.f32 %v1609_v49, %v1472_v10 }
 0x1c5   :  { %v601_v48 = vpop.f32.mrf.mxu3 }
 0x1c6   :  { %v3203_v41 = vpop.eup %3202  ;;  %v602_v38 = vadd.f32 %v4318_v29, %v601_v48  ;;  %v1802_v48 = vpop.f32.mrf.mxu2 }
 0x1c7   :  { %v656_v53 = vmul.f32 %v3203_v41, %v4343_v1 }
 0x1c8   :  { %3204 = vtanh.f32 %v602_v38 }
 0x1c9   :  { %v682_v47 = vsel %vm5670_vm1, %v656_v53, 0.0 }
 0x1ca   :  { %683 = vadd.xlane.f32.xlu2 %v682_v47  ;;  %1971 = vmatmul.f32.gmra.mxu3 %v5592_v46  ;;  %v1612_v24 = vpop.f32.mrf.mxu1  ;;  %v1475_v47 = vpop.f32.mrf.mxu0 }
 0x1cb   :  { %v1613_v10 = vadd.f32 %v1612_v24, %v1475_v47 }
 0x1cd   :  { %v604_v5 = vpop.f32.mrf.mxu3 }
 0x1ce   :  { %v3205_v22 = vpop.eup %3204  ;;  %v605_v41 = vadd.f32 %v4318_v29, %v604_v5  ;;  %v5596_v5 = vmax.f32 %v4421_v30, 0.0 }
 0x1cf   :  { %v657_v38 = vmul.f32 %v3205_v22, %v4343_v1  ;;  %v1848_v22 = vadd.f32 %v1796_v23, %v1604_v42 }
 0x1d0   :  { %3206 = vtanh.f32 %v605_v41  ;;  %v1805_v41 = vpop.f32.mrf.mxu2 }
 0x1d1   :  { %v685_v53 = vsel %vm5670_vm1, %v657_v38, 0.0  ;;  %v4430_v2 = vadd.f32 %v4284_v63, %v1848_v22 }
 0x1d2   :  { %686 = vadd.xlane.f32.xlu0 %v685_v53  ;;  %1974 = vmatmul.f32.gmra.mxu3 %v5594_v16  ;;  %v1615_v62 = vpop.f32.mrf.mxu1  ;;  %v1478_v16 = vpop.f32.mrf.mxu0 }
 0x1d3   :  { %5711 = vst [vmem:[#allocation31_spill] sm:$0xff] %v4430_v2  ;;  %v5597_v23 = vmax.f32 %v4430_v2, 0.0  ;;  %v1616_v47 = vadd.f32 %v1615_v62, %v1478_v16 }
 0x1d5   :  { %v607_v46 = vpop.f32.mrf.mxu3 }
 0x1d6   :  { %v3207_v6 = vpop.eup %3206  ;;  %v608_v33 = vadd.f32 %v4318_v29, %v607_v46  ;;  %v1849_v46 = vadd.f32 %v1799_v51, %v1607_v0  ;;  %v1850_v0 = vadd.f32 %v1802_v48, %v1610_v39 }
 0x1d7   :  { %v658_v11 = vmul.f32 %v3207_v6, %v4343_v1 }
 0x1d8   :  { %3208 = vtanh.f32 %v608_v33  ;;  %v4439_v19 = vadd.f32 %v4284_v63, %v1849_v46  ;;  %v4448_v49 = vadd.f32 %v4284_v63, %v1850_v0 }
 0x1d9   :  { %v688_v38 = vsel %vm5670_vm1, %v658_v11, 0.0  ;;  %v1808_v11 = vpop.f32.mrf.mxu2 }
 0x1da   :  { %689 = vadd.xlane.f32.xlu1 %v688_v38  ;;  %1977 = vmatmul.f32.gmra.mxu3 %v5596_v5  ;;  %5712 = vst [vmem:[#allocation32_spill] sm:$0xff] %v4439_v19  ;;  %v5598_v5 = vmax.f32 %v4439_v19, 0.0  ;;  %v5600_v48 = vmax.f32 %v4448_v49, 0.0 }
 0x1db   :  { %5713 = vst [vmem:[#allocation33_spill] sm:$0xff] %v4448_v49 }
 0x1dd   :  { %v610_v53 = vpop.f32.mrf.mxu3 }
 0x1de   :  { %v3209_v56 = vpop.eup %3208  ;;  %v611_v6 = vadd.f32 %v4318_v29, %v610_v53 }
 0x1df   :  { %v659_v42 = vmul.f32 %v3209_v56, %v4343_v1  ;;  %v1618_v56 = vpop.f32.mrf.mxu1 }
 0x1e0   :  { %3210 = vtanh.f32 %v611_v6  ;;  %v1481_v6 = vpop.f32.mrf.mxu0 }
 0x1e1   :  { %v691_v33 = vsel %vm5670_vm1, %v659_v42, 0.0  ;;  %v1811_v46 = vpop.f32.mrf.mxu2  ;;  %v1619_v16 = vadd.f32 %v1618_v56, %v1481_v6 }
 0x1e2   :  { %692 = vadd.xlane.f32.xlu2 %v691_v33  ;;  %1980 = vmatmul.f32.gmra.mxu3 %v5597_v23 }
 0x1e5   :  { %v613_v22 = vpop.f32.mrf.mxu3 }
 0x1e6   :  { %v3211_v38 = vpop.eup %3210  ;;  %v614_v51 = vadd.f32 %v4318_v29, %v613_v22  ;;  %v1851_v22 = vadd.f32 %v1805_v41, %v1613_v10  ;;  %v1852_v10 = vadd.f32 %v1808_v11, %v1616_v47 }
 0x1e7   :  { %v660_v53 = vmul.f32 %v3211_v38, %v4343_v1 }
 0x1e8   :  { %3212 = vtanh.f32 %v614_v51  ;;  %v1621_v51 = vpop.f32.mrf.mxu1  ;;  %v4457_v24 = vadd.f32 %v4284_v63, %v1851_v22  ;;  %v4466_v22 = vadd.f32 %v4284_v63, %v1852_v10 }
 0x1e9   :  { %v694_v42 = vsel %vm5670_vm1, %v660_v53, 0.0 }
 0x1ea   :  { %695 = vadd.xlane.f32.xlu0 %v694_v42  ;;  %1983 = vmatmul.f32.gmra.mxu3 %v5598_v5  ;;  %v1484_v42 = vpop.f32.mrf.mxu0  ;;  %5714 = vst [vmem:[#allocation34_spill] sm:$0xff] %v4457_v24  ;;  %v1814_v5 = vpop.f32.mrf.mxu2  ;;  %v5601_v41 = vmax.f32 %v4457_v24, 0.0 }
 0x1eb   :  { %5715 = vst [vmem:[#allocation35_spill] sm:$0xff] %v4466_v22  ;;  %v1622_v6 = vadd.f32 %v1621_v51, %v1484_v42 }
 0x1ed   :  { %v616_v33 = vpop.f32.mrf.mxu3 }
 0x1ee   :  { %v3213_v23 = vpop.eup %3212  ;;  %v617_v39 = vadd.f32 %v4318_v29, %v616_v33 }
 0x1ef   :  { %v661_v38 = vmul.f32 %v3213_v23, %v4343_v1 }
 0x1f0   :  { %3214 = vtanh.f32 %v617_v39  ;;  %v1624_v62 = vpop.f32.mrf.mxu1 }
 0x1f1   :  { %v697_v53 = vsel %vm5670_vm1, %v661_v38, 0.0 }
 0x1f2   :  { %698 = vadd.xlane.f32.xlu1 %v697_v53  ;;  %1986 = vmatmul.f32.gmra.mxu3 %v5600_v48  ;;  %v1487_v38 = vpop.f32.mrf.mxu0 }
 0x1f3   :  { %v1625_v42 = vadd.f32 %v1624_v62, %v1487_v38  ;;  %v4498_v38 = vld [vmem:[%s5572_s11] ss:$0 sm:$0xff] }
 0x1f5   :  { %v619_v0 = vpop.f32.mrf.mxu3 }
 0x1f6   :  { %v3215_v3 = vpop.eup %3214  ;;  %v620_v23 = vadd.f32 %v4318_v29, %v619_v0  ;;  %v5603_v0 = vmax.f32 %v4466_v22, 0.0 }
 0x1f7   :  { %v662_v33 = vmul.f32 %v3215_v3, %v4343_v1  ;;  %v1853_v3 = vadd.f32 %v1811_v46, %v1619_v16  ;;  %v1854_v16 = vadd.f32 %v1814_v5, %v1622_v6 }
 0x1f8   :  { %3216 = vtanh.f32 %v620_v23  ;;  %v1817_v23 = vpop.f32.mrf.mxu2  ;;  %v1627_v10 = vpop.f32.mrf.mxu1 }
 0x1f9   :  { %v700_v39 = vsel %vm5670_vm1, %v662_v33, 0.0  ;;  %v4475_v56 = vadd.f32 %v4284_v63, %v1853_v3  ;;  %v4484_v51 = vadd.f32 %v4284_v63, %v1854_v16  ;;  %v1855_v6 = vadd.f32 %v1817_v23, %v1625_v42 }
 0x1fa   :  { %701 = vadd.xlane.f32.xlu2 %v700_v39  ;;  %1989 = vmatmul.f32.gmra.mxu3 %v5601_v41  ;;  %v1490_v41 = vpop.f32.mrf.mxu0 }
 0x1fb   :  { %5716 = vst [vmem:[#allocation36_spill] sm:$0xff] %v4475_v56  ;;  %v5606_v46 = vmax.f32 %v4475_v56, 0.0  ;;  %v4493_v62 = vadd.f32 %v4284_v63, %v1855_v6 }
 0x1fc   :  { %5717 = vst [vmem:[#allocation37_spill] sm:$0xff] %v4484_v51 }
 0x1fd   :  { %v622_v53 = vpop.f32.mrf.mxu3  ;;  %5718 = vst [vmem:[#allocation38_spill] sm:$0xff] %v4493_v62  ;;  %v5604_v42 = vmax.f32 %v4493_v62, 0.0 }
 0x1fe   :  { %v3217_v48 = vpop.eup %3216  ;;  %v623_v11 = vadd.f32 %v4318_v29, %v622_v53 }
 0x1ff   :  { %v663_v47 = vmul.f32 %v3217_v48, %v4343_v1 }
 0x200   :  { %3218 = vtanh.f32 %v623_v11 }
 0x201   :  { %v703_v33 = vsel %vm5670_vm1, %v663_v47, 0.0  ;;  %v1820_v47 = vpop.f32.mrf.mxu2 }
 0x202   :  { %704 = vadd.xlane.f32.xlu0 %v703_v33  ;;  %1992 = vmatmul.f32.gmra.mxu3 %v5603_v0  ;;  %v5605_v0 = vmax.f32 %v4484_v51, 0.0 }
 0x205   :  { %v625_v39 = vpop.f32.mrf.mxu3 }
 0x206   :  { %v3219_v43 = vpop.eup %3218  ;;  %v626_v48 = vadd.f32 %v4318_v29, %v625_v39 }
 0x207   :  { %v664_v53 = vmul.f32 %v3219_v43, %v4343_v1  ;;  %v1630_v43 = vpop.f32.mrf.mxu1 }
 0x208   :  { %3220 = vtanh.f32 %v626_v48  ;;  %v1493_v48 = vpop.f32.mrf.mxu0 }
 0x209   :  { %v706_v11 = vsel %vm5670_vm1, %v664_v53, 0.0  ;;  %v1823_v23 = vpop.f32.mrf.mxu2 }
 0x20a   :  { %707 = vadd.xlane.f32.xlu1 %v706_v11  ;;  %1995 = vmatmul.f32.gmra.mxu3 %v5606_v46 }
 0x20d   :  { %v628_v3 = vpop.f32.mrf.mxu3 }
 0x20e   :  { %v3221_v33 = vpop.eup %3220  ;;  %v629_v5 = vadd.f32 %v4318_v29, %v628_v3  ;;  %v1628_v29 = vadd.f32 %v1627_v10, %v1490_v41  ;;  %v1631_v10 = vadd.f32 %v1630_v43, %v1493_v48 }
 0x20f   :  { %v665_v39 = vmul.f32 %v3221_v33, %v4343_v1 }
 0x210   :  { %3222 = vtanh.f32 %v629_v5  ;;  %v1856_v33 = vadd.f32 %v1820_v47, %v1628_v29 }
 0x211   :  { %v709_v53 = vsel %vm5670_vm1, %v665_v39, 0.0  ;;  %v1633_v39 = vpop.f32.mrf.mxu1 }
 0x212   :  { %710 = vadd.xlane.f32.xlu2 %v709_v53  ;;  %1998 = vmatmul.f32.gmra.mxu3 %v5605_v0  ;;  %v1496_v53 = vpop.f32.mrf.mxu0  ;;  %v4507_v41 = vadd.f32 %v4284_v63, %v1856_v33 }
 0x213   :  { %v1634_v48 = vadd.f32 %v1633_v39, %v1496_v53 }
 0x214   :  { %5719 = vst [vmem:[#allocation39_spill] sm:$0xff] %v4507_v41 }
 0x215   :  { %v1951_v16 = vpop.f32.mrf.mxu3 }
 0x216   :  { %v3223_v11 = vpop.eup %3222  ;;  %v1952_v3 = vadd.f32 %v4498_v38, %v1951_v16  ;;  %v4512_v16 = vld [vmem:[%s5573_s12] ss:$0 sm:$0xff] }
 0x217   :  { %v666_v5 = vmul.f32 %v3223_v11, %v4343_v1  ;;  %v1826_v1 = vpop.f32.mrf.mxu2  ;;  %v5608_v11 = vmax.f32 %v4507_v41, 0.0 }
 0x218   :  { %3224 = vtanh.f32 %v1952_v3 }
 0x219   :  { %v712_v6 = vsel %vm5670_vm1, %v666_v5, 0.0  ;;  %v1857_v5 = vadd.f32 %v1823_v23, %v1631_v10  ;;  %v1858_v10 = vadd.f32 %v1826_v1, %v1634_v48 }
 0x21a   :  { %2001 = vmatmul.f32.gmra.mxu3 %v5604_v42  ;;  %713 = vadd.xlane.f32.xlu0 %v712_v6  ;;  %v1636_v6 = vpop.f32.mrf.mxu1  ;;  %v1499_v0 = vpop.f32.mrf.mxu0 }
 0x21b   :  { %v4521_v43 = vadd.f32 %v4284_v63, %v1857_v5  ;;  %v4530_v39 = vadd.f32 %v4284_v63, %v1858_v10  ;;  %v1637_v53 = vadd.f32 %v1636_v6, %v1499_v0 }
 0x21d   :  { %v1954_v47 = vpop.f32.mrf.mxu3  ;;  %5720 = vst [vmem:[#allocation40_spill] sm:$0xff] %v4521_v43 }
 0x21e   :  { %v3225_v29 = vpop.eup %3224  ;;  %v1955_v3 = vadd.f32 %v4498_v38, %v1954_v47  ;;  %v5610_v47 = vmax.f32 %v4521_v43, 0.0  ;;  %5721 = vst [vmem:[#allocation41_spill] sm:$0xff] %v4530_v39 }
 0x21f   :  { %v2051_v42 = vmul.f32 %v3225_v29, %v4512_v16 }
 0x220   :  { %3226 = vtanh.f32 %v1955_v3 }
 0x221   :  { %v2075_v33 = vsel %vm5670_vm1, %v2051_v42, 0.0  ;;  %v1829_v42 = vpop.f32.mrf.mxu2 }
 0x222   :  { %2004 = vmatmul.f32.gmra.mxu3 %v5608_v11  ;;  %2076 = vadd.xlane.f32.xlu2 %v2075_v33  ;;  %v1639_v5 = vpop.f32.mrf.mxu1  ;;  %v1502_v11 = vpop.f32.mrf.mxu0  ;;  %v1859_v1 = vadd.f32 %v1829_v42, %v1637_v53 }
 0x223   :  { %v1640_v6 = vadd.f32 %v1639_v5, %v1502_v11 }
 0x224   :  { %v4539_v0 = vadd.f32 %v4284_v63, %v1859_v1 }
 0x225   :  { %v1957_v46 = vpop.f32.mrf.mxu3 }
 0x226   :  { %v3227_v13 = vpop.eup %3226  ;;  %v1958_v23 = vadd.f32 %v4498_v38, %v1957_v46  ;;  %v5611_v46 = vmax.f32 %v4530_v39, 0.0  ;;  %5722 = vst [vmem:[#allocation42_spill] sm:$0xff] %v4539_v0 }
 0x227   :  { %v2052_v29 = vmul.f32 %v3227_v13, %v4512_v16 }
 0x228   :  { %3228 = vtanh.f32 %v1958_v23 }
 0x229   :  { %v2078_v3 = vsel %vm5670_vm1, %v2052_v29, 0.0  ;;  %v1832_v29 = vpop.f32.mrf.mxu2 }
 0x22a   :  { %2007 = vmatmul.f32.gmra.mxu3 %v5610_v47  ;;  %2079 = vadd.xlane.f32.xlu0 %v2078_v3  ;;  %v5614_v47 = vmax.f32 %v4539_v0, 0.0  ;;  %v1860_v53 = vadd.f32 %v1832_v29, %v1640_v6 }
 0x22c   :  { %v4548_v1 = vadd.f32 %v4284_v63, %v1860_v53 }
 0x22d   :  { %v1960_v33 = vpop.f32.mrf.mxu3 }
 0x22e   :  { %v3229_v34 = vpop.eup %3228  ;;  %v1961_v13 = vadd.f32 %v4498_v38, %v1960_v33  ;;  %v1505_v33 = vpop.f32.mrf.mxu0  ;;  %5723 = vst [vmem:[#allocation43_spill] sm:$0xff] %v4548_v1  ;;  %v5613_v29 = vmax.f32 %v4548_v1, 0.0 }
 0x22f   :  { %v2053_v48 = vmul.f32 %v3229_v34, %v4512_v16 }
 0x230   :  { %3230 = vtanh.f32 %v1961_v13  ;;  %v1642_v13 = vpop.f32.mrf.mxu1 }
 0x231   :  { %v2081_v23 = vsel %vm5670_vm1, %v2053_v48, 0.0  ;;  %v1643_v11 = vadd.f32 %v1642_v13, %v1505_v33  ;;  %v1835_v5 = vpop.f32.mrf.mxu2 }
 0x232   :  { %2010 = vmatmul.f32.gmra.mxu3 %v5611_v46  ;;  %2082 = vadd.xlane.f32.xlu1 %v2081_v23 }
 0x235   :  { %v1963_v10 = vpop.f32.mrf.mxu3 }
 0x236   :  { %v3231_v3 = vpop.eup %3230  ;;  %v1964_v42 = vadd.f32 %v4498_v38, %v1963_v10  ;;  %v1861_v10 = vadd.f32 %v1835_v5, %v1643_v11 }
 0x237   :  { %v2054_v34 = vmul.f32 %v3231_v3, %v4512_v16 }
 0x238   :  { %3232 = vtanh.f32 %v1964_v42  ;;  %v4557_v53 = vadd.f32 %v4284_v63, %v1861_v10 }
 0x239   :  { %v2084_v48 = vsel %vm5670_vm1, %v2054_v34, 0.0 }
 0x23a   :  { %2013 = vmatmul.f32.gmra.mxu3 %v5614_v47  ;;  %2085 = vadd.xlane.f32.xlu1 %v2084_v48  ;;  %5724 = vst [vmem:[#allocation44_spill] sm:$0xff] %v4557_v53  ;;  %v5612_v13 = vmax.f32 %v4557_v53, 0.0 }
 0x23d   :  { %v1966_v23 = vpop.f32.mrf.mxu3 }
 0x23e   :  { %v3233_v46 = vpop.eup %3232  ;;  %v1967_v6 = vadd.f32 %v4498_v38, %v1966_v23 }
 0x23f   :  { %v2055_v3 = vmul.f32 %v3233_v46, %v4512_v16 }
 0x240   :  { %3234 = vtanh.f32 %v1967_v6 }
 0x241   :  { %v2087_v42 = vsel %vm5670_vm1, %v2055_v3, 0.0 }
 0x242   :  { %2016 = vmatmul.f32.gmra.mxu3 %v5613_v29  ;;  %2088 = vadd.xlane.f32.xlu2 %v2087_v42 }
 0x245   :  { %v1969_v34 = vpop.f32.mrf.mxu3 }
 0x246   :  { %v3235_v33 = vpop.eup %3234  ;;  %v1970_v48 = vadd.f32 %v4498_v38, %v1969_v34 }
 0x247   :  { %v2056_v11 = vmul.f32 %v3235_v33, %v4512_v16 }
 0x248   :  { %3236 = vtanh.f32 %v1970_v48 }
 0x249   :  { %v2090_v46 = vsel %vm5670_vm1, %v2056_v11, 0.0 }
 0x24a   :  { %2019 = vmatmul.f32.gmra.mxu3 %v5612_v13  ;;  %2091 = vadd.xlane.f32.xlu2 %v2090_v46 }
 0x24d   :  { %v1972_v5 = vpop.f32.mrf.mxu3 }
 0x24e   :  { %v3237_v23 = vpop.eup %3236  ;;  %v1973_v63 = vadd.f32 %v4498_v38, %v1972_v5 }
 0x24f   :  { %v2057_v6 = vmul.f32 %v3237_v23, %v4512_v16 }
 0x250   :  { %3238 = vtanh.f32 %v1973_v63 }
 0x251   :  { %v2093_v10 = vsel %vm5670_vm1, %v2057_v6, 0.0  ;;  %v4574_v6 = vpop.xlane.xlu0 %668 }
 0x252   :  { %2094 = vadd.xlane.f32.xlu0 %v2093_v10  ;;  %v4576_v10 = vpop.xlane.xlu1 %674 }
 0x255   :  { %v1975_v3 = vpop.f32.mrf.mxu3 }
 0x256   :  { %v3239_v42 = vpop.eup %3238  ;;  %v1976_v34 = vadd.f32 %v4498_v38, %v1975_v3 }
 0x257   :  { %v2058_v33 = vmul.f32 %v3239_v42, %v4512_v16 }
 0x258   :  { %3240 = vtanh.f32 %v1976_v34 }
 0x259   :  { %v2096_v48 = vsel %vm5670_vm1, %v2058_v33, 0.0 }
 0x25a   :  { %2097 = vadd.xlane.f32.xlu1 %v2096_v48  ;;  %v4580_v48 = vpop.xlane.xlu2 %680 }
 0x25d   :  { %v1978_v11 = vpop.f32.mrf.mxu3 }
 0x25e   :  { %v3241_v46 = vpop.eup %3240  ;;  %v1979_v5 = vadd.f32 %v4498_v38, %v1978_v11 }
 0x25f   :  { %v2059_v23 = vmul.f32 %v3241_v46, %v4512_v16  ;;  %v4583_v46 = vpop.xlane.xlu0 %671 }
 0x260   :  { %3242 = vtanh.f32 %v1979_v5 }
 0x261   :  { %v2099_v63 = vsel %vm5670_vm1, %v2059_v23, 0.0 }
 0x262   :  { %2100 = vadd.xlane.f32.xlu2 %v2099_v63  ;;  %v4585_v63 = vpop.xlane.xlu1 %677 }
 0x265   :  { %v1981_v3 = vpop.f32.mrf.mxu3 }
 0x266   :  { %v3243_v42 = vpop.eup %3242  ;;  %v1982_v34 = vadd.f32 %v4498_v38, %v1981_v3 }
 0x267   :  { %v2060_v33 = vmul.f32 %v3243_v42, %v4512_v16  ;;  %v4590_v42 = vpop.xlane.xlu2 %683 }
 0x268   :  { %3244 = vtanh.f32 %v1982_v34  ;;  %v4592_v34 = vpop.xlane.xlu0 %686 }
 0x269   :  { %v2102_v11 = vsel %vm5670_vm1, %v2060_v33, 0.0 }
 0x26a   :  { %2103 = vadd.xlane.f32.xlu0 %v2102_v11  ;;  %v4594_v47 = vpop.xlane.xlu1 %689 }
 0x26d   :  { %v1984_v5 = vpop.f32.mrf.mxu3 }
 0x26e   :  { %v3245_v23 = vpop.eup %3244  ;;  %v1985_v13 = vadd.f32 %v4498_v38, %v1984_v5  ;;  %v731_v5 = vlaneseq }
 0x26f   :  { %v2061_v29 = vmul.f32 %v3245_v23, %v4512_v16 }
 0x270   :  { %3246 = vtanh.f32 %v1985_v13  ;;  %v4599_v13 = vpop.xlane.xlu2 %692 }
 0x271   :  { %v2105_v3 = vsel %vm5670_vm1, %v2061_v29, 0.0  ;;  %v4601_v29 = vand.u32 127, %v731_v5 }
 0x272   :  { %2106 = vadd.xlane.f32.xlu1 %v2105_v3  ;;  %v4603_v3 = vpop.xlane.xlu0 %695  ;;  %v4605_v31 = vpop.xlane.xlu1 %698 }
 0x273   :  { %v733_v40 = vperm.slane %v4574_v6, %v4601_v29  ;;  %v741_v1 = vperm.slane %v4580_v48, %v4601_v29  ;;  %v744_v22 = vperm.slane %v4592_v34, %v4601_v29  ;;  %v747_v56 = vperm.slane %v4599_v13, %v4601_v29 }
 0x274   :  { %v4817_v44 = vadd.s32 4294967280, %v4601_v29 }
 0x275   :  { %v1987_v33 = vpop.f32.mrf.mxu3 }
 0x276   :  { %v3247_v11 = vpop.eup %3246  ;;  %v1988_v52 = vadd.f32 %v4498_v38, %v1987_v33  ;;  %v4609_v33 = vadd.s32 4294967288, %v4601_v29  ;;  %5727 = vst [vmem:[#allocation46_spill] sm:$0xff] %v4817_v44 }
 0x277   :  { %v2062_v14 = vmul.f32 %v3247_v11, %v4512_v16 }
 0x278   :  { %3248 = vtanh.f32 %v1988_v52  ;;  %v735_v11 = vperm.slane %v4583_v46, %v4609_v33  ;;  %v739_v5 = vperm.slane %v4585_v63, %v4609_v33  ;;  %v748_v0 = vperm.slane %v4603_v3, %v4609_v33 }
 0x279   :  { %v2108_v23 = vsel %vm5670_vm1, %v2062_v14, 0.0 }
 0x27a   :  { %2109 = vadd.xlane.f32.xlu2 %v2108_v23  ;;  %v4617_v23 = vpop.xlane.xlu2 %701  ;;  %v737_v41 = vsel %vm736_vm3, %v735_v11, %v733_v40 }
 0x27b   :  { %v751_v19 = vperm.slane %v4617_v23, %v4609_v33 }
 0x27d   :  { %v1990_v60 = vpop.f32.mrf.mxu3  ;;  %v4633_v39 = vpop.xlane.xlu1 %707 }
 0x27e   :  { %v3249_v7 = vpop.eup %3248  ;;  %v1991_v17 = vadd.f32 %v4498_v38, %v1990_v60  ;;  %v742_v60 = vperm.slane %v4590_v42, %v4609_v33  ;;  %v754_v40 = vperm.slane %v4633_v39, %v4609_v33 }
 0x27f   :  { %v2063_v52 = vmul.f32 %v3249_v7, %v4512_v16  ;;  %v738_v7 = vperm.slane %v4576_v10, %v4601_v29 }
 0x280   :  { %3250 = vtanh.f32 %v1991_v17  ;;  %v745_v17 = vperm.slane %v4594_v47, %v4609_v33  ;;  %v743_v51 = vsel %vm736_vm3, %v742_v60, %v741_v1  ;;  %v750_v1 = vperm.slane %v4605_v31, %v4601_v29 }
 0x281   :  { %v2111_v14 = vsel %vm5670_vm1, %v2063_v52, 0.0  ;;  %v4627_v52 = vpop.xlane.xlu0 %704  ;;  %v740_v62 = vsel %vm736_vm3, %v739_v5, %v738_v7 }
 0x282   :  { %2112 = vadd.xlane.f32.xlu0 %v2111_v14  ;;  %v760_v5 = vsel %vm759_vm4, %v740_v62, %v737_v41 }
 0x283   :  { %v762_v60 = vsel %vm761_vm5, %v743_v51, %v760_v5 }
 0x285   :  { %v1993_v14 = vpop.f32.mrf.mxu3 }
 0x286   :  { %v3251_v53 = vpop.eup %3250  ;;  %v1994_v43 = vadd.f32 %v4498_v38, %v1993_v14  ;;  %v746_v14 = vsel %vm736_vm3, %v745_v17, %v744_v22  ;;  %v4657_v22 = vpop.xlane.xlu2 %710 }
 0x287   :  { %v2064_v8 = vmul.f32 %v3251_v53, %v4512_v16  ;;  %v749_v53 = vsel %vm736_vm3, %v748_v0, %v747_v56  ;;  %v764_v7 = vsel %vm763_vm6, %v746_v14, %v762_v60  ;;  %v756_v51 = vperm.slane %v4657_v22, %v4601_v29 }
 0x288   :  { %3252 = vtanh.f32 %v1994_v43  ;;  %v753_v43 = vperm.slane %v4627_v52, %v4601_v29  ;;  %v766_v0 = vsel %vm765_vm7, %v749_v53, %v764_v7 }
 0x289   :  { %v2114_v11 = vsel %vm5670_vm1, %v2064_v8, 0.0  ;;  %v752_v8 = vsel %vm736_vm3, %v751_v19, %v750_v1 }
 0x28a   :  { %2115 = vadd.xlane.f32.xlu1 %v2114_v11  ;;  %v755_v56 = vsel %vm736_vm3, %v754_v40, %v753_v43  ;;  %v768_v5 = vsel %vm767_vm8, %v752_v8, %v766_v0 }
 0x28b   :  { %v770_v53 = vsel %vm5677_vm9, %v755_v56, %v768_v5 }
 0x28d   :  { %v1996_v62 = vpop.f32.mrf.mxu3  ;;  %v4661_v41 = vpop.xlane.xlu0 %713 }
 0x28e   :  { %v3253_v17 = vpop.eup %3252  ;;  %v1997_v11 = vadd.f32 %v4498_v38, %v1996_v62  ;;  %v757_v14 = vperm.slane %v4661_v41, %v4609_v33 }
 0x28f   :  { %v2065_v19 = vmul.f32 %v3253_v17, %v4512_v16 }
 0x290   :  { %3254 = vtanh.f32 %v1997_v11  ;;  %v758_v40 = vsel %vm736_vm3, %v757_v14, %v756_v51 }
 0x291   :  { %v2117_v1 = vsel %vm5670_vm1, %v2065_v19, 0.0  ;;  %v772_v60 = vsel %vm5676_vm10, %v758_v40, %v770_v53 }
 0x292   :  { %2118 = vadd.xlane.f32.xlu2 %v2117_v1  ;;  %v775_v43 = vsel %vm774_vm11, %v772_v60, -inf }
 0x293   :  { %776 = vmax.xlane.f32.xlu1 %v775_v43 }
 0x295   :  { %v1999_v7 = vpop.f32.mrf.mxu3 }
 0x296   :  { %v3255_v62 = vpop.eup %3254  ;;  %v2000_v17 = vadd.f32 %v4498_v38, %v1999_v7 }
 0x297   :  { %v2066_v8 = vmul.f32 %v3255_v62, %v4512_v16 }
 0x298   :  { %3256 = vtanh.f32 %v2000_v17 }
 0x299   :  { %v2120_v0 = vsel %vm5670_vm1, %v2066_v8, 0.0 }
 0x29a   :  { %2121 = vadd.xlane.f32.xlu0 %v2120_v0 }
 0x29d   :  { %v2002_v51 = vpop.f32.mrf.mxu3 }
 0x29e   :  { %v3257_v56 = vpop.eup %3256  ;;  %v2003_v11 = vadd.f32 %v4498_v38, %v2002_v51 }
 0x29f   :  { %v2067_v14 = vmul.f32 %v3257_v56, %v4512_v16 }
 0x2a0   :  { %3258 = vtanh.f32 %v2003_v11 }
 0x2a1   :  { %v2123_v19 = vsel %vm5670_vm1, %v2067_v14, 0.0 }
 0x2a2   :  { %2124 = vadd.xlane.f32.xlu1 %v2123_v19 }
 0x2a5   :  { %v2005_v5 = vpop.f32.mrf.mxu3 }
 0x2a6   :  { %v3259_v40 = vpop.eup %3258  ;;  %v2006_v53 = vadd.f32 %v4498_v38, %v2005_v5 }
 0x2a7   :  { %v2068_v1 = vmul.f32 %v3259_v40, %v4512_v16 }
 0x2a8   :  { %3260 = vtanh.f32 %v2006_v53 }
 0x2a9   :  { %v2126_v60 = vsel %vm5670_vm1, %v2068_v1, 0.0 }
 0x2aa   :  { %2127 = vadd.xlane.f32.xlu2 %v2126_v60 }
 0x2ad   :  { %v2008_v43 = vpop.f32.mrf.mxu3 }
 0x2ae   :  { %v3261_v7 = vpop.eup %3260  ;;  %v2009_v62 = vadd.f32 %v4498_v38, %v2008_v43 }
 0x2af   :  { %v2069_v17 = vmul.f32 %v3261_v7, %v4512_v16 }
 0x2b0   :  { %3262 = vtanh.f32 %v2009_v62 }
 0x2b1   :  { %v2129_v8 = vsel %vm5670_vm1, %v2069_v17, 0.0 }
 0x2b2   :  { %2130 = vadd.xlane.f32.xlu0 %v2129_v8 }
 0x2b5   :  { %v2011_v0 = vpop.f32.mrf.mxu3 }
 0x2b6   :  { %v3263_v51 = vpop.eup %3262  ;;  %v2012_v56 = vadd.f32 %v4498_v38, %v2011_v0 }
 0x2b7   :  { %v2070_v11 = vmul.f32 %v3263_v51, %v4512_v16 }
 0x2b8   :  { %3264 = vtanh.f32 %v2012_v56 }
 0x2b9   :  { %v2132_v14 = vsel %vm5670_vm1, %v2070_v11, 0.0 }
 0x2ba   :  { %2133 = vadd.xlane.f32.xlu1 %v2132_v14 }
 0x2bd   :  { %v2014_v19 = vpop.f32.mrf.mxu3 }
 0x2be   :  { %v3265_v5 = vpop.eup %3264  ;;  %v2015_v40 = vadd.f32 %v4498_v38, %v2014_v19 }
 0x2bf   :  { %v2071_v53 = vmul.f32 %v3265_v5, %v4512_v16 }
 0x2c0   :  { %3266 = vtanh.f32 %v2015_v40  ;;  %v4703_v40 = vpop.xlane.xlu1 %2082 }
 0x2c1   :  { %v2135_v1 = vsel %vm5670_vm1, %v2071_v53, 0.0  ;;  %v2175_v9 = vperm.slane %v4703_v40, %v4817_v44 }
 0x2c2   :  { %2136 = vadd.xlane.f32.xlu2 %v2135_v1 }
 0x2c5   :  { %v2017_v60 = vpop.f32.mrf.mxu3 }
 0x2c6   :  { %v3267_v43 = vpop.eup %3266  ;;  %v2018_v7 = vadd.f32 %v4498_v38, %v2017_v60  ;;  %v3428_v60 = vmov 0  }
 0x2c7   :  { %v2072_v62 = vmul.f32 %v3267_v43, %v4512_v16  ;;  %3183 = vset.pattern.permute.xlu1 %v3428_v60  ;;  %3182 = vset.pattern.permute.xlu0 %v3428_v60 }
 0x2c8   :  { %3268 = vtanh.f32 %v2018_v7  ;;  %v4705_v53 = vpop.xlane.xlu1 %2085  ;;  %3181 = vset.pattern.permute.xlu2 %v3428_v60 }
 0x2c9   :  { %v2138_v17 = vsel %vm5670_vm1, %v2072_v62, 0.0  ;;  %v2178_v54 = vperm.slane %v4705_v53, %v4601_v29 }
 0x2ca   :  { %2139 = vadd.xlane.f32.xlu0 %v2138_v17 }
 0x2cd   :  { %v2020_v8 = vpop.f32.mrf.mxu3 }
 0x2ce   :  { %v3269_v0 = vpop.eup %3268  ;;  %v2021_v51 = vadd.f32 %v4498_v38, %v2020_v8 }
 0x2cf   :  { %v2073_v56 = vmul.f32 %v3269_v0, %v4512_v16 }
 0x2d0   :  { %3270 = vtanh.f32 %v2021_v51  ;;  %v4707_v1 = vpop.xlane.xlu1 %2097 }
 0x2d1   :  { %v2141_v11 = vsel %vm5670_vm1, %v2073_v56, 0.0  ;;  %v2184_v4 = vperm.slane %v4707_v1, %v4609_v33 }
 0x2d2   :  { %2142 = vadd.xlane.f32.xlu1 %v2141_v11  ;;  %v4722_v11 = vpop.xlane.xlu2 %2076 }
 0x2d6   :  { %v3271_v14 = vpop.eup %3270 }
 0x2d7   :  { %v2074_v19 = vmul.f32 %v3271_v14, %v4512_v16 }
 0x2d9   :  { %v2144_v5 = vsel %vm5670_vm1, %v2074_v19, 0.0 }
 0x2da   :  { %2145 = vadd.xlane.f32.xlu2 %v2144_v5 }
 0x2e5   :  { %v4709_v38 = vpop.xlane.xlu1 %2106 }
 0x2e6   :  { %v2189_v55 = vperm.slane %v4709_v38, %v4609_v33 }
 0x2fd   :  { %v4711_v43 = vpop.xlane.xlu1 %2115 }
 0x2fe   :  { %v2194_v27 = vperm.slane %v4711_v43, %v4609_v33 }
 0x306   :  { %v4713_v7 = vpop.xlane.xlu1 %776 }
 0x307   :  { %v780_v16 = vperm.slane %v4713_v7, 1  ;;  %v779_v62 = vperm.slane %v4713_v7, 0  ;;  %v781_v51 = vperm.slane %v4713_v7, 2  ;;  %v5636_v56 = vperm.slane %v4713_v7, 4 }
 0x308   :  { %v784_v28 = vperm.slane %v4713_v7, 5 }
 0x309   :  { %v797_v17 = vsub.f32 %v4576_v10, %v780_v16  ;;  %v796_v8 = vsub.f32 %v4583_v46, %v779_v62  ;;  %v795_v0 = vsub.f32 %v4574_v6, %v779_v62  ;;  %v800_v60 = vsub.f32 %v4590_v42, %v781_v51 }
 0x30a   :  { %v803_v10 = vsub.f32 %v4599_v13, %v5636_v56  ;;  %v798_v6 = vsub.f32 %v4585_v63, %v780_v16  ;;  %v782_v62 = vperm.slane %v4713_v7, 3  ;;  %v806_v13 = vsub.f32 %v4617_v23, %v784_v28 }
 0x30b   :  { %v815_v14 = vmul.f32 1.442695, %v797_v17  ;;  %v813_v19 = vmul.f32 1.442695, %v796_v8  ;;  %v811_v5 = vmul.f32 1.442695, %v795_v0  ;;  %v4733_v8 = vpop.xlane.xlu2 %2088  ;;  %v799_v16 = vsub.f32 %v4580_v48, %v781_v51 }
 0x30c   :  { %v821_v46 = vmul.f32 1.442695, %v800_v60  ;;  %v827_v49 = vmul.f32 1.442695, %v803_v10  ;;  %v817_v0 = vmul.f32 1.442695, %v798_v6  ;;  %v802_v63 = vsub.f32 %v4594_v47, %v782_v62 }
 0x30d   :  { %3272 = vpow2.f32 %v815_v14  ;;  %v833_v60 = vmul.f32 1.442695, %v806_v13  ;;  %v786_v10 = vperm.slane %v4713_v7, 7  ;;  %v819_v56 = vmul.f32 1.442695, %v799_v16 }
 0x30e   :  { %3274 = vpow2.f32 %v813_v19  ;;  %v825_v19 = vmul.f32 1.442695, %v802_v63  ;;  %v805_v48 = vsub.f32 %v4605_v31, %v784_v28  ;;  %v801_v51 = vsub.f32 %v4592_v34, %v782_v62 }
 0x30f   :  { %3276 = vpow2.f32 %v811_v5  ;;  %v4745_v5 = vpop.xlane.xlu0 %2079  ;;  %v809_v23 = vsub.f32 %v4657_v22, %v786_v10  ;;  %v785_v63 = vperm.slane %v4713_v7, 6  ;;  %v5725_v22 = vperm.slane %v4713_v7, 4 }
 0x310   :  { %3278 = vpow2.f32 %v821_v46  ;;  %v823_v30 = vmul.f32 1.442695, %v801_v51 }
 0x311   :  { %3280 = vpow2.f32 %v827_v49  ;;  %v839_v16 = vmul.f32 1.442695, %v809_v23  ;;  %v808_v34 = vsub.f32 %v4633_v39, %v785_v63 }
 0x312   :  { %3282 = vpow2.f32 %v817_v0  ;;  %v831_v0 = vmul.f32 1.442695, %v805_v48 }
 0x313   :  { %v4731_v17 = vpop.eup %3272  ;;  %v4755_v49 = vpop.xlane.xlu2 %2091  ;;  %3284 = vpow2.f32 %v825_v19  ;;  %v837_v62 = vmul.f32 1.442695, %v808_v34 }
 0x314   :  { %v4735_v42 = vpop.eup %3274  ;;  %866 = vperm.xlu1 %3183, %v4731_v17   ;;  %3286 = vpow2.f32 %v833_v60 }
 0x315   :  { %v4738_v14 = vpop.eup %3276  ;;  %863 = vperm.xlu0 %3182, %v4735_v42   ;;  %3288 = vpow2.f32 %v819_v56  ;;  %v804_v56 = vsub.f32 %v4603_v3, %v5725_v22 }
 0x316   :  { %860 = vperm.xlu2 %3181, %v4738_v14   ;;  %v4748_v6 = vpop.eup %3278  ;;  %3290 = vpow2.f32 %v831_v0 }
 0x317   :  { %v4750_v46 = vpop.eup %3280  ;;  %v4763_v13 = vpop.xlane.xlu0 %2094  ;;  %3292 = vpow2.f32 %v839_v16  ;;  %v829_v23 = vmul.f32 1.442695, %v804_v56  ;;  %v810_v56 = vsub.f32 %v4661_v41, %v786_v10  ;;  %v2172_v41 = vperm.slane %v4745_v5, %v4609_v33 }
 0x318   :  { %v4753_v47 = vpop.eup %3282  ;;  %3294 = vpow2.f32 %v823_v30  ;;  %v807_v30 = vsub.f32 %v4627_v52, %v785_v63  ;;  %v2179_v10 = vperm.slane %v4733_v8, %v4609_v33  ;;  %v2183_v18 = vperm.slane %v4763_v13, %v4601_v29 }
 0x319   :  { %v4765_v32 = vpop.eup %3284  ;;  %3296 = vpow2.f32 %v837_v62  ;;  %v4805_v62 = vpop.xlane.xlu1 %2124  ;;  %v841_v52 = vmul.f32 1.442695, %v810_v56  ;;  %v2181_v56 = vperm.slane %v4755_v49, %v4817_v44 }
 0x31a   :  { %v4767_v19 = vpop.eup %3286  ;;  %3298 = vpow2.f32 %v829_v23  ;;  %v835_v16 = vmul.f32 1.442695, %v807_v30  ;;  %v2180_v20 = vsel %vm736_vm3, %v2179_v10, %v2178_v54  ;;  %v2185_v54 = vsel %vm736_vm3, %v2184_v4, %v2183_v18 }
 0x31b   :  { %v4770_v31 = vpop.eup %3288  ;;  %v4772_v28 = vpop.xlane.xlu2 %2100  ;;  %v2182_v26 = vsel %vm2176_vm12, %v2181_v56, %v2180_v20  ;;  %v2199_v15 = vperm.slane %v4805_v62, %v4609_v33 }
 0x31c   :  { %875 = vperm.xlu1 %3183, %v4748_v6   ;;  %v4782_v48 = vpop.eup %3290  ;;  %3300 = vpow2.f32 %v835_v16  ;;  %v2186_v61 = vperm.slane %v4772_v28, %v4817_v44 }
 0x31d   :  { %884 = vperm.xlu0 %3182, %v4750_v46   ;;  %v4784_v51 = vpop.eup %3292  ;;  %3302 = vpow2.f32 %v841_v52  ;;  %v2171_v52 = vperm.slane %v4722_v11, %v4601_v29 }
 0x31e   :  { %869 = vperm.xlu2 %3181, %v4753_v47   ;;  %5726 = vst [vmem:[#allocation45_spill] sm:$0xff] %v4784_v51  ;;  %v4787_v0 = vpop.eup %3294  ;;  %v2187_v20 = vsel %vm2176_vm12, %v2186_v61, %v2185_v54 }
 0x31f   :  { %v4780_v60 = vpop.xlane.xlu0 %2103  ;;  %v4796_v7 = vpop.eup %3296  ;;  %v2173_v35 = vsel %vm736_vm3, %v2172_v41, %v2171_v52 }
 0x320   :  { %v4799_v34 = vpop.eup %3298  ;;  %v2188_v10 = vperm.slane %v4780_v60, %v4601_v29  ;;  %v2177_v54 = vsel %vm2176_vm12, %v2175_v9, %v2173_v35 }
 0x322   :  { %v4809_v63 = vpop.eup %3300  ;;  %v2190_v50 = vsel %vm736_vm3, %v2189_v55, %v2188_v10  ;;  %v2213_v55 = vsel %vm759_vm4, %v2182_v26, %v2177_v54 }
 0x323   :  { %v4789_v39 = vpop.xlane.xlu2 %2109  ;;  %v4827_v2 = vpop.eup %3302  ;;  %v2214_v9 = vsel %vm761_vm5, %v2187_v20, %v2213_v55 }
 0x324   :  { %881 = vperm.xlu1 %3183, %v4765_v32   ;;  %5728 = vst [vmem:[#allocation47_spill] sm:$0xff] %v4827_v2  ;;  %v2191_v37 = vperm.slane %v4789_v39, %v4817_v44 }
 0x325   :  { %893 = vperm.xlu0 %3182, %v4767_v19  }
 0x326   :  { %872 = vperm.xlu2 %3181, %v4770_v31   ;;  %v2192_v59 = vsel %vm2176_vm12, %v2191_v37, %v2190_v50 }
 0x327   :  { %v4794_v3 = vpop.xlane.xlu0 %2112  ;;  %v2215_v26 = vsel %vm763_vm6, %v2192_v59, %v2214_v9 }
 0x328   :  { %v2193_v56 = vperm.slane %v4794_v3, %v4601_v29 }
 0x32a   :  { %v2195_v21 = vsel %vm736_vm3, %v2194_v27, %v2193_v56 }
 0x32b   :  { %v4801_v22 = vpop.xlane.xlu2 %2118 }
 0x32c   :  { %890 = vperm.xlu1 %3183, %v4782_v48   ;;  %v2196_v52 = vperm.slane %v4801_v22, %v4817_v44 }
 0x32d   :  { %902 = vperm.xlu0 %3182, %v4784_v51   ;;  %v4814_v30 = vpop.xlane.xlu1 %2133 }
 0x32e   :  { %878 = vperm.xlu2 %3181, %v4787_v0   ;;  %v2204_v18 = vperm.slane %v4814_v30, %v4609_v33  ;;  %v2197_v10 = vsel %vm2176_vm12, %v2196_v52, %v2195_v21 }
 0x32f   :  { %v4807_v23 = vpop.xlane.xlu0 %2121  ;;  %v2216_v35 = vsel %vm765_vm7, %v2197_v10, %v2215_v26 }
 0x330   :  { %v2198_v58 = vperm.slane %v4807_v23, %v4601_v29 }
 0x332   :  { %v2200_v36 = vsel %vm736_vm3, %v2199_v15, %v2198_v58 }
 0x333   :  { %v4811_v24 = vpop.xlane.xlu2 %2127 }
 0x334   :  { %899 = vperm.xlu1 %3183, %v4796_v7   ;;  %v2201_v25 = vperm.slane %v4811_v24, %v4817_v44 }
 0x336   :  { %887 = vperm.xlu2 %3181, %v4799_v34   ;;  %v2202_v50 = vsel %vm2176_vm12, %v2201_v25, %v2200_v36 }
 0x337   :  { %v4819_v16 = vpop.xlane.xlu0 %2130  ;;  %v2217_v52 = vsel %vm767_vm8, %v2202_v50, %v2216_v35 }
 0x338   :  { %v2203_v12 = vperm.slane %v4819_v16, %v4601_v29 }
 0x33a   :  { %v2205_v27 = vsel %vm736_vm3, %v2204_v18, %v2203_v12 }
 0x33b   :  { %v4835_v57 = vpop.xlane.xlu2 %2136 }
 0x33c   :  { %v2206_v45 = vperm.slane %v4835_v57, %v4817_v44 }
 0x33e   :  { %896 = vperm.xlu2 %3181, %v4809_v63   ;;  %v2207_v21 = vsel %vm2176_vm12, %v2206_v45, %v2205_v27 }
 0x33f   :  { %v4869_v4 = vpop.xlane.xlu0 %2139  ;;  %v2218_v20 = vsel %vm5677_vm9, %v2207_v21, %v2217_v52 }
 0x345   :  { %v4853_v41 = vpop.xlane.xlu1 %2142 }
 0x346   :  { %905 = vperm.xlu2 %3181, %v4827_v2   ;;  %v2209_v61 = vperm.slane %v4853_v41, %v4609_v33  ;;  %v2208_v2 = vperm.slane %v4869_v4, %v4601_v29 }
 0x348   :  { %v2210_v58 = vsel %vm736_vm3, %v2209_v61, %v2208_v2 }
 0x34d   :  { %v4888_v51 = vpop.xlane.xlu2 %2145 }
 0x34e   :  { %v2211_v37 = vperm.slane %v4888_v51, %v4817_v44 }
 0x350   :  { %v2212_v15 = vsel %vm2176_vm12, %v2211_v37, %v2210_v58 }
 0x351   :  { %v2219_v36 = vsel %vm5676_vm10, %v2212_v15, %v2218_v20 }
 0x352   :  { %v2222_v12 = vsel %vm5674_vm13, %v2219_v36, -inf }
 0x357   :  { %2223 = vmax.xlane.f32.xlu0 %v2222_v12 }
 0x370   :  { %v861_v25 = vpop.permute.xlu2 %860 }
 0x371   :  { %v907_v21 = vperm.slane %v861_v25, %v4601_v29 }
 0x378   :  { %v870_v59 = vpop.permute.xlu2 %869 }
 0x379   :  { %v911_v58 = vperm.slane %v870_v59, %v4609_v33 }
 0x380   :  { %v873_v56 = vpop.permute.xlu2 %872 }
 0x381   :  { %v913_v52 = vperm.slane %v873_v56, %v4601_v29 }
 0x386   :  { %v867_v45 = vpop.permute.xlu1 %866 }
 0x387   :  { %v864_v18 = vpop.permute.xlu0 %863  ;;  %v910_v27 = vperm.slane %v867_v45, %v4601_v29 }
 0x388   :  { %v879_v2 = vpop.permute.xlu2 %878  ;;  %v908_v37 = vperm.slane %v864_v18, %v4609_v33 }
 0x389   :  { %v916_v20 = vperm.slane %v879_v2, %v4601_v29  ;;  %v912_v36 = vsel %vm736_vm3, %v911_v58, %v910_v27 }
 0x38a   :  { %v909_v12 = vsel %vm736_vm3, %v908_v37, %v907_v21 }
 0x38b   :  { %v931_v25 = vsel %vm759_vm4, %v912_v36, %v909_v12 }
 0x38e   :  { %v876_v61 = vpop.permute.xlu1 %875 }
 0x38f   :  { %v885_v54 = vpop.permute.xlu0 %884  ;;  %v914_v26 = vperm.slane %v876_v61, %v4609_v33 }
 0x390   :  { %v888_v55 = vpop.permute.xlu2 %887 }
 0x391   :  { %v915_v45 = vsel %vm736_vm3, %v914_v26, %v913_v52  ;;  %v920_v59 = vperm.slane %v888_v55, %v4609_v33 }
 0x392   :  { %v932_v2 = vsel %vm761_vm5, %v915_v45, %v931_v25 }
 0x396   :  { %v882_v10 = vpop.permute.xlu1 %881 }
 0x397   :  { %v894_v50 = vpop.permute.xlu0 %893  ;;  %v917_v15 = vperm.slane %v882_v10, %v4609_v33  ;;  %v919_v10 = vperm.slane %v885_v54, %v4601_v29 }
 0x398   :  { %v897_v9 = vpop.permute.xlu2 %896  ;;  %v923_v27 = vperm.slane %v894_v50, %v4609_v33 }
 0x399   :  { %v918_v18 = vsel %vm736_vm3, %v917_v15, %v916_v20  ;;  %v925_v55 = vperm.slane %v897_v9, %v4601_v29 }
 0x39a   :  { %v933_v37 = vsel %vm763_vm6, %v918_v18, %v932_v2 }
 0x39e   :  { %v891_v35 = vpop.permute.xlu1 %890 }
 0x39f   :  { %v922_v61 = vperm.slane %v891_v35, %v4601_v29  ;;  %v903_v56 = vpop.permute.xlu0 %902  ;;  %v921_v35 = vsel %vm736_vm3, %v920_v59, %v919_v10 }
 0x3a0   :  { %v906_v44 = vpop.permute.xlu2 %905  ;;  %v928_v58 = vperm.slane %v903_v56, %v4601_v29  ;;  %v934_v52 = vsel %vm765_vm7, %v921_v35, %v933_v37 }
 0x3a1   :  { %v929_v26 = vperm.slane %v906_v44, %v4609_v33  ;;  %v924_v21 = vsel %vm736_vm3, %v923_v27, %v922_v61 }
 0x3a2   :  { %v935_v50 = vsel %vm767_vm8, %v924_v21, %v934_v52 }
 0x3a3   :  { %v930_v36 = vsel %vm736_vm3, %v929_v26, %v928_v58 }
 0x3a6   :  { %v900_v15 = vpop.permute.xlu1 %899 }
 0x3a7   :  { %v926_v54 = vperm.slane %v900_v15, %v4609_v33 }
 0x3a9   :  { %v927_v20 = vsel %vm736_vm3, %v926_v54, %v925_v55 }
 0x3aa   :  { %v936_v44 = vsel %vm5677_vm9, %v927_v20, %v935_v50 }
 0x3ab   :  { %v937_v12 = vsel %vm5676_vm10, %v930_v36, %v936_v44 }
 0x3ac   :  { %v939_v45 = vsel %vm774_vm11, %v937_v12, 0.0 }
 0x3ad   :  { %940 = vadd.xlane.f32.xlu1 %v939_v45 }
 0x3ca   :  { %v4936_v18 = vpop.xlane.xlu0 %2223 }
 0x3cb   :  { %v2226_v9 = vperm.slane %v4936_v18, 0  ;;  %v2227_v61 = vperm.slane %v4936_v18, 1  ;;  %v2228_v58 = vperm.slane %v4936_v18, 2  ;;  %v2229_v54 = vperm.slane %v4936_v18, 3 }
 0x3cc   :  { %v2230_v45 = vperm.slane %v4936_v18, 4 }
 0x3cd   :  { %v2245_v25 = vsub.f32 %v4705_v53, %v2227_v61  ;;  %v2243_v59 = vsub.f32 %v4745_v5, %v2226_v9  ;;  %v2242_v10 = vsub.f32 %v4722_v11, %v2226_v9  ;;  %v2247_v37 = vsub.f32 %v4755_v49, %v2227_v61 }
 0x3ce   :  { %v2246_v26 = vsub.f32 %v4733_v8, %v2227_v61  ;;  %v2244_v21 = vsub.f32 %v4703_v40, %v2226_v9  ;;  %v2250_v8 = vsub.f32 %v4772_v28, %v2228_v58  ;;  %v2248_v40 = vsub.f32 %v4763_v13, %v2228_v58 }
 0x3cf   :  { %v2272_v56 = vmul.f32 1.442695, %v2245_v25  ;;  %v2268_v2 = vmul.f32 1.442695, %v2243_v59  ;;  %v2266_v27 = vmul.f32 1.442695, %v2242_v10  ;;  %v2249_v49 = vsub.f32 %v4707_v1, %v2228_v58 }
 0x3d0   :  { %v2276_v15 = vmul.f32 1.442695, %v2247_v37  ;;  %v2274_v53 = vmul.f32 1.442695, %v2246_v26  ;;  %v2270_v5 = vmul.f32 1.442695, %v2244_v21  ;;  %v2253_v13 = vsub.f32 %v4789_v39, %v2229_v54 }
 0x3d1   :  { %3304 = vpow2.f32 %v2272_v56  ;;  %v2282_v52 = vmul.f32 1.442695, %v2250_v8  ;;  %v2278_v20 = vmul.f32 1.442695, %v2248_v40  ;;  %v2280_v36 = vmul.f32 1.442695, %v2249_v49 }
 0x3d2   :  { %3306 = vpow2.f32 %v2268_v2  ;;  %v2251_v1 = vsub.f32 %v4780_v60, %v2229_v54  ;;  %v2252_v12 = vsub.f32 %v4709_v38, %v2229_v54  ;;  %v2288_v9 = vmul.f32 1.442695, %v2253_v13 }
 0x3d3   :  { %3308 = vpow2.f32 %v2266_v27  ;;  %v2256_v60 = vsub.f32 %v4801_v22, %v2230_v45  ;;  %v2254_v38 = vsub.f32 %v4794_v3, %v2230_v45  ;;  %v2255_v56 = vsub.f32 %v4711_v43, %v2230_v45 }
 0x3d4   :  { %3310 = vpow2.f32 %v2276_v15  ;;  %v2284_v61 = vmul.f32 1.442695, %v2251_v1  ;;  %v2286_v59 = vmul.f32 1.442695, %v2252_v12  ;;  %v2231_v2 = vperm.slane %v4936_v18, 5 }
 0x3d5   :  { %3312 = vpow2.f32 %v2274_v53  ;;  %v2294_v27 = vmul.f32 1.442695, %v2256_v60  ;;  %v2290_v37 = vmul.f32 1.442695, %v2254_v38  ;;  %v2292_v21 = vmul.f32 1.442695, %v2255_v56 }
 0x3d6   :  { %3314 = vpow2.f32 %v2270_v5  ;;  %v2259_v3 = vsub.f32 %v4811_v24, %v2231_v2  ;;  %v2257_v43 = vsub.f32 %v4807_v23, %v2231_v2  ;;  %v2258_v15 = vsub.f32 %v4805_v62, %v2231_v2 }
 0x3d7   :  { %v4947_v35 = vpop.eup %3304  ;;  %3316 = vpow2.f32 %v2282_v52  ;;  %v2232_v53 = vperm.slane %v4936_v18, 6 }
 0x3d8   :  { %v4949_v11 = vpop.eup %3306  ;;  %2348 = vperm.xlu1 %3183, %v4947_v35   ;;  %3318 = vpow2.f32 %v2278_v20  ;;  %v2300_v5 = vmul.f32 1.442695, %v2259_v3  ;;  %v2296_v8 = vmul.f32 1.442695, %v2257_v43  ;;  %v2298_v49 = vmul.f32 1.442695, %v2258_v15 }
 0x3d9   :  { %v4952_v55 = vpop.eup %3308  ;;  %2342 = vperm.xlu0 %3182, %v4949_v11   ;;  %3320 = vpow2.f32 %v2280_v36  ;;  %v2262_v23 = vsub.f32 %v4835_v57, %v2232_v53  ;;  %v2260_v62 = vsub.f32 %v4819_v16, %v2232_v53  ;;  %v2261_v52 = vsub.f32 %v4814_v30, %v2232_v53 }
 0x3da   :  { %2339 = vperm.xlu2 %3181, %v4952_v55   ;;  %v4960_v50 = vpop.eup %3310  ;;  %3322 = vpow2.f32 %v2288_v9  ;;  %v2233_v20 = vperm.slane %v4936_v18, 7 }
 0x3db   :  { %v4962_v44 = vpop.eup %3312  ;;  %3324 = vpow2.f32 %v2284_v61  ;;  %v2306_v36 = vmul.f32 1.442695, %v2262_v23  ;;  %v2302_v13 = vmul.f32 1.442695, %v2260_v62  ;;  %v2304_v12 = vmul.f32 1.442695, %v2261_v52 }
 0x3dc   :  { %v4965_v28 = vpop.eup %3314  ;;  %3326 = vpow2.f32 %v2286_v59  ;;  %v2265_v16 = vsub.f32 %v4888_v51, %v2233_v20  ;;  %v2263_v30 = vsub.f32 %v4869_v4, %v2233_v20  ;;  %v2264_v18 = vsub.f32 %v4853_v41, %v2233_v20 }
 0x3dd   :  { %v4973_v25 = vpop.eup %3316  ;;  %3328 = vpow2.f32 %v2294_v27 }
 0x3de   :  { %v4975_v10 = vpop.eup %3318  ;;  %3330 = vpow2.f32 %v2290_v37  ;;  %v2312_v9 = vmul.f32 1.442695, %v2265_v16  ;;  %v2308_v61 = vmul.f32 1.442695, %v2263_v30  ;;  %v2310_v60 = vmul.f32 1.442695, %v2264_v18 }
 0x3df   :  { %v4978_v39 = vpop.eup %3320  ;;  %3332 = vpow2.f32 %v2292_v21 }
 0x3e0   :  { %2354 = vperm.xlu1 %3183, %v4960_v50   ;;  %v4986_v26 = vpop.eup %3322  ;;  %3334 = vpow2.f32 %v2300_v5 }
 0x3e1   :  { %2351 = vperm.xlu0 %3182, %v4962_v44   ;;  %v4988_v58 = vpop.eup %3324  ;;  %3336 = vpow2.f32 %v2296_v8 }
 0x3e2   :  { %2345 = vperm.xlu2 %3181, %v4965_v28   ;;  %v4991_v22 = vpop.eup %3326  ;;  %3338 = vpow2.f32 %v2298_v49 }
 0x3e3   :  { %v4999_v40 = vpop.eup %3328  ;;  %3340 = vpow2.f32 %v2306_v36 }
 0x3e4   :  { %5729 = vst [vmem:[#allocation48_spill] sm:$0xff] %v4999_v40  ;;  %v5001_v54 = vpop.eup %3330  ;;  %3342 = vpow2.f32 %v2302_v13 }
 0x3e5   :  { %v5004_v24 = vpop.eup %3332  ;;  %3344 = vpow2.f32 %v2304_v12 }
 0x3e6   :  { %v5012_v1 = vpop.eup %3334  ;;  %3346 = vpow2.f32 %v2312_v9 }
 0x3e7   :  { %5730 = vst [vmem:[#allocation49_spill] sm:$0xff] %v5012_v1  ;;  %v5014_v45 = vpop.eup %3336  ;;  %3348 = vpow2.f32 %v2308_v61 }
 0x3e8   :  { %2363 = vperm.xlu1 %3183, %v4973_v25   ;;  %v5017_v57 = vpop.eup %3338  ;;  %3350 = vpow2.f32 %v2310_v60 }
 0x3e9   :  { %2357 = vperm.xlu0 %3182, %v4975_v10   ;;  %5731 = vst [vmem:[#allocation50_spill] sm:$0xff] %v5017_v57  ;;  %v5024_v59 = vpop.eup %3340 }
 0x3ea   :  { %2360 = vperm.xlu2 %3181, %v4978_v39   ;;  %5732 = vst [vmem:[#allocation51_spill] sm:$0xff] %v5024_v59  ;;  %v5026_v38 = vpop.eup %3342 }
 0x3eb   :  { %5733 = vst [vmem:[#allocation52_spill] sm:$0xff] %v5026_v38  ;;  %v5029_v56 = vpop.eup %3344 }
 0x3ec   :  { %5734 = vst [vmem:[#allocation53_spill] sm:$0xff] %v5029_v56  ;;  %v5033_v51 = vpop.eup %3346 }
 0x3ed   :  { %5735 = vst [vmem:[#allocation54_spill] sm:$0xff] %v5033_v51  ;;  %v5035_v41 = vpop.eup %3348 }
 0x3ee   :  { %5736 = vst [vmem:[#allocation55_spill] sm:$0xff] %v5035_v41  ;;  %v5038_v4 = vpop.eup %3350 }
 0x3ef   :  { %5737 = vst [vmem:[#allocation56_spill] sm:$0xff] %v5038_v4 }
 0x3f0   :  { %2372 = vperm.xlu1 %3183, %v4986_v26  }
 0x3f1   :  { %2366 = vperm.xlu0 %3182, %v4988_v58  }
 0x3f2   :  { %2369 = vperm.xlu2 %3181, %v4991_v22  }
 0x3f8   :  { %2381 = vperm.xlu1 %3183, %v4999_v40  }
 0x3f9   :  { %2375 = vperm.xlu0 %3182, %v5001_v54  }
 0x3fa   :  { %2378 = vperm.xlu2 %3181, %v5004_v24  }
 0x400   :  { %2390 = vperm.xlu1 %3183, %v5012_v1  }
 0x401   :  { %2384 = vperm.xlu0 %3182, %v5014_v45  }
 0x402   :  { %2387 = vperm.xlu2 %3181, %v5017_v57  }
 0x408   :  { %2399 = vperm.xlu1 %3183, %v5024_v59  }
 0x409   :  { %2393 = vperm.xlu0 %3182, %v5026_v38  }
 0x40a   :  { %2396 = vperm.xlu2 %3181, %v5029_v56  }
 0x410   :  { %2408 = vperm.xlu1 %3183, %v5033_v51  }
 0x411   :  { %2402 = vperm.xlu0 %3182, %v5035_v41  }
 0x412   :  { %2405 = vperm.xlu2 %3181, %v5038_v4  }
 0x420   :  { %v5042_v2 = vpop.xlane.xlu1 %940 }
 0x421   :  { %v943_v27 = vperm.slane %v5042_v2, 0  ;;  %v944_v37 = vperm.slane %v5042_v2, 1  ;;  %v5047_v21 = vperm.slane %v5042_v2, 2  ;;  %v5050_v3 = vperm.slane %v5042_v2, 3 }
 0x422   :  { %v5053_v43 = vperm.slane %v5042_v2, 6  ;;  %v5058_v53 = vperm.slane %v5042_v2, 4  ;;  %v5064_v62 = vperm.slane %v5042_v2, 5 }
 0x423   :  { %3352 = vrcp.f32 %v943_v27  ;;  %v968_v5 = vand.u32 2147483647, %v943_v27  ;;  %v970_v52 = vand.u32 2147483648, %v943_v27  ;;  %v984_v36 = vand.u32 2147483647, %v944_v37 }
 0x424   :  { %3354 = vrcp.f32 %v944_v37  ;;  %vm964_vm14 = vweird.f32 %v943_v27  ;;  %v986_v16 = vand.u32 2147483648, %v944_v37  ;;  %vm980_vm0 = vweird.f32 %v944_v37 }
 0x425   :  { %3356 = vrcp.f32 %v5047_v21  ;;  %vm5071_vm15 = vcmp.eq.f32.partialorder %v968_v5, 8.507059e+37  ;;  %v971_v4 = vor.u32 1.1754944e-38, %v970_v52  ;;  %vm5077_vm1 = vcmp.eq.f32.partialorder %v984_v36, 8.507059e+37 }
 0x426   :  { %3358 = vrcp.f32 %v5050_v3  ;;  %v987_v56 = vor.u32 1.1754944e-38, %v986_v16  ;;  %v1066_v38 = vand.u32 2147483648, %v5053_v43  ;;  %v1002_v52 = vand.u32 2147483648, %v5047_v21 }
 0x427   :  { %3360 = vrcp.f32 %v5053_v43 }
 0x428   :  { %3362 = vrcp.f32 %v5058_v53 }
 0x429   :  { %v3353_v15 = vpop.eup %3352  ;;  %3364 = vrcp.f32 %v5064_v62 }
 0x42a   :  { %v3355_v8 = vpop.eup %3354  ;;  %v960_v49 = vmul.f32 %v3353_v15, %v943_v27  ;;  %vm965_vm2 = vweird.f32 %v3353_v15 }
 0x42b   :  { %v5061_v23 = vpop.eup %3356  ;;  %v976_v20 = vmul.f32 %v3355_v8, %v944_v37  ;;  %vm981_vm11 = vweird.f32 %v3355_v8  ;;  %vm966_vm13 = vmor %vm964_vm14, %vm965_vm2 }
 0x42c   :  { %v5066_v13 = vpop.eup %3358  ;;  %v961_v12 = vsub.f32 1.0, %v960_v49  ;;  %v992_v30 = vmul.f32 %v5061_v23, %v5047_v21  ;;  %vm982_vm10 = vmor %vm980_vm0, %vm981_vm11  ;;  %vm997_vm9 = vweird.f32 %v5061_v23  ;;  %vm1012_vm11 = vweird.f32 %v5050_v3 }
 0x42d   :  { %v977_v9 = vsub.f32 1.0, %v976_v20  ;;  %v1008_v51 = vmul.f32 %v5066_v13, %v5050_v3  ;;  %v3361_v49 = vpop.eup %3360 }
 0x42e   :  { %v962_v61 = vmul.f32 %v3353_v15, %v961_v12  ;;  %v993_v60 = vsub.f32 1.0, %v992_v30  ;;  %v1056_v1 = vmul.f32 %v3361_v49, %v5053_v43  ;;  %v1064_v30 = vand.u32 2147483647, %v5053_v43 }
 0x42f   :  { %v978_v59 = vmul.f32 %v3355_v8, %v977_v9  ;;  %v1009_v16 = vsub.f32 1.0, %v1008_v51  ;;  %vm1061_vm14 = vweird.f32 %v3361_v49  ;;  %v1000_v51 = vand.u32 2147483647, %v5047_v21 }
 0x430   :  { %v963_v5 = vadd.f32 %v3353_v15, %v962_v61  ;;  %v994_v20 = vmul.f32 %v5061_v23, %v993_v60  ;;  %v1057_v36 = vsub.f32 1.0, %v1056_v1  ;;  %v5089_v61 = vpop.eup %3362  ;;  %vm1065_vm0 = vcmp.eq.f32.partialorder %v1064_v30, 8.507059e+37 }
 0x431   :  { %v979_v12 = vadd.f32 %v3355_v8, %v978_v59  ;;  %vm1001_vm2 = vcmp.eq.f32.partialorder %v1000_v51, 8.507059e+37 }
 0x432   :  { %v967_v9 = vsel %vm966_vm13, %v3353_v15, %v963_v5  ;;  %v995_v59 = vadd.f32 %v5061_v23, %v994_v20  ;;  %v1058_v1 = vmul.f32 %v3361_v49, %v1057_v36  ;;  %vm996_vm13 = vweird.f32 %v5047_v21 }
 0x433   :  { %v972_v27 = vsel %vm5071_vm15, %v971_v4, %v967_v9  ;;  %v983_v60 = vsel %vm982_vm10, %v3355_v8, %v979_v12  ;;  %vm1060_vm10 = vweird.f32 %v5053_v43  ;;  %vm998_vm15 = vmor %vm996_vm13, %vm997_vm9  ;;  %vm1013_vm9 = vweird.f32 %v5066_v13 }
 0x434   :  { %v974_v57 = vmul.f32 %v4735_v42, %v972_v27  ;;  %v973_v40 = vmul.f32 %v4738_v14, %v972_v27  ;;  %v988_v37 = vsel %vm5077_vm1, %v987_v56, %v983_v60  ;;  %v1059_v4 = vadd.f32 %v3361_v49, %v1058_v1  ;;  %vm1062_vm1 = vmor %vm1060_vm10, %vm1061_vm14  ;;  %v5112_v43 = vpop.permute.xlu2 %2339 }
 0x435   :  { %v989_v15 = vmul.f32 %v4731_v17, %v988_v37  ;;  %v1067_v42 = vor.u32 1.1754944e-38, %v1066_v38  ;;  %v999_v17 = vsel %vm998_vm15, %v5061_v23, %v995_v59  ;;  %v1010_v14 = vmul.f32 %v5066_v13, %v1009_v16  ;;  %v3365_v23 = vpop.eup %3364  ;;  %vm1014_vm14 = vmor %vm1012_vm11, %vm1013_vm9 }
 0x436   :  { %1094 = vperm.xlu1 %3183, %v974_v57   ;;  %1089 = vperm.xlu0 %3182, %v973_v40   ;;  %v1024_v56 = vmul.f32 %v5089_v61, %v5058_v53  ;;  %v1063_v41 = vsel %vm1062_vm1, %v3361_v49, %v1059_v4  ;;  %v1003_v40 = vor.u32 1.1754944e-38, %v1002_v52  ;;  %v990_v18 = vmul.f32 %v4753_v47, %v988_v37 }
 0x437   :  { %1099 = vperm.xlu2 %3181, %v989_v15   ;;  %v5110_v57 = vsel %vm1065_vm0, %v1067_v42, %v1063_v41  ;;  %v1011_v8 = vadd.f32 %v5066_v13, %v1010_v14  ;;  %v1018_v49 = vand.u32 2147483648, %v5050_v3  ;;  %v1016_v12 = vand.u32 2147483647, %v5050_v3 }
 0x438   :  { %v1004_v21 = vsel %vm1001_vm2, %v1003_v40, %v999_v17  ;;  %v1025_v38 = vsub.f32 1.0, %v1024_v56  ;;  %v1069_v5 = vmul.f32 %v4809_v63, %v5110_v57  ;;  %v1040_v47 = vmul.f32 %v3365_v23, %v5064_v62 }
 0x439   :  { %v1005_v20 = vmul.f32 %v4770_v31, %v1004_v21  ;;  %v1015_v30 = vsel %vm1014_vm14, %v5066_v13, %v1011_v8  ;;  %v1019_v9 = vor.u32 1.1754944e-38, %v1018_v49  ;;  %v5127_v63 = vperm.slane %v5042_v2, 7 }
 0x43a   :  { %v1026_v52 = vmul.f32 %v5089_v61, %v1025_v38  ;;  %vm1017_vm13 = vcmp.eq.f32.partialorder %v1016_v12, 8.507059e+37  ;;  %vm1029_vm10 = vweird.f32 %v5089_v61  ;;  %v1041_v3 = vsub.f32 1.0, %v1040_v47 }
 0x43b   :  { %v1020_v31 = vsel %vm1017_vm13, %v1019_v9, %v1015_v30  ;;  %v1006_v16 = vmul.f32 %v4748_v6, %v1004_v21  ;;  %v1034_v27 = vand.u32 2147483648, %v5058_v53  ;;  %3366 = vrcp.f32 %v5127_v63 }
 0x43c   :  { %v1027_v36 = vadd.f32 %v5089_v61, %v1026_v52  ;;  %v5134_v13 = vpop.permute.xlu2 %2345  ;;  %v1021_v60 = vmul.f32 %v4787_v0, %v1020_v31  ;;  %vm1028_vm15 = vweird.f32 %v5058_v53  ;;  %v1032_v2 = vand.u32 2147483647, %v5058_v53 }
 0x43d   :  { %vm1030_vm1 = vmor %vm1028_vm15, %vm1029_vm10  ;;  %v1042_v37 = vmul.f32 %v3365_v23, %v1041_v3  ;;  %v1035_v1 = vor.u32 1.1754944e-38, %v1034_v27  ;;  %vm1045_vm2 = vweird.f32 %v3365_v23  ;;  %v1022_v0 = vmul.f32 %v4765_v32, %v1020_v31 }
 0x43e   :  { %1104 = vperm.xlu1 %3183, %v990_v18   ;;  %1149 = vperm.xlu0 %3182, %v1069_v5   ;;  %v1031_v59 = vsel %vm1030_vm1, %v5089_v61, %v1027_v36  ;;  %vm1033_vm0 = vcmp.eq.f32.partialorder %v1032_v2, 8.507059e+37  ;;  %v1050_v53 = vand.u32 2147483648, %v5064_v62  ;;  %vm1044_vm9 = vweird.f32 %v5064_v62 }
 0x43f   :  { %1109 = vperm.xlu2 %3181, %v1005_v20   ;;  %v1036_v15 = vsel %vm1033_vm0, %v1035_v1, %v1031_v59  ;;  %v1043_v42 = vadd.f32 %v3365_v23, %v1042_v37  ;;  %v1048_v61 = vand.u32 2147483647, %v5064_v62  ;;  %vm1046_vm11 = vmor %vm1044_vm9, %vm1045_vm2  ;;  %v1082_v12 = vand.u32 2147483648, %v5127_v63 }
 0x440   :  { %v1037_v17 = vmul.f32 %v4750_v46, %v1036_v15  ;;  %v1051_v40 = vor.u32 1.1754944e-38, %v1050_v53  ;;  %v1038_v46 = vmul.f32 %v4799_v34, %v1036_v15  ;;  %vm1076_vm10 = vweird.f32 %v5127_v63 }
 0x441   :  { %v3367_v51 = vpop.eup %3366  ;;  %v1047_v41 = vsel %vm1046_vm11, %v3365_v23, %v1043_v42  ;;  %vm1049_vm14 = vcmp.eq.f32.partialorder %v1048_v61, 8.507059e+37  ;;  %v1080_v52 = vand.u32 2147483647, %v5127_v63  ;;  %v1083_v47 = vor.u32 1.1754944e-38, %v1082_v12 }
 0x442   :  { %v1072_v14 = vmul.f32 %v3367_v51, %v5127_v63  ;;  %v1052_v32 = vsel %vm1049_vm14, %v1051_v40, %v1047_v41  ;;  %vm1077_vm13 = vweird.f32 %v3367_v51  ;;  %v2410_v42 = vperm.slane %v5112_v43, %v4601_v29  ;;  %v5744_v41 = vld [vmem:[#allocation46_spill] sm:$0xff] }
 0x443   :  { %v1053_v18 = vmul.f32 %v4782_v48, %v1052_v32  ;;  %v1054_v30 = vmul.f32 %v4767_v19, %v1052_v32  ;;  %v1070_v48 = vmul.f32 %v4796_v7, %v5110_v57  ;;  %vm1078_vm15 = vmor %vm1076_vm10, %vm1077_vm13  ;;  %vm1081_vm1 = vcmp.eq.f32.partialorder %v1080_v52, 8.507059e+37  ;;  %v5743_v19 = vld [vmem:[#allocation47_spill] sm:$0xff]  ;;  %v2837_v57 = vld [vmem:[%s5574_s13 + $0x70] sm:$0xff] }
 0x444   :  { %v5150_v56 = vpop.permute.xlu2 %2360  ;;  %v1073_v8 = vsub.f32 1.0, %v1072_v14  ;;  %2857 = vmatpush.msrb.mxu0 %v2837_v57  ;;  %v2838_v14 = vld [vmem:[%s5574_s13 + $0x78] sm:$0xff]  ;;  %v2413_v40 = vperm.slane %v5134_v13, %v5744_v41  ;;  %vm5745_vm0 = vcmask 1046534   ;;  %vm5746_vm2 = vcmask 1047559  }
 0x445   :  { %v2421_v32 = vperm.slane %v5150_v56, %v4609_v33  ;;  %2877 = vmatpush.msra.mxu1 %v2838_v14  ;;  %vm5747_vm9 = vcmask 195584  }
 0x446   :  { %1114 = vperm.xlu1 %3183, %v1006_v16   ;;  %v1074_v62 = vmul.f32 %v3367_v51, %v1073_v8  ;;  %v5742_v16 = vld [vmem:[#allocation45_spill] sm:$0xff] }
 0x447   :  { %1119 = vperm.xlu2 %3181, %v1021_v60  }
 0x448   :  { %v1075_v20 = vadd.f32 %v3367_v51, %v1074_v62 }
 0x44a   :  { %v5140_v6 = vpop.permute.xlu1 %2348  ;;  %v1079_v34 = vsel %vm1078_vm15, %v3367_v51, %v1075_v20 }
 0x44b   :  { %v5142_v4 = vpop.permute.xlu0 %2342  ;;  %v1084_v9 = vsel %vm1081_vm1, %v1083_v47, %v1079_v34 }
 0x44c   :  { %v2370_v5 = vpop.permute.xlu2 %2369  ;;  %v1085_v27 = vmul.f32 %v5742_v16, %v1084_v9  ;;  %v1086_v60 = vmul.f32 %v5743_v19, %v1084_v9  ;;  %v2411_v53 = vperm.slane %v5142_v4, %v4609_v33 }
 0x44d   :  { %v2426_v4 = vperm.slane %v2370_v5, %v4609_v33 }
 0x44e   :  { %1124 = vperm.xlu1 %3183, %v1022_v0   ;;  %v2415_v0 = vperm.slane %v5140_v6, %v4601_v29  ;;  %v2412_v20 = vsel %vm736_vm3, %v2411_v53, %v2410_v42 }
 0x44f   :  { %1129 = vperm.xlu2 %3181, %v1037_v17  }
 0x452   :  { %v5152_v21 = vpop.permute.xlu1 %2354 }
 0x453   :  { %v2352_v38 = vpop.permute.xlu0 %2351  ;;  %v2418_v43 = vperm.slane %v5152_v21, %v5744_v41 }
 0x454   :  { %v2379_v36 = vpop.permute.xlu2 %2378  ;;  %v2416_v15 = vperm.slane %v2352_v38, %v4609_v33 }
 0x455   :  { %v2431_v13 = vperm.slane %v2379_v36, %v4609_v33 }
 0x456   :  { %1134 = vperm.xlu1 %3183, %v1038_v46   ;;  %v2417_v38 = vsel %vm736_vm3, %v2416_v15, %v2415_v0 }
 0x457   :  { %1139 = vperm.xlu2 %3181, %v1053_v18  }
 0x45a   :  { %v5156_v49 = vpop.permute.xlu1 %2363 }
 0x45b   :  { %v2358_v23 = vpop.permute.xlu0 %2357  ;;  %v2423_v46 = vperm.slane %v5156_v49, %v5744_v41  ;;  %v2419_v49 = vsel %vm2176_vm12, %v2418_v43, %v2417_v38  ;;  %v2938_v38 = vld [vmem:[%s5576_s15 + $0x78] sm:$0xff] }
 0x45c   :  { %v2388_v59 = vpop.permute.xlu2 %2387  ;;  %v2420_v51 = vperm.slane %v2358_v23, %v4601_v29  ;;  %2943 = vmatpush.msra.mxu2 %v2938_v38 }
 0x45d   :  { %v2436_v23 = vperm.slane %v2388_v59, %v4609_v33 }
 0x45e   :  { %1144 = vperm.xlu1 %3183, %v1054_v30   ;;  %v2422_v56 = vsel %vm736_vm3, %v2421_v32, %v2420_v51 }
 0x45f   :  { %1154 = vperm.xlu2 %3181, %v1070_v48   ;;  %v2424_v34 = vsel %vm2176_vm12, %v2423_v46, %v2422_v56  ;;  %v2834_v46 = vld [vmem:[%s5574_s13 + $0x58] sm:$0xff]  ;;  %v2936_v56 = vld [vmem:[%s5576_s15 + $0x68] sm:$0xff] }
 0x462   :  { %v2373_v31 = vpop.permute.xlu1 %2372 }
 0x463   :  { %v2367_v3 = vpop.permute.xlu0 %2366  ;;  %v2428_v62 = vperm.slane %v2373_v31, %v5744_v41  ;;  %v2414_v31 = vsel %vm2176_vm12, %v2413_v40, %v2412_v20  ;;  %v2836_v40 = vld [vmem:[%s5574_s13 + $0x68] sm:$0xff]  ;;  %v2935_v20 = vld [vmem:[%s5576_s15 + $0x60] sm:$0xff] }
 0x464   :  { %v2397_v1 = vpop.permute.xlu2 %2396  ;;  %v2425_v17 = vperm.slane %v2367_v3, %v4601_v29  ;;  %2878 = vmatpush.msra.mxu1 %v2836_v40  ;;  %v2930_v40 = vld [vmem:[%s5576_s15 + $0x38] sm:$0xff] }
 0x465   :  { %v2441_v30 = vperm.slane %v2397_v1, %v4609_v33 }
 0x466   :  { %1159 = vperm.xlu1 %3183, %v1085_v27   ;;  %v2427_v5 = vsel %vm736_vm3, %v2426_v4, %v2425_v17  ;;  %v2450_v27 = vsel %vm759_vm4, %v2419_v49, %v2414_v31  ;;  %2879 = vmatpush.msra.mxu1 %v2834_v46 }
 0x467   :  { %1164 = vperm.xlu2 %3181, %v1086_v60   ;;  %v2429_v36 = vsel %vm2176_vm12, %v2428_v62, %v2427_v5 }
 0x46a   :  { %v2382_v63 = vpop.permute.xlu1 %2381 }
 0x46b   :  { %v2376_v2 = vpop.permute.xlu0 %2375  ;;  %v2433_v12 = vperm.slane %v2382_v63, %v5744_v41  ;;  %v2451_v63 = vsel %vm761_vm5, %v2424_v34, %v2450_v27 }
 0x46c   :  { %v2430_v6 = vperm.slane %v2376_v2, %v4601_v29  ;;  %v2406_v3 = vpop.permute.xlu2 %2405  ;;  %v2452_v57 = vsel %vm763_vm6, %v2429_v36, %v2451_v63 }
 0x46e   :  { %v2432_v52 = vsel %vm736_vm3, %v2431_v13, %v2430_v6 }
 0x46f   :  { %v2434_v19 = vsel %vm2176_vm12, %v2433_v12, %v2432_v52  ;;  %v5748_v12 = vld [vmem:[#allocation8_spill] sm:$0xff]  ;;  %v2933_v52 = vld [vmem:[%s5576_s15 + $0x50] sm:$0xff] }
 0x470   :  { %v2453_v51 = vsel %vm765_vm7, %v2434_v19, %v2452_v57  ;;  %v5749_v49 = vmax.f32 %v5748_v12, 0.0  ;;  %v5756_v19 = vld [vmem:[#allocation5_spill] sm:$0xff] }
 0x471   :  { %v2932_v57 = vld [vmem:[%s5576_s15 + $0x48] sm:$0xff] }
 0x472   :  { %v2391_v7 = vpop.permute.xlu1 %2390 }
 0x473   :  { %v2385_v37 = vpop.permute.xlu0 %2384  ;;  %v2438_v48 = vperm.slane %v2391_v7, %v5744_v41 }
 0x474   :  { %v2435_v18 = vperm.slane %v2385_v37, %v4601_v29  ;;  %v2446_v37 = vperm.slane %v2406_v3, %v4609_v33  ;;  %v5754_v3 = vld [vmem:[#allocation6_spill] sm:$0xff] }
 0x476   :  { %v2437_v47 = vsel %vm736_vm3, %v2436_v23, %v2435_v18  ;;  %v2937_v18 = vld [vmem:[%s5576_s15 + $0x70] sm:$0xff]  ;;  %v2934_v23 = vld [vmem:[%s5576_s15 + $0x58] sm:$0xff] }
 0x477   :  { %v2439_v2 = vsel %vm2176_vm12, %v2438_v48, %v2437_v47  ;;  %2944 = vmatpush.msra.mxu2 %v2937_v18  ;;  %v5750_v48 = vld [vmem:[#allocation10_spill] sm:$0xff] }
 0x478   :  { %v2454_v0 = vsel %vm767_vm8, %v2439_v2, %v2453_v51  ;;  %v5751_v34 = vmax.f32 %v5750_v48, 0.0  ;;  %v5758_v2 = vld [vmem:[#allocation12_spill] sm:$0xff]  ;;  %v5762_v51 = vld [vmem:[#allocation11_spill] sm:$0xff]  ;;  %v5766_v18 = vld [vmem:[#allocation14_spill] sm:$0xff] }
 0x479   :  { %2945 = vmatpush.msra.mxu2 %v2936_v56 }
 0x47a   :  { %v2400_v61 = vpop.permute.xlu1 %2399 }
 0x47b   :  { %v2394_v8 = vpop.permute.xlu0 %2393  ;;  %v2443_v9 = vperm.slane %v2400_v61, %v5744_v41  ;;  %2946 = vmatpush.msra.mxu2 %v2935_v20  ;;  %v2832_v20 = vld [vmem:[%s5574_s13 + $0x48] sm:$0xff] }
 0x47c   :  { %v2440_v21 = vperm.slane %v2394_v8, %v4601_v29  ;;  %v2833_v8 = vld [vmem:[%s5574_s13 + $0x50] sm:$0xff]  ;;  %2880 = vmatpush.msra.mxu1 %v2832_v20 }
 0x47d   :  { %2947 = vmatpush.msra.mxu2 %v2934_v23 }
 0x47e   :  { %v2442_v16 = vsel %vm736_vm3, %v2441_v30, %v2440_v21 }
 0x47f   :  { %v2444_v15 = vsel %vm2176_vm12, %v2443_v9, %v2442_v16  ;;  %v5752_v9 = vld [vmem:[#allocation7_spill] sm:$0xff]  ;;  %v5755_v16 = vmax.f32 %v5754_v3, 0.0  ;;  %2948 = vmatpush.msra.mxu2 %v2933_v52 }
 0x480   :  { %v2455_v17 = vsel %vm5745_vm0, %v2444_v15, %v2454_v0  ;;  %v5753_v31 = vmax.f32 %v5752_v9, 0.0 }
 0x481   :  { %2949 = vmatpush.msra.mxu2 %v2932_v57 }
 0x482   :  { %v2409_v60 = vpop.permute.xlu1 %2408 }
 0x483   :  { %v2448_v59 = vperm.slane %v2409_v60, %v5744_v41  ;;  %v2403_v7 = vpop.permute.xlu0 %2402  ;;  %v5757_v60 = vmax.f32 %v5756_v19, 0.0 }
 0x484   :  { %v2445_v1 = vperm.slane %v2403_v7, %v4601_v29  ;;  %v2835_v29 = vld [vmem:[%s5574_s13 + $0x60] sm:$0xff] }
 0x485   :  { %2858 = vmatpush.msrb.mxu0 %v2835_v29  ;;  %v2931_v29 = vld [vmem:[%s5576_s15 + $0x40] sm:$0xff] }
 0x486   :  { %v2447_v42 = vsel %vm736_vm3, %v2446_v37, %v2445_v1  ;;  %v5760_v37 = vld [vmem:[#allocation9_spill] sm:$0xff]  ;;  %2950 = vmatpush.msra.mxu2 %v2931_v29  ;;  %vm5780_vm3 = vmmov %vm5745_vm0 }
 0x487   :  { %v2449_v53 = vsel %vm2176_vm12, %v2448_v59, %v2447_v42  ;;  %2859 = vmatpush.msrb.mxu0 %v2833_v8  ;;  %v5759_v59 = vmax.f32 %v5758_v2, 0.0  ;;  %v5761_v1 = vmax.f32 %v5760_v37, 0.0  ;;  %v5763_v42 = vmax.f32 %v5762_v51, 0.0  ;;  %v2926_v2 = vld [vmem:[%s5576_s15 + $0x18] sm:$0xff]  ;;  %v5774_v51 = vld [vmem:[#allocation16_spill] sm:$0xff]  ;;  %vm5781_vm12 = vmmov %vm5746_vm2 }
 0x488   :  { %v2456_v61 = vsel %vm5746_vm2, %v2449_v53, %v2455_v17  ;;  %2951 = vmatpush.msra.mxu2 %v2930_v40  ;;  %v5772_v37 = vld [vmem:[#allocation15_spill] sm:$0xff]  ;;  %v2924_v40 = vld [vmem:[%s5576_s15 + $0x8] sm:$0xff] }
 0x489   :  { %v2458_v14 = vsel %vm5747_vm9, %v2456_v61, 0.0 }
 0x48a   :  { %2459 = vadd.xlane.f32.xlu0 %v2458_v14 }
 0x491   :  { %v1100_v33 = vpop.permute.xlu2 %1099 }
 0x492   :  { %v1169_v36 = vmul.f32 %v1100_v33, %v5753_v31 }
 0x499   :  { %v1110_v41 = vpop.permute.xlu2 %1109 }
 0x49a   :  { %v1171_v15 = vmul.f32 %v1110_v41, %v5761_v1  ;;  %v2831_v41 = vld [vmem:[%s5574_s13 + $0x40] sm:$0xff]  ;;  %v5773_v1 = vmax.f32 %v5772_v37, 0.0 }
 0x49b   :  { %2860 = vmatpush.msrb.mxu0 %v2831_v41 }
 0x4a1   :  { %v1120_v43 = vpop.permute.xlu2 %1119 }
 0x4a2   :  { %v1173_v0 = vmul.f32 %v1120_v43, %v5763_v42  ;;  %v5764_v43 = vld [vmem:[#allocation13_spill] sm:$0xff]  ;;  %v5775_v42 = vmax.f32 %v5774_v51, 0.0 }
 0x4a8   :  { %v1095_v32 = vpop.permute.xlu1 %1094  ;;  %v1090_v21 = vpop.permute.xlu0 %1089 }
 0x4a9   :  { %v1130_v4 = vpop.permute.xlu2 %1129  ;;  %v1168_v27 = vmul.f32 %v1095_v32, %v5755_v16  ;;  %v1167_v63 = vmul.f32 %v1090_v21, %v5757_v60  ;;  %v2929_v21 = vld [vmem:[%s5576_s15 + $0x30] sm:$0xff]  ;;  %v2927_v16 = vld [vmem:[%s5576_s15 + $0x20] sm:$0xff] }
 0x4aa   :  { %2952 = vmatpush.msra.mxu2 %v2929_v21 }
 0x4ab   :  { %v1183_v61 = vadd.f32 %v1168_v27, %v1167_v63 }
 0x4b0   :  { %v1105_v6 = vpop.permute.xlu1 %1104  ;;  %v1150_v46 = vpop.permute.xlu0 %1149 }
 0x4b1   :  { %v1140_v62 = vpop.permute.xlu2 %1139  ;;  %v1170_v30 = vmul.f32 %v1105_v6, %v5749_v49  ;;  %v5765_v6 = vmax.f32 %v5764_v43, 0.0  ;;  %v2923_v43 = vld [vmem:[%s5576_s15] sm:$0xff] }
 0x4b3   :  { %v1190_v53 = vadd.f32 %v1170_v30, %v1169_v36  ;;  %v1175_v8 = vmul.f32 %v1130_v4, %v5765_v6  ;;  %v2829_v4 = vld [vmem:[%s5574_s13 + $0x30] sm:$0xff]  ;;  %v1184_v30 = vrot.slane %v1183_v61, 4 }
 0x4b4   :  { %2861 = vmatpush.msrb.mxu0 %v2829_v4  ;;  %v5778_v4 = vld [vmem:[#allocation19_spill] sm:$0xff] }
 0x4b5   :  { %v1191_v38 = vrot.slane %v1190_v53, 4  ;;  %v1185_v60 = vadd.f32 %v1184_v30, %v1183_v61  ;;  %v5779_v30 = vmax.f32 %v5778_v4, 0.0 }
 0x4b7   :  { %v1192_v36 = vadd.f32 %v1191_v38, %v1190_v53  ;;  %v2925_v53 = vld [vmem:[%s5576_s15 + $0x10] sm:$0xff] }
 0x4b8   :  { %v1115_v13 = vpop.permute.xlu1 %1114 }
 0x4b9   :  { %v1172_v47 = vmul.f32 %v1115_v13, %v5751_v34  ;;  %v1155_v14 = vpop.permute.xlu2 %1154  ;;  %v5767_v13 = vmax.f32 %v5766_v18, 0.0  ;;  %v2928_v34 = vld [vmem:[%s5576_s15 + $0x28] sm:$0xff]  ;;  %v1193_v57 = vrot.slane %v1192_v36, 2 }
 0x4ba   :  { %2953 = vmatpush.msra.mxu2 %v2928_v34 }
 0x4bb   :  { %v1197_v17 = vadd.f32 %v1172_v47, %v1171_v15  ;;  %v5770_v47 = vld [vmem:[#allocation17_spill] sm:$0xff]  ;;  %v1177_v15 = vmul.f32 %v1140_v62, %v5773_v1  ;;  %v1194_v62 = vadd.f32 %v1193_v57, %v1192_v36 }
 0x4bc   :  { %v5771_v9 = vmax.f32 %v5770_v47, 0.0  ;;  %2954 = vmatpush.msra.mxu2 %v2927_v16 }
 0x4bd   :  { %v1198_v23 = vrot.slane %v1197_v17, 4  ;;  %v1195_v20 = vrot.slane %v1194_v62, 1 }
 0x4be   :  { %v1179_v31 = vmul.f32 %v1150_v46, %v5771_v9  ;;  %2955 = vmatpush.msra.mxu2 %v2926_v2 }
 0x4bf   :  { %v1199_v27 = vadd.f32 %v1198_v23, %v1197_v17  ;;  %v5776_v23 = vld [vmem:[#allocation20_spill] sm:$0xff]  ;;  %v1196_v16 = vadd.f32 %v1195_v20, %v1194_v62 }
 0x4c0   :  { %v1125_v5 = vpop.permute.xlu1 %1124  ;;  %2956 = vmatpush.msra.mxu2 %v2925_v53 }
 0x4c1   :  { %v1174_v7 = vmul.f32 %v1125_v5, %v5759_v59  ;;  %v5768_v5 = vld [vmem:[#allocation18_spill] sm:$0xff]  ;;  %v1200_v17 = vrot.slane %v1199_v27, 2  ;;  %v1165_v38 = vpop.permute.xlu2 %1164 }
 0x4c2   :  { %v5769_v12 = vmax.f32 %v5768_v5, 0.0  ;;  %2957 = vmatpush.msra.mxu2 %v2924_v40  ;;  %v5777_v5 = vmax.f32 %v5776_v23, 0.0  ;;  %v2830_v40 = vld [vmem:[%s5574_s13 + $0x38] sm:$0xff] }
 0x4c3   :  { %v1204_v33 = vadd.f32 %v1174_v7, %v1173_v0  ;;  %v1201_v6 = vadd.f32 %v1200_v17, %v1199_v27  ;;  %2881 = vmatpush.msra.mxu1 %v2830_v40 }
 0x4c4   :  { %v1180_v49 = vmul.f32 %v1155_v14, %v5769_v12  ;;  %v1186_v14 = vrot.slane %v1185_v60, 2  ;;  %2958 = vmatpush.msra.mxu2 %v2923_v43  ;;  %v1182_v12 = vmul.f32 %v1165_v38, %v5777_v5  ;;  %v2828_v43 = vld [vmem:[%s5574_s13 + $0x28] sm:$0xff] }
 0x4c5   :  { %v1205_v52 = vrot.slane %v1204_v33, 4  ;;  %2882 = vmatpush.msra.mxu1 %v2828_v43 }
 0x4c6   :  { %v1225_v19 = vadd.f32 %v1180_v49, %v1179_v31  ;;  %v1187_v46 = vadd.f32 %v1186_v14, %v1185_v60 }
 0x4c7   :  { %v1206_v63 = vadd.f32 %v1205_v52, %v1204_v33 }
 0x4c8   :  { %v1135_v32 = vpop.permute.xlu1 %1134  ;;  %v1226_v61 = vrot.slane %v1225_v19, 4  ;;  %v1188_v47 = vrot.slane %v1187_v46, 1 }
 0x4c9   :  { %v1176_v56 = vmul.f32 %v1135_v32, %v5767_v13  ;;  %v1207_v33 = vrot.slane %v1206_v63, 2 }
 0x4ca   :  { %v1189_v2 = vadd.f32 %v1188_v47, %v1187_v46 }
 0x4cb   :  { %v1211_v48 = vadd.f32 %v1176_v56, %v1175_v8  ;;  %v1227_v8 = vadd.f32 %v1226_v61, %v1225_v19  ;;  %v1208_v18 = vadd.f32 %v1207_v33, %v1206_v63 }
 0x4cc   :  { %v2899_v37 = vsel %vm759_vm4, %v1196_v16, %v1189_v2 }
 0x4cd   :  { %v1212_v3 = vrot.slane %v1211_v48, 4  ;;  %v1228_v34 = vrot.slane %v1227_v8, 2  ;;  %v1209_v9 = vrot.slane %v1208_v18, 1 }
 0x4cf   :  { %v1213_v59 = vadd.f32 %v1212_v3, %v1211_v48  ;;  %v1202_v48 = vrot.slane %v1201_v6, 1  ;;  %v1229_v63 = vadd.f32 %v1228_v34, %v1227_v8 }
 0x4d0   :  { %v1145_v7 = vpop.permute.xlu1 %1144 }
 0x4d1   :  { %v1178_v0 = vmul.f32 %v1145_v7, %v5775_v42  ;;  %v1214_v41 = vrot.slane %v1213_v59, 2  ;;  %v1203_v60 = vadd.f32 %v1202_v48, %v1201_v6  ;;  %v1230_v42 = vrot.slane %v1229_v63, 1 }
 0x4d3   :  { %v1218_v29 = vadd.f32 %v1178_v0, %v1177_v15  ;;  %v1215_v56 = vadd.f32 %v1214_v41, %v1213_v59  ;;  %v1210_v59 = vadd.f32 %v1209_v9, %v1208_v18  ;;  %v2900_v51 = vsel %vm761_vm5, %v1203_v60, %v2899_v37  ;;  %v2827_v41 = vld [vmem:[%s5574_s13 + $0x20] sm:$0xff] }
 0x4d4   :  { %v1231_v33 = vadd.f32 %v1230_v42, %v1229_v63  ;;  %2862 = vmatpush.msrb.mxu0 %v2827_v41 }
 0x4d5   :  { %v1219_v32 = vrot.slane %v1218_v29, 4  ;;  %v1216_v3 = vrot.slane %v1215_v56, 1  ;;  %v2901_v0 = vsel %vm763_vm6, %v1210_v59, %v2900_v51 }
 0x4d7   :  { %v1220_v13 = vadd.f32 %v1219_v32, %v1218_v29  ;;  %v1217_v57 = vadd.f32 %v1216_v3, %v1215_v56 }
 0x4d8   :  { %v1160_v21 = vpop.permute.xlu1 %1159 }
 0x4d9   :  { %v1221_v49 = vrot.slane %v1220_v13, 2  ;;  %v1181_v52 = vmul.f32 %v1160_v21, %v5779_v30  ;;  %v2902_v17 = vsel %vm765_vm7, %v1217_v57, %v2901_v0 }
 0x4db   :  { %v1222_v31 = vadd.f32 %v1221_v49, %v1220_v13  ;;  %v1232_v36 = vadd.f32 %v1182_v12, %v1181_v52  ;;  %v2825_v13 = vld [vmem:[%s5574_s13 + $0x10] sm:$0xff] }
 0x4dc   :  { %2863 = vmatpush.msrb.mxu0 %v2825_v13 }
 0x4dd   :  { %v1223_v27 = vrot.slane %v1222_v31, 1  ;;  %v1233_v19 = vrot.slane %v1232_v36, 4 }
 0x4df   :  { %v1234_v7 = vadd.f32 %v1233_v19, %v1232_v36  ;;  %v1224_v1 = vadd.f32 %v1223_v27, %v1222_v31  ;;  %v2826_v19 = vld [vmem:[%s5574_s13 + $0x18] sm:$0xff] }
 0x4e0   :  { %2883 = vmatpush.msra.mxu1 %v2826_v19 }
 0x4e1   :  { %v1235_v15 = vrot.slane %v1234_v7, 2  ;;  %v2903_v14 = vsel %vm767_vm8, %v1224_v1, %v2902_v17 }
 0x4e2   :  { %v2904_v62 = vsel %vm5780_vm3, %v1231_v33, %v2903_v14 }
 0x4e3   :  { %v1236_v53 = vadd.f32 %v1235_v15, %v1234_v7 }
 0x4e5   :  { %v1237_v61 = vrot.slane %v1236_v53, 1 }
 0x4e7   :  { %v1238_v29 = vadd.f32 %v1237_v61, %v1236_v53 }
 0x4e9   :  { %v5341_v32 = vsel %vm5781_vm12, %v1238_v29, %v2904_v62 }
 0x4ea   :  { %2959 = vmatmul.f32.vlgmr.msra.gmra.mxu2 %v5341_v32 }
 0x4fd   :  { %v5347_v6 = vpop.xlane.xlu0 %2459 }
 0x4fe   :  { %v2462_v8 = vperm.slane %v5347_v6, 0  ;;  %v2463_v38 = vperm.slane %v5347_v6, 1  ;;  %v5352_v46 = vperm.slane %v5347_v6, 2  ;;  %v5355_v18 = vperm.slane %v5347_v6, 3 }
 0x4ff   :  { %v5363_v20 = vperm.slane %v5347_v6, 4  ;;  %v5368_v4 = vperm.slane %v5347_v6, 5  ;;  %v5398_v43 = vperm.slane %v5347_v6, 6 }
 0x500   :  { %3368 = vrcp.f32 %v2462_v8  ;;  %v2504_v30 = vand.u32 2147483647, %v2463_v38  ;;  %v2506_v47 = vand.u32 2147483648, %v2463_v38  ;;  %v2487_v9 = vand.u32 2147483647, %v2462_v8 }
 0x501   :  { %3370 = vrcp.f32 %v2463_v38  ;;  %v2489_v31 = vand.u32 2147483648, %v2462_v8  ;;  %vm2500_vm14 = vweird.f32 %v2463_v38  ;;  %vm2483_vm15 = vweird.f32 %v2462_v8 }
 0x502   :  { %3372 = vrcp.f32 %v5352_v46  ;;  %vm5377_vm10 = vcmp.eq.f32.partialorder %v2504_v30, 8.507059e+37  ;;  %v2507_v7 = vor.u32 1.1754944e-38, %v2506_v47  ;;  %vm2517_vm0 = vweird.f32 %v5352_v46 }
 0x503   :  { %3374 = vrcp.f32 %v5355_v18  ;;  %v2490_v57 = vor.u32 1.1754944e-38, %v2489_v31  ;;  %vm2488_vm9 = vcmp.eq.f32.partialorder %v2487_v9, 8.507059e+37  ;;  %v2523_v42 = vand.u32 2147483648, %v5352_v46 }
 0x504   :  { %3376 = vrcp.f32 %v5363_v20  ;;  %v2521_v33 = vand.u32 2147483647, %v5352_v46  ;;  %v2557_v9 = vand.u32 2147483648, %v5363_v20 }
 0x505   :  { %3378 = vrcp.f32 %v5368_v4  ;;  %v2524_v41 = vor.u32 1.1754944e-38, %v2523_v42 }
 0x506   :  { %v3369_v56 = vpop.eup %3368  ;;  %3380 = vrcp.f32 %v5398_v43 }
 0x507   :  { %v3371_v21 = vpop.eup %3370  ;;  %v2479_v23 = vmul.f32 %v3369_v56, %v2462_v8  ;;  %vm2484_vm11 = vweird.f32 %v3369_v56 }
 0x508   :  { %v3373_v5 = vpop.eup %3372  ;;  %v2496_v12 = vmul.f32 %v3371_v21, %v2463_v38  ;;  %vm2501_vm13 = vweird.f32 %v3371_v21  ;;  %vm2485_vm1 = vmor %vm2483_vm15, %vm2484_vm11  ;;  %vm2522_vm11 = vcmp.eq.f32.partialorder %v2521_v33, 8.507059e+37 }
 0x509   :  { %v5365_v49 = vpop.eup %3374  ;;  %v2480_v52 = vsub.f32 1.0, %v2479_v23  ;;  %v2513_v48 = vmul.f32 %v3373_v5, %v5352_v46  ;;  %vm2502_vm2 = vmor %vm2500_vm14, %vm2501_vm13  ;;  %vm2518_vm3 = vweird.f32 %v3373_v5  ;;  %vm2534_vm13 = vweird.f32 %v5355_v18 }
 0x50a   :  { %v2497_v34 = vsub.f32 1.0, %v2496_v12  ;;  %v2530_v27 = vmul.f32 %v5365_v49, %v5355_v18  ;;  %v5383_v53 = vpop.eup %3376  ;;  %vm2519_vm12 = vmor %vm2517_vm0, %vm2518_vm3  ;;  %vm2535_vm14 = vweird.f32 %v5365_v49  ;;  %v2538_v23 = vand.u32 2147483647, %v5355_v18 }
 0x50b   :  { %v2481_v36 = vmul.f32 %v3369_v56, %v2480_v52  ;;  %v2514_v3 = vsub.f32 1.0, %v2513_v48  ;;  %v5402_v38 = vpop.eup %3378  ;;  %vm2551_vm0 = vweird.f32 %v5363_v20 }
 0x50c   :  { %v2498_v16 = vmul.f32 %v3371_v21, %v2497_v34  ;;  %v2531_v0 = vsub.f32 1.0, %v2530_v27  ;;  %vm2539_vm15 = vcmp.eq.f32.partialorder %v2538_v23, 8.507059e+37  ;;  %v5423_v48 = vpop.eup %3380  ;;  %vm2569_vm3 = vweird.f32 %v5402_v38  ;;  %v5790_v23 = vld [vmem:[#allocation55_spill] sm:$0xff] }
 0x50d   :  { %v2482_v63 = vadd.f32 %v3369_v56, %v2481_v36  ;;  %v2515_v2 = vmul.f32 %v3373_v5, %v2514_v3  ;;  %v2558_v3 = vor.u32 1.1754944e-38, %v2557_v9 }
 0x50e   :  { %v2499_v59 = vadd.f32 %v3371_v21, %v2498_v16  ;;  %v2532_v62 = vmul.f32 %v5365_v49, %v2531_v0  ;;  %v2591_v0 = vand.u32 2147483648, %v5398_v43 }
 0x50f   :  { %v2486_v37 = vsel %vm2485_vm1, %v3369_v56, %v2482_v63  ;;  %v2516_v1 = vadd.f32 %v3373_v5, %v2515_v2  ;;  %v2540_v56 = vand.u32 2147483648, %v5355_v18  ;;  %v5419_v18 = vperm.slane %v5347_v6, 7 }
 0x510   :  { %v2503_v15 = vsel %vm2502_vm2, %v3371_v21, %v2499_v59  ;;  %v2491_v51 = vsel %vm2488_vm9, %v2490_v57, %v2486_v37  ;;  %vm2552_vm1 = vweird.f32 %v5383_v53  ;;  %v2555_v6 = vand.u32 2147483647, %v5363_v20 }
 0x511   :  { %v2508_v17 = vsel %vm5377_vm10, %v2507_v7, %v2503_v15  ;;  %v2493_v61 = vmul.f32 %v4949_v11, %v2491_v51  ;;  %v2492_v14 = vmul.f32 %v4952_v55, %v2491_v51  ;;  %v2520_v40 = vsel %vm2519_vm12, %v3373_v5, %v2516_v1  ;;  %vm2536_vm10 = vmor %vm2534_vm13, %vm2535_vm14 }
 0x512   :  { %v2509_v29 = vmul.f32 %v4947_v35, %v2508_v17  ;;  %v2547_v11 = vmul.f32 %v5383_v53, %v5363_v20  ;;  %v2525_v55 = vsel %vm2522_vm11, %v2524_v41, %v2520_v40  ;;  %v2533_v35 = vadd.f32 %v5365_v49, %v2532_v62  ;;  %vm2553_vm2 = vmor %vm2551_vm0, %vm2552_vm1  ;;  %v5786_v41 = vld [vmem:[#allocation50_spill] sm:$0xff] }
 0x513   :  { %2621 = vperm.xlu2 %3181, %v2493_v61   ;;  %2616 = vperm.xlu1 %3183, %v2492_v14   ;;  %v2526_v46 = vmul.f32 %v4975_v10, %v2525_v55  ;;  %v2510_v13 = vmul.f32 %v4962_v44, %v2508_v17  ;;  %v2527_v21 = vmul.f32 %v4978_v39, %v2525_v55  ;;  %v2823_v39 = vld [vmem:[%s5574_s13] sm:$0xff]  ;;  %v2541_v12 = vor.u32 1.1754944e-38, %v2540_v56  ;;  %v5789_v56 = vld [vmem:[#allocation53_spill] sm:$0xff] }
 0x514   :  { %2631 = vperm.xlu0 %3182, %v2509_v29   ;;  %v2548_v8 = vsub.f32 1.0, %v2547_v11  ;;  %v2537_v5 = vsel %vm2536_vm10, %v5365_v49, %v2533_v35  ;;  %v2564_v44 = vmul.f32 %v5402_v38, %v5368_v4  ;;  %2864 = vmatpush.msrb.mxu0 %v2823_v39  ;;  %v2511_v34 = vmul.f32 %v4960_v50, %v2508_v17  ;;  %v5787_v11 = vld [vmem:[#allocation52_spill] sm:$0xff] }
 0x515   :  { %v2542_v30 = vsel %vm2539_vm15, %v2541_v12, %v2537_v5  ;;  %v2494_v47 = vmul.f32 %v4965_v28, %v2491_v51  ;;  %3382 = vrcp.f32 %v5419_v18  ;;  %v2581_v28 = vmul.f32 %v5423_v48, %v5398_v43  ;;  %v5792_v39 = vld [vmem:[#allocation56_spill] sm:$0xff] }
 0x516   :  { %v2549_v10 = vmul.f32 %v5383_v53, %v2548_v8  ;;  %v2565_v49 = vsub.f32 1.0, %v2564_v44  ;;  %v2543_v31 = vmul.f32 %v4988_v58, %v2542_v30  ;;  %v2824_v58 = vld [vmem:[%s5574_s13 + $0x8] sm:$0xff]  ;;  %vm2556_vm9 = vcmp.eq.f32.partialorder %v2555_v6, 8.507059e+37 }
 0x517   :  { %2884 = vmatpush.msra.mxu1 %v2824_v58  ;;  %v2582_v27 = vsub.f32 1.0, %v2581_v28  ;;  %v2528_v60 = vmul.f32 %v4973_v25, %v2525_v55  ;;  %v2544_v63 = vmul.f32 %v4991_v22, %v2542_v30  ;;  %v2574_v2 = vand.u32 2147483648, %v5368_v4  ;;  %v2822_v22 = vld [vmem:[%s5784_s24] sm:$0xff] }
 0x518   :  { %v2550_v52 = vadd.f32 %v5383_v53, %v2549_v10  ;;  %v2566_v50 = vmul.f32 %v5402_v38, %v2565_v49  ;;  %vm2568_vm12 = vweird.f32 %v5368_v4  ;;  %v2572_v7 = vand.u32 2147483647, %v5368_v4  ;;  %v5791_v10 = vld [vmem:[#allocation51_spill] sm:$0xff] }
 0x519   :  { %vm2570_vm11 = vmor %vm2568_vm12, %vm2569_vm3  ;;  %v2583_v37 = vmul.f32 %v5423_v48, %v2582_v27  ;;  %vm2845_vm14 = vcmask 523264   ;;  %vm2586_vm10 = vweird.f32 %v5423_v48  ;;  %v2545_v51 = vmul.f32 %v4986_v26, %v2542_v30 }
 0x51a   :  { %v2554_v36 = vsel %vm2553_vm2, %v5383_v53, %v2550_v52  ;;  %v2567_v16 = vadd.f32 %v5402_v38, %v2566_v50  ;;  %3173 = vmatmul.msk.f32.vlgmr.msrb.gmra.mxu0 %vm2845_vm14, %v2822_v22  ;;  %3174 = vmatmul.msk.f32.vlgmr.msra.gmra.mxu1 %vm2845_vm14, %v2822_v22  ;;  %vm2573_vm13 = vcmp.eq.f32.partialorder %v2572_v7, 8.507059e+37  ;;  %vm2585_vm15 = vweird.f32 %v5398_v43  ;;  %v5477_v52 = vld [vmem:[%s5577_s16] ss:$0 sm:$0xff]  ;;  %v5795_v7 = vld [vmem:[#allocation21_spill] sm:$0xff] }
 0x51b   :  { %2646 = vperm.xlu2 %3181, %v2526_v46   ;;  %2636 = vperm.xlu1 %3183, %v2510_v13   ;;  %v2559_v20 = vsel %vm2556_vm9, %v2558_v3, %v2554_v36  ;;  %v3383_v19 = vpop.eup %3382  ;;  %v2584_v1 = vadd.f32 %v5423_v48, %v2583_v37  ;;  %v2589_v17 = vand.u32 2147483647, %v5398_v43  ;;  %vm2587_vm1 = vmor %vm2585_vm15, %vm2586_vm10  ;;  %v2592_v33 = vor.u32 1.1754944e-38, %v2591_v0  ;;  %v5788_v46 = vld [vmem:[#allocation49_spill] sm:$0xff]  ;;  %v5801_v0 = vld [vmem:[#allocation24_spill] sm:$0xff] }
 0x51c   :  { %2651 = vperm.xlu0 %3182, %v2527_v21   ;;  %v2560_v59 = vmul.f32 %v5001_v54, %v2559_v20  ;;  %v2571_v57 = vsel %vm2570_vm11, %v5402_v38, %v2567_v16  ;;  %v2598_v25 = vmul.f32 %v3383_v19, %v5419_v18  ;;  %v2575_v54 = vor.u32 1.1754944e-38, %v2574_v2 }
 0x51d   :  { %v2561_v42 = vmul.f32 %v5004_v24, %v2559_v20  ;;  %v2588_v61 = vsel %vm2587_vm1, %v5423_v48, %v2584_v1  ;;  %vm2590_vm0 = vcmp.eq.f32.partialorder %v2589_v17, 8.507059e+37  ;;  %vm2603_vm2 = vweird.f32 %v3383_v19  ;;  %v5785_v24 = vld [vmem:[#allocation48_spill] sm:$0xff] }
 0x51e   :  { %v2576_v4 = vsel %vm2573_vm13, %v2575_v54, %v2571_v57  ;;  %v2599_v15 = vsub.f32 1.0, %v2598_v25  ;;  %v2593_v26 = vsel %vm2590_vm0, %v2592_v33, %v2588_v61  ;;  %v2562_v40 = vmul.f32 %v5785_v24, %v2559_v20  ;;  %v5797_v25 = vld [vmem:[#allocation25_spill] sm:$0xff]  ;;  %v5803_v61 = vld [vmem:[#allocation23_spill] sm:$0xff] }
 0x51f   :  { %v2577_v53 = vmul.f32 %v5014_v45, %v2576_v4  ;;  %v2578_v45 = vmul.f32 %v5786_v41, %v2576_v4  ;;  %v2608_v62 = vand.u32 2147483648, %v5419_v18  ;;  %v2594_v55 = vmul.f32 %v5787_v11, %v2593_v26  ;;  %v5807_v41 = vld [vmem:[#allocation28_spill] sm:$0xff] }
 0x520   :  { %v2600_v14 = vmul.f32 %v3383_v19, %v2599_v15  ;;  %vm2602_vm9 = vweird.f32 %v5419_v18  ;;  %v2606_v43 = vand.u32 2147483647, %v5419_v18  ;;  %v2579_v13 = vmul.f32 %v5788_v46, %v2576_v4  ;;  %v5793_v18 = vld [vmem:[#allocation54_spill] sm:$0xff] }
 0x521   :  { %vm2604_vm3 = vmor %vm2602_vm9, %vm2603_vm2  ;;  %v2609_v8 = vor.u32 1.1754944e-38, %v2608_v62  ;;  %v2595_v21 = vmul.f32 %v5789_v56, %v2593_v26  ;;  %v2596_v44 = vmul.f32 %v5791_v10, %v2593_v26  ;;  %vm5794_vm11 = vcmask 261120   ;;  %v5799_v15 = vld [vmem:[#allocation22_spill] sm:$0xff]  ;;  %v5805_v26 = vld [vmem:[#allocation31_spill] sm:$0xff] }
 0x522   :  { %v2601_v29 = vadd.f32 %v3383_v19, %v2600_v14  ;;  %vm2607_vm12 = vcmp.eq.f32.partialorder %v2606_v43, 8.507059e+37  ;;  %v5796_v57 = vmax.f32 %v5795_v7, 0.0  ;;  %v5798_v22 = vmax.f32 %v5797_v25, 0.0  ;;  %v5825_v7 = vld [vmem:[#allocation29_spill] sm:$0xff]  ;;  %v5827_v25 = vld [vmem:[#allocation35_spill] sm:$0xff] }
 0x523   :  { %2641 = vperm.xlu2 %3181, %v2511_v34   ;;  %2626 = vperm.xlu1 %3183, %v2494_v47   ;;  %v5483_v47 = vld [vmem:[%s5578_s17] ss:$0 sm:$0xff]  ;;  %v5804_v14 = vmax.f32 %v5803_v61, 0.0  ;;  %vm5844_vm14 = vcmask 1047559  }
 0x524   :  { %2661 = vperm.xlu0 %3182, %v2543_v31   ;;  %v2605_v35 = vsel %vm2604_vm3, %v3383_v19, %v2601_v29  ;;  %v5806_v29 = vmax.f32 %v5805_v26, 0.0 }
 0x525   :  { %v2610_v38 = vsel %vm2607_vm12, %v2609_v8, %v2605_v35  ;;  %v5811_v8 = vld [vmem:[#allocation30_spill] sm:$0xff] }
 0x526   :  { %v2611_v5 = vmul.f32 %v5790_v23, %v2610_v38  ;;  %v2612_v12 = vmul.f32 %v5792_v39, %v2610_v38  ;;  %v2613_v30 = vmul.f32 %v5793_v18, %v2610_v38  ;;  %v5812_v38 = vmax.f32 %v5811_v8, 0.0  ;;  %v5815_v23 = vld [vmem:[#allocation26_spill] sm:$0xff]  ;;  %v5817_v39 = vld [vmem:[#allocation33_spill] sm:$0xff] }
 0x52b   :  { %2656 = vperm.xlu2 %3181, %v2528_v60   ;;  %2666 = vperm.xlu1 %3183, %v2544_v63  }
 0x52c   :  { %2676 = vperm.xlu0 %3182, %v2560_v59  }
 0x533   :  { %2671 = vperm.xlu2 %3181, %v2545_v51   ;;  %2681 = vperm.xlu1 %3183, %v2561_v42   ;;  %v5800_v51 = vmax.f32 %v5799_v15, 0.0  ;;  %v5829_v15 = vld [vmem:[#allocation38_spill] sm:$0xff] }
 0x534   :  { %2691 = vperm.xlu0 %3182, %v2577_v53   ;;  %v5802_v53 = vmax.f32 %v5801_v0, 0.0 }
 0x53b   :  { %2686 = vperm.xlu2 %3181, %v2562_v40   ;;  %2696 = vperm.xlu1 %3183, %v2578_v45   ;;  %v5808_v45 = vmax.f32 %v5807_v41, 0.0 }
 0x53c   :  { %2706 = vperm.xlu0 %3182, %v2594_v55   ;;  %v5809_v55 = vld [vmem:[#allocation34_spill] sm:$0xff] }
 0x53d   :  { %v5810_v43 = vmax.f32 %v5809_v55, 0.0 }
 0x543   :  { %2701 = vperm.xlu2 %3181, %v2579_v13   ;;  %2711 = vperm.xlu1 %3183, %v2595_v21   ;;  %v5813_v13 = vld [vmem:[#allocation27_spill] sm:$0xff] }
 0x544   :  { %2721 = vperm.xlu0 %3182, %v2611_v5   ;;  %v5814_v56 = vmax.f32 %v5813_v13, 0.0  ;;  %v5816_v5 = vmax.f32 %v5815_v23, 0.0 }
 0x54b   :  { %2716 = vperm.xlu2 %3181, %v2596_v44   ;;  %2726 = vperm.xlu1 %3183, %v2612_v12   ;;  %v5818_v12 = vmax.f32 %v5817_v39, 0.0 }
 0x54c   :  { %2731 = vperm.xlu0 %3182, %v2613_v30  }
 0x56d   :  { %v2960_v49 = vpop.f32.mrf.mxu2  ;;  %v2622_v34 = vpop.permute.xlu2 %2621 }
 0x56e   :  { %v2961_v48 = vadd.f32 %v5477_v52, %v2960_v49  ;;  %v2735_v42 = vmul.f32 %v2622_v34, %v5800_v51  ;;  %v5830_v51 = vmax.f32 %v5829_v15, 0.0 }
 0x570   :  { %3384 = vtanh.f32 %v2961_v48 }
 0x575   :  { %v2647_v6 = vpop.permute.xlu2 %2646 }
 0x576   :  { %v3385_v9 = vpop.eup %3384  ;;  %v2740_v21 = vmul.f32 %v2647_v6, %v5814_v56 }
 0x577   :  { %v2980_v31 = vmul.f32 %v3385_v9, %v5483_v47 }
 0x579   :  { %v2984_v36 = vsel %vm5794_vm11, %v2980_v31, 0.0 }
 0x57a   :  { %2985 = vadd.xlane.f32.xlu1 %v2984_v36  ;;  %v5819_v36 = vld [vmem:[#allocation32_spill] sm:$0xff] }
 0x57d   :  { %v2642_v50 = vpop.permute.xlu2 %2641 }
 0x57e   :  { %v2739_v10 = vmul.f32 %v2642_v50, %v5816_v5 }
 0x585   :  { %v2617_v28 = vpop.permute.xlu1 %2616  ;;  %v2657_v3 = vpop.permute.xlu2 %2656 }
 0x586   :  { %v2632_v58 = vpop.permute.xlu0 %2631  ;;  %v2734_v37 = vmul.f32 %v2617_v28, %v5796_v57  ;;  %v5820_v28 = vmax.f32 %v5819_v36, 0.0  ;;  %v5826_v57 = vmax.f32 %v5825_v7, 0.0  ;;  %v5841_v7 = vld [vmem:[#allocation44_spill] sm:$0xff] }
 0x587   :  { %v2737_v17 = vmul.f32 %v2632_v58, %v5802_v53 }
 0x588   :  { %v2758_v40 = vadd.f32 %v2735_v42, %v2734_v37  ;;  %v2742_v37 = vmul.f32 %v2657_v3, %v5826_v57  ;;  %v5842_v57 = vmax.f32 %v5841_v7, 0.0 }
 0x58d   :  { %v2637_v20 = vpop.permute.xlu1 %2636  ;;  %v2672_v60 = vpop.permute.xlu2 %2671 }
 0x58e   :  { %v2652_v16 = vpop.permute.xlu0 %2651  ;;  %v2738_v54 = vmul.f32 %v2637_v20, %v5798_v22  ;;  %v2745_v58 = vmul.f32 %v2672_v60, %v5820_v28  ;;  %v5821_v20 = vld [vmem:[#allocation36_spill] sm:$0xff]  ;;  %v5828_v22 = vmax.f32 %v5827_v25, 0.0 }
 0x58f   :  { %v2741_v62 = vmul.f32 %v2652_v16, %v5808_v45  ;;  %v5822_v16 = vmax.f32 %v5821_v20, 0.0 }
 0x590   :  { %v2766_v11 = vadd.f32 %v2738_v54, %v2737_v17 }
 0x591   :  { %v2774_v48 = vadd.f32 %v2741_v62, %v2740_v21 }
 0x592   :  { %v2767_v34 = vadd.f32 %v2766_v11, %v2739_v10  ;;  %v5833_v11 = vld [vmem:[#allocation40_spill] sm:$0xff] }
 0x593   :  { %v2775_v60 = vadd.f32 %v2774_v48, %v2742_v37  ;;  %v5834_v55 = vmax.f32 %v5833_v11, 0.0 }
 0x594   :  { %v2768_v53 = vrot.slane %v2767_v34, 4 }
 0x595   :  { %v2627_v27 = vpop.permute.xlu1 %2626  ;;  %v2687_v59 = vpop.permute.xlu2 %2686 }
 0x596   :  { %v2662_v19 = vpop.permute.xlu0 %2661  ;;  %v2736_v33 = vmul.f32 %v2627_v27, %v5804_v14  ;;  %v2748_v54 = vmul.f32 %v2687_v59, %v5828_v22  ;;  %v2769_v26 = vadd.f32 %v2768_v53, %v2767_v34 }
 0x597   :  { %v2743_v46 = vmul.f32 %v2662_v19, %v5812_v38  ;;  %v5823_v19 = vld [vmem:[#allocation37_spill] sm:$0xff] }
 0x598   :  { %v2759_v44 = vadd.f32 %v2758_v40, %v2736_v33  ;;  %v2776_v33 = vrot.slane %v2775_v60, 4  ;;  %v5831_v40 = vld [vmem:[#allocation39_spill] sm:$0xff]  ;;  %v5835_v38 = vld [vmem:[#allocation41_spill] sm:$0xff]  ;;  %v2770_v23 = vrot.slane %v2769_v26, 2 }
 0x599   :  { %v5832_v41 = vmax.f32 %v5831_v40, 0.0 }
 0x59a   :  { %v2777_v21 = vadd.f32 %v2776_v33, %v2775_v60 }
 0x59d   :  { %v2667_v63 = vpop.permute.xlu1 %2666  ;;  %v2702_v30 = vpop.permute.xlu2 %2701 }
 0x59e   :  { %v2677_v2 = vpop.permute.xlu0 %2676  ;;  %v2744_v24 = vmul.f32 %v2667_v63, %v5806_v29  ;;  %v5824_v63 = vmax.f32 %v5823_v19, 0.0  ;;  %v2751_v42 = vmul.f32 %v2702_v30, %v5830_v51  ;;  %v2778_v30 = vrot.slane %v2777_v21, 2 }
 0x59f   :  { %v2746_v18 = vmul.f32 %v2677_v2, %v5818_v12  ;;  %v2760_v2 = vrot.slane %v2759_v44, 4 }
 0x5a0   :  { %v2782_v49 = vadd.f32 %v2744_v24, %v2743_v46  ;;  %v5836_v46 = vmax.f32 %v5835_v38, 0.0  ;;  %v2779_v25 = vadd.f32 %v2778_v30, %v2777_v21 }
 0x5a1   :  { %v2761_v61 = vadd.f32 %v2760_v2, %v2759_v44 }
 0x5a2   :  { %v2780_v53 = vrot.slane %v2779_v25, 1 }
 0x5a5   :  { %v2682_v4 = vpop.permute.xlu1 %2681  ;;  %v2717_v24 = vpop.permute.xlu2 %2716 }
 0x5a6   :  { %v2692_v1 = vpop.permute.xlu0 %2691  ;;  %v2747_v35 = vmul.f32 %v2682_v4, %v5810_v43  ;;  %v2783_v4 = vadd.f32 %v2782_v49, %v2745_v58  ;;  %v2754_v13 = vmul.f32 %v2717_v24, %v5836_v46  ;;  %v2771_v49 = vadd.f32 %v2770_v23, %v2769_v26 }
 0x5a7   :  { %v2749_v27 = vmul.f32 %v2692_v1, %v5822_v16  ;;  %v5839_v16 = vld [vmem:[#allocation43_spill] sm:$0xff] }
 0x5a8   :  { %v2790_v9 = vadd.f32 %v2747_v35, %v2746_v18  ;;  %v2784_v14 = vrot.slane %v2783_v4, 4  ;;  %v2762_v35 = vrot.slane %v2761_v61, 2 }
 0x5aa   :  { %v2791_v17 = vadd.f32 %v2790_v9, %v2748_v54  ;;  %v2785_v8 = vadd.f32 %v2784_v14, %v2783_v4  ;;  %v2763_v39 = vadd.f32 %v2762_v35, %v2761_v61  ;;  %v2772_v54 = vrot.slane %v2771_v49, 1 }
 0x5ac   :  { %v2792_v29 = vrot.slane %v2791_v17, 4  ;;  %v2786_v12 = vrot.slane %v2785_v8, 2  ;;  %v2764_v19 = vrot.slane %v2763_v39, 1 }
 0x5ad   :  { %v2697_v31 = vpop.permute.xlu1 %2696 }
 0x5ae   :  { %v2707_v6 = vpop.permute.xlu0 %2706  ;;  %v2750_v50 = vmul.f32 %v2697_v31, %v5824_v63  ;;  %v2793_v5 = vadd.f32 %v2792_v29, %v2791_v17  ;;  %v5837_v31 = vld [vmem:[#allocation42_spill] sm:$0xff]  ;;  %v2787_v63 = vadd.f32 %v2786_v12, %v2785_v8 }
 0x5af   :  { %v2752_v45 = vmul.f32 %v2707_v6, %v5832_v41  ;;  %v5838_v36 = vmax.f32 %v5837_v31, 0.0 }
 0x5b0   :  { %v2798_v0 = vadd.f32 %v2750_v50, %v2749_v27  ;;  %v2794_v48 = vrot.slane %v2793_v5, 2  ;;  %v5840_v27 = vmax.f32 %v5839_v16, 0.0 }
 0x5b2   :  { %v2799_v1 = vadd.f32 %v2798_v0, %v2751_v42  ;;  %v2795_v22 = vadd.f32 %v2794_v48, %v2793_v5  ;;  %v2765_v42 = vadd.f32 %v2764_v19, %v2763_v39  ;;  %v2788_v0 = vrot.slane %v2787_v63, 1 }
 0x5b4   :  { %v2800_v59 = vrot.slane %v2799_v1, 4  ;;  %v2796_v17 = vrot.slane %v2795_v22, 1  ;;  %v2789_v29 = vadd.f32 %v2788_v0, %v2787_v63 }
 0x5b5   :  { %v2712_v3 = vpop.permute.xlu1 %2711 }
 0x5b6   :  { %v2722_v62 = vpop.permute.xlu0 %2721  ;;  %v2753_v43 = vmul.f32 %v2712_v3, %v5834_v55  ;;  %v2801_v10 = vadd.f32 %v2800_v59, %v2799_v1  ;;  %v2773_v1 = vadd.f32 %v2772_v54, %v2771_v49  ;;  %v2781_v3 = vadd.f32 %v2780_v53, %v2779_v25  ;;  %v2839_v59 = vld [vmem:[%s5575_s14] sm:$0x3]  ;;  %s3429_s14 = smov [#allocation2]  }
 0x5b7   :  { %v2755_v28 = vmul.f32 %v2722_v62, %v5838_v36  ;;  %v2797_v40 = vadd.f32 %v2796_v17, %v2795_v22  ;;  %v2841_v8 = vperm.slane %v2839_v59, 0  ;;  %s3042_s27 = sshll.u32 %s3429_s14, 4  ;;  %s3043_s27 = int_to_ptr.vmem [resolvable:$true] %s3042_s27 }
 0x5b8   :  { %v2806_v56 = vadd.f32 %v2753_v43, %v2752_v45  ;;  %v2802_v9 = vrot.slane %v2801_v10, 2  ;;  %v2915_v26 = vsel %vm759_vm4, %v2773_v1, %v2765_v42  ;;  %vm5843_vm4 = vcmask 1046534  }
 0x5b9   :  { %v2916_v11 = vsel %vm761_vm5, %v2781_v3, %v2915_v26  ;;  %vm5845_vm5 = vmmov %vm5794_vm11 }
 0x5ba   :  { %v2807_v44 = vadd.f32 %v2806_v56, %v2754_v13  ;;  %v2803_v4 = vadd.f32 %v2802_v9, %v2801_v10  ;;  %v2917_v43 = vsel %vm763_vm6, %v2789_v29, %v2916_v11  ;;  %v2866_v13 = vpop.f32.mrf.mxu0  ;;  %v2842_v10 = vperm.slane %v2839_v59, 1  ;;  %vm5846_vm6 = vmmov %vm5845_vm5 }
 0x5bb   :  { %v2918_v35 = vsel %vm765_vm7, %v2797_v40, %v2917_v43  ;;  %v2867_v23 = vadd.f32 %v2866_v13, %v2841_v8  ;;  %vm5847_vm7 = vmmov %vm5845_vm5 }
 0x5bc   :  { %v2808_v18 = vrot.slane %v2807_v44, 4  ;;  %v2804_v61 = vrot.slane %v2803_v4, 1 }
 0x5bd   :  { %v2727_v34 = vpop.permute.xlu1 %2726  ;;  %v2889_v5 = vmax.f32 %v2867_v23, 0.0 }
 0x5be   :  { %v2809_v58 = vadd.f32 %v2808_v18, %v2807_v44  ;;  %v2732_v20 = vpop.permute.xlu0 %2731  ;;  %v2756_v6 = vmul.f32 %v2727_v34, %v5840_v27  ;;  %v2805_v41 = vadd.f32 %v2804_v61, %v2803_v4  ;;  %v2886_v44 = vpop.f32.mrf.mxu1 }
 0x5bf   :  { %v2757_v37 = vmul.f32 %v2732_v20, %v5842_v57  ;;  %v5545_v39 = vadd.f32 %v2886_v44, %v2842_v10 }
 0x5c0   :  { %v2810_v50 = vrot.slane %v2809_v58, 2  ;;  %v2814_v2 = vadd.f32 %v2756_v6, %v2755_v28  ;;  %v2919_v46 = vsel %vm767_vm8, %v2805_v41, %v2918_v35 }
 0x5c1   :  { %v2890_v12 = vmax.f32 %v5545_v39, 0.0 }
 0x5c2   :  { %v2815_v15 = vadd.f32 %v2814_v2, %v2757_v37  ;;  %v2811_v51 = vadd.f32 %v2810_v50, %v2809_v58 }
 0x5c4   :  { %v2816_v60 = vrot.slane %v2815_v15, 4  ;;  %v2812_v33 = vrot.slane %v2811_v51, 1 }
 0x5c6   :  { %v2817_v14 = vadd.f32 %v2816_v60, %v2815_v15  ;;  %v2813_v62 = vadd.f32 %v2812_v33, %v2811_v51 }
 0x5c8   :  { %v2818_v24 = vrot.slane %v2817_v14, 2  ;;  %v2920_v56 = vsel %vm5843_vm4, %v2813_v62, %v2919_v46 }
 0x5ca   :  { %v2819_v45 = vadd.f32 %v2818_v24, %v2817_v14 }
 0x5cc   :  { %v2820_v55 = vrot.slane %v2819_v45, 1 }
 0x5ce   :  { %v2821_v38 = vadd.f32 %v2820_v55, %v2819_v45 }
 0x5d0   :  { %v2921_v21 = vsel %vm5844_vm14, %v2821_v38, %v2920_v56 }
 0x5d1   :  { %2962 = vmatmul.f32.gmra.mxu2 %v2921_v21 }
 0x5d9   :  { %2965 = vmatmul.f32.gmra.mxu2 %v2889_v5 }
 0x5e1   :  { %2968 = vmatmul.f32.gmra.mxu2 %v2890_v12 }
 0x5ed   :  { %v2986_v63 = vpop.xlane.xlu1 %2985 }
 0x654   :  { %v2963_v18 = vpop.f32.mrf.mxu2 }
 0x655   :  { %v2964_v30 = vadd.f32 %v5477_v52, %v2963_v18 }
 0x657   :  { %3386 = vtanh.f32 %v2964_v30 }
 0x65c   :  { %v2966_v49 = vpop.f32.mrf.mxu2 }
 0x65d   :  { %v3387_v48 = vpop.eup %3386  ;;  %v2967_v34 = vadd.f32 %v5477_v52, %v2966_v49 }
 0x65e   :  { %v2981_v9 = vmul.f32 %v3387_v48, %v5483_v47 }
 0x65f   :  { %3388 = vtanh.f32 %v2967_v34 }
 0x660   :  { %v2987_v31 = vsel %vm5845_vm5, %v2981_v9, 0.0 }
 0x661   :  { %2988 = vadd.xlane.f32.xlu2 %v2987_v31 }
 0x664   :  { %v2969_v36 = vpop.f32.mrf.mxu2 }
 0x665   :  { %v3389_v28 = vpop.eup %3388  ;;  %v2970_v58 = vadd.f32 %v5477_v52, %v2969_v36 }
 0x666   :  { %v2982_v20 = vmul.f32 %v3389_v28, %v5483_v47 }
 0x667   :  { %3390 = vtanh.f32 %v2970_v58 }
 0x668   :  { %v2990_v16 = vsel %vm5846_vm6, %v2982_v20, 0.0 }
 0x669   :  { %2991 = vadd.xlane.f32.xlu0 %v2990_v16 }
 0x66d   :  { %v3391_v27 = vpop.eup %3390 }
 0x66e   :  { %v2983_v6 = vmul.f32 %v3391_v27, %v5483_v47 }
 0x670   :  { %v2993_v19 = vsel %vm5847_vm7, %v2983_v6, 0.0 }
 0x671   :  { %2994 = vadd.xlane.f32.xlu1 %v2993_v19 }
 0x6d4   :  { %v2989_v50 = vpop.xlane.xlu2 %2988 }
 0x6d5   :  { %v2996_v37 = vmax.f32 %v2986_v63, %v2989_v50 }
 0x6dc   :  { %v2992_v7 = vpop.xlane.xlu0 %2991 }
 0x6e4   :  { %v2995_v57 = vpop.xlane.xlu1 %2994 }
 0x6e5   :  { %v2997_v2 = vmax.f32 %v2992_v7, %v2995_v57 }
 0x6e7   :  { %v2998_v25 = vmax.f32 %v2996_v37, %v2997_v2 }
 0x6e9   :  { %v2999_v52 = vsub.f32 %v2986_v63, %v2998_v25  ;;  %v3002_v22 = vsub.f32 %v2989_v50, %v2998_v25  ;;  %v3005_v54 = vsub.f32 %v2992_v7, %v2998_v25  ;;  %v3008_v4 = vsub.f32 %v2995_v57, %v2998_v25 }
 0x6eb   :  { %v3000_v15 = vmul.f32 1.442695, %v2999_v52  ;;  %v3003_v51 = vmul.f32 1.442695, %v3002_v22  ;;  %v3006_v42 = vmul.f32 1.442695, %v3005_v54 }
 0x6ec   :  { %v3009_v47 = vmul.f32 1.442695, %v3008_v4 }
 0x6ed   :  { %3392 = vpow2.f32 %v3000_v15 }
 0x6ee   :  { %3394 = vpow2.f32 %v3003_v51 }
 0x6ef   :  { %3396 = vpow2.f32 %v3006_v42 }
 0x6f0   :  { %3398 = vpow2.f32 %v3009_v47 }
 0x6f3   :  { %v3393_v0 = vpop.eup %3392 }
 0x6f4   :  { %v3395_v60 = vpop.eup %3394  ;;  %v3014_v33 = vmul.f32 %v3393_v0, %v5341_v32 }
 0x6f5   :  { %v3011_v53 = vadd.f32 %v3395_v60, %v3393_v0  ;;  %v3397_v17 = vpop.eup %3396  ;;  %v3015_v26 = vmul.f32 %v3395_v60, %v2921_v21 }
 0x6f6   :  { %v3399_v61 = vpop.eup %3398  ;;  %v3017_v40 = vmul.f32 %v3397_v17, %v2889_v5 }
 0x6f7   :  { %v3012_v1 = vadd.f32 %v3397_v17, %v3011_v53  ;;  %v3016_v24 = vadd.f32 %v3015_v26, %v3014_v33  ;;  %v3019_v55 = vmul.f32 %v3399_v61, %v2890_v12 }
 0x6f9   :  { %v3013_v14 = vadd.f32 %v3399_v61, %v3012_v1  ;;  %v3018_v59 = vadd.f32 %v3017_v40, %v3016_v24 }
 0x6fb   :  { %3400 = vrcp.f32 %v3013_v14  ;;  %v3032_v45 = vand.u32 2147483648, %v3013_v14  ;;  %v3030_v11 = vand.u32 2147483647, %v3013_v14  ;;  %vm3026_vm13 = vweird.f32 %v3013_v14 }
 0x6fc   :  { %v3020_v32 = vadd.f32 %v3019_v55, %v3018_v59 }
 0x6fd   :  { %v3033_v35 = vor.u32 1.1754944e-38, %v3032_v45  ;;  %vm3031_vm15 = vcmp.eq.f32.partialorder %v3030_v11, 8.507059e+37 }
 0x701   :  { %v3401_v29 = vpop.eup %3400 }
 0x702   :  { %v3022_v3 = vmul.f32 %v3401_v29, %v3013_v14  ;;  %vm3027_vm8 = vweird.f32 %v3401_v29 }
 0x703   :  { %vm3028_vm10 = vmor %vm3026_vm13, %vm3027_vm8 }
 0x704   :  { %v3023_v41 = vsub.f32 1.0, %v3022_v3 }
 0x706   :  { %v3024_v62 = vmul.f32 %v3401_v29, %v3023_v41 }
 0x708   :  { %v3025_v43 = vadd.f32 %v3401_v29, %v3024_v62 }
 0x70a   :  { %v3029_v8 = vsel %vm3028_vm10, %v3401_v29, %v3025_v43 }
 0x70b   :  { %v3034_v38 = vsel %vm3031_vm15, %v3033_v35, %v3029_v8 }
 0x70c   :  { %v3035_v46 = vmul.f32 %v3034_v38, %v3020_v32 }
 0x70e   :  { %3036 = vst [vmem:[#allocation2] sm:$0xff] %v3035_v46 }
 0x70f   :  { %3047 = dma.vmem_to_hbm [thread:$0]  %s3043_s27, 128, %s3045_s3, [#allocation3]  }
 0x710   :  { %3426 = dma.done.wait [#allocation3], 128  }
 0x711   :  { %3427 = vsyncadd [#allocation3], 4294967168 }
 0x712   :  { %3052 = vsyncpa [#allocation3], 1 }

</bundles_post_ra>
